<compile_context>
chip_gen: v6e
topology: v6e:2x2x1
jax: 0.10.0
libtpu: 0.0.40
codegen_flags: <defaults>
</compile_context>

<pallas_src>
import functools
import math

import numpy as np
import jax
import jax.numpy as jnp
from jax import lax
from jax.experimental import pallas as pl
from jax.experimental.pallas import tpu as pltpu


def _ssp(x):
    # shifted_softplus(x) = softplus(x) - log(2);   ssp(0) == 0 exactly.
    return jax.nn.softplus(x) - math.log(2.0)


# ----------------------------------------------------------------------------
# Pass 1: per-edge filter pre-pass (all interaction layers fused).
# Output W is lane-dense: (E_pad, L * F_pad) bf16, rcut folded in.
# ----------------------------------------------------------------------------
def filter_kernel(d_ref, etype_ref, rbf_off_ref, edge_emb_ref,
                  w_f1p_ref, b_f1p_ref, w_f2_ref, b_f2_ref,
                  w_out_ref, *,
                  n_interactions: int, n_filters: int,
                  rbf_coeff: float, cutoff: float):
    f32, bf16 = jnp.float32, jnp.bfloat16
    te = d_ref.shape[0]
    n_types = edge_emb_ref.shape[0]
    Fp = n_filters

    d = d_ref[...]                                                  # (te, 1)

    # GaussianRBF + edge-type embedding (one-hot built in-kernel from int type).
    rbf = jnp.exp(rbf_coeff * (d - rbf_off_ref[...]) ** 2)          # (te, R)
    eoh = (etype_ref[...] ==
           lax.broadcasted_iota(jnp.int32, (te, n_types), 1)).astype(f32)
    f_ij = rbf + jnp.dot(eoh, edge_emb_ref[...],
                         preferred_element_type=f32)                # (te, R)

    # CosineCutoff: 0.5*(cos(pi*d/rc)+1) * (d < rc)
    rcut = 0.5 * (jnp.cos(d * (math.pi / cutoff)) + 1.0)
    rcut = rcut * (d < cutoff).astype(f32)                          # (te, 1)

    # dense-1 of all layers packed along columns (te,R)@(R,L*Fp).
    h1 = _ssp(jnp.dot(f_ij.astype(bf16), w_f1p_ref[...],
                      preferred_element_type=f32) + b_f1p_ref[...])  # (te, L*Fp)

    # dense-2 per layer: (te,Fp)@(Fp,Fp)  (no block-diag L x flop waste).
    rcut_b = jnp.broadcast_to(rcut, (te, Fp))                        # hoisted
    for layer in range(n_interactions):
        sl = h1[:, layer * Fp:(layer + 1) * Fp].astype(bf16)         # (te, Fp)
        h2 = jnp.dot(sl, w_f2_ref[layer],
                     preferred_element_type=f32) + b_f2_ref[layer]   # (te, Fp)
        # 128-wide, lane-aligned store into the (te, L*Fp) output slab.
        w_out_ref[:, layer * Fp:(layer + 1) * Fp] = (h2 * rcut_b).astype(bf16)


# ----------------------------------------------------------------------------
# Pass 2: interaction layers + head + readout.  grid = (L, n_edge_tiles)
# ----------------------------------------------------------------------------
def main_kernel(win_off_ref,                                   # SMEM prefetch
                idx_j_ref, idx_i_ref, w_ref, x0_ref, batch_ref,
                w_in2f_ref, w_o1_ref, b_o1_ref, w_o2_ref, b_o2_ref,
                w_h1_ref, b_h1_ref, w_h2_ref,
                out_ref,
                x_scr, xf_scr, agg_scr, *,
                n_interactions: int, n_window: int, norm_eps: float):
    f32, bf16 = jnp.float32, jnp.bfloat16
    layer = pl.program_id(0)
    tile = pl.program_id(1)
    n_tiles = pl.num_programs(1)
    n_atoms = x_scr.shape[0]
    te = idx_j_ref.shape[-1]
    Wn = n_window

    # ---- one-time init of atom state + output block ----
    @pl.when(jnp.logical_and(layer == 0, tile == 0))
    def _init_state():
        x_scr[...] = x0_ref[...]
        out_ref[...] = jnp.zeros_like(out_ref)

    # ---- start of every layer: in2f (bias-free Dense) + reset accumulator ----
    @pl.when(tile == 0)
    def _start_layer():
        xf_scr[...] = jnp.dot(x_scr[...].astype(bf16), w_in2f_ref[0],
                              preferred_element_type=f32).astype(bf16)
        agg_scr[...] = jnp.zeros_like(agg_scr)

    # ---- continuous-filter convolution over this edge tile ----
    # Per-tile atom window [off, off+Wn): one-hots are (Wn, te) built directly
    # from the lane-dense (1, te) index rows (no transposes), single bf16 cast.
    off = pl.multiple_of(win_off_ref[tile], 16)
    xf_w = xf_scr[pl.ds(off, Wn), :]                                  # (Wn, Fp)

    idx_j = idx_j_ref[0]                                              # (1, te)
    idx_i = idx_i_ref[0]                                              # (1, te)
    iota_w = lax.broadcasted_iota(jnp.int32, (Wn, te), 0) + off
    ohT_j = (idx_j == iota_w).astype(bf16)                            # (Wn, te)
    ohT_i = (idx_i == iota_w).astype(bf16)                            # (Wn, te)

    # gather:  x_j[e,f] = sum_w ohT_j[w,e] * xf_w[w,f]
    x_j = lax.dot_general(ohT_j, xf_w, (((0,), (0,)), ((), ())),
                          preferred_element_type=f32)                 # (te, Fp)
    x_ij = (x_j * w_ref[...]).astype(bf16)                            # modulate
    # scatter_add over idx_i into the atom window only.
    agg_scr[pl.ds(off, Wn), :] += jnp.dot(ohT_i, x_ij,
                                          preferred_element_type=f32)  # (Wn, Fp)

    # ---- end of layer: f2out MLP + residual update ----
    @pl.when(tile == n_tiles - 1)
    def _finish_layer():
        agg = agg_scr[...]
        v = _ssp(jnp.dot(agg.astype(bf16), w_o1_ref[0],
                         preferred_element_type=f32) + b_o1_ref[0])
        v = jnp.dot(v.astype(bf16), w_o2_ref[0],
                    preferred_element_type=f32) + b_o2_ref[0]
        x_scr[...] = x_scr[...] + v

    # ---- final step: normalize + head + per-graph readout ----
    @pl.when(jnp.logical_and(tile == n_tiles - 1,
                             layer == n_interactions - 1))
    def _head_and_readout():
        x = x_scr[...]
        # F.normalize(x, dim=-1): x * rsqrt(max(||x||^2, eps^2))
        inv_norm = lax.rsqrt(jnp.maximum(jnp.sum(x * x, axis=-1, keepdims=True),
                                         norm_eps * norm_eps))
        h = jax.nn.silu(x * inv_norm)
        h = jnp.dot(h.astype(bf16), w_h1_ref[...],
                    preferred_element_type=f32) + b_h1_ref[...]
        h = jax.nn.silu(h)
        h = jnp.dot(h.astype(bf16), w_h2_ref[...],
                    preferred_element_type=f32)                       # (N, 1)

        # per-graph readout on the MXU: contract the atom dimension.
        n_graphs = out_ref.shape[1]
        iota_g = lax.broadcasted_iota(jnp.int32, (n_atoms, n_graphs), 1)
        oh_b = (batch_ref[...] == iota_g).astype(f32)                 # (N, B)
        out_ref[...] = lax.dot_general(h, oh_b, (((0,), (0,)), ((), ())),
                                       preferred_element_type=f32)    # (1, B)


# ----------------------------------------------------------------------------
# Wrapper
# ----------------------------------------------------------------------------
def schnet_forward(data, params, *, n_interactions, n_graphs, rbf_coeff, cutoff):
    """Returns new_y of shape (n_graphs,)."""
    f32, bf16 = jnp.float32, jnp.bfloat16
    L = n_interactions
    E_pad = data["d"].shape[0]
    n_tiles, _, edge_tile = data["idx_i"].shape
    N_pad, A = data["x0"].shape
    R = params["rbf_off"].shape[-1]
    F = params["w_in2f"].shape[-1]
    n_types = params["edge_emb"].shape[0]
    W_win = int(data["win_size"])
    assert N_pad % 16 == 0 and W_win % 16 == 0 and W_win <= N_pad
    assert E_pad == n_tiles * edge_tile

    # Feature dims padded to lane width (128): lane-dense operands/stores and
    # full-width MXU.  Zero padding is exact (ssp(0)=0, silu(0)=0).
    Fp = -(-F // 128) * 128
    Ap = -(-A // 128) * 128

    def pad(a, shape):
        return jnp.pad(a, [(0, s - d) for d, s in zip(a.shape, shape)])

    x0 = pad(data["x0"], (N_pad, Ap))
    w_in2f = pad(params["w_in2f"], (L, Ap, Fp)).astype(bf16)
    w_f1p = jnp.transpose(pad(params["w_f1"], (L, R, Fp)),
                          (1, 0, 2)).reshape(R, L * Fp).astype(bf16)
    b_f1p = jnp.transpose(pad(params["b_f1"], (L, 1, Fp)),
                          (1, 0, 2)).reshape(1, L * Fp)
    w_f2 = pad(params["w_f2"], (L, Fp, Fp)).astype(bf16)
    b_f2 = pad(params["b_f2"], (L, 1, Fp))
    w_o1 = pad(params["w_o1"], (L, Fp, Ap)).astype(bf16)
    b_o1 = pad(params["b_o1"], (L, 1, Ap))
    w_o2 = pad(params["w_o2"], (L, Ap, Ap)).astype(bf16)
    b_o2 = pad(params["b_o2"], (L, 1, Ap))
    w_h1 = pad(params["w_h1"], (Ap, Ap)).astype(bf16)
    b_h1 = pad(params["b_h1"], (1, Ap))
    w_h2 = pad(params["w_h2"], (Ap, 1)).astype(bf16)

    # 48 MiB VMEM budget is safe on v5e/v6e and within v7x's 64 MiB.
    cparams_filter = pltpu.CompilerParams(
        dimension_semantics=("parallel",),
        vmem_limit_bytes=48 * 1024 * 1024)
    cparams_main = pltpu.CompilerParams(
        dimension_semantics=("arbitrary", "arbitrary"),
        vmem_limit_bytes=48 * 1024 * 1024)

    # ---- pass 1: per-edge filters for all layers, lane-dense (E_pad, L*Fp) ----
    filt = functools.partial(filter_kernel, n_interactions=L, n_filters=Fp,
                             rbf_coeff=rbf_coeff, cutoff=cutoff)
    Wij = pl.pallas_call(
        filt,
        out_shape=jax.ShapeDtypeStruct((E_pad, L * Fp), bf16),
        grid_spec=pltpu.PrefetchScalarGridSpec(
            num_scalar_prefetch=0,
            grid=(n_tiles,),
            in_specs=[
                pl.BlockSpec((edge_tile, 1), lambda t: (t, 0)),        # d
                pl.BlockSpec((edge_tile, 1), lambda t: (t, 0)),        # edge type
                pl.BlockSpec((1, R), lambda t: (0, 0)),                # rbf offsets
                pl.BlockSpec((n_types, R), lambda t: (0, 0)),          # edge emb
                pl.BlockSpec((R, L * Fp), lambda t: (0, 0)),           # w_f1 packed
                pl.BlockSpec((1, L * Fp), lambda t: (0, 0)),           # b_f1 packed
                pl.BlockSpec((L, Fp, Fp), lambda t: (0, 0, 0)),        # w_f2 per layer
                pl.BlockSpec((L, 1, Fp), lambda t: (0, 0, 0)),         # b_f2 per layer
            ],
            out_specs=pl.BlockSpec((edge_tile, L * Fp), lambda t: (t, 0)),
        ),
        compiler_params=cparams_filter,
    )(data["d"], data["etype"], params["rbf_off"], params["edge_emb"],
      w_f1p, b_f1p, w_f2, b_f2)

    # ---- pass 2: interaction layers + head + readout ----
    main = functools.partial(main_kernel, n_interactions=L,
                             n_window=W_win, norm_eps=1e-12)
    out = pl.pallas_call(
        main,
        out_shape=jax.ShapeDtypeStruct((1, n_graphs), f32),
        grid_spec=pltpu.PrefetchScalarGridSpec(
            num_scalar_prefetch=1,                   # per-tile atom-window offsets
            grid=(L, n_tiles),
            in_specs=[
                pl.BlockSpec((1, 1, edge_tile), lambda l, t, w: (t, 0, 0)),  # idx_j
                pl.BlockSpec((1, 1, edge_tile), lambda l, t, w: (t, 0, 0)),  # idx_i
                pl.BlockSpec((edge_tile, Fp), lambda l, t, w: (t, l)),       # W filters
                pl.BlockSpec((N_pad, Ap), lambda l, t, w: (0, 0)),           # x0
                pl.BlockSpec((N_pad, 1), lambda l, t, w: (0, 0)),            # batch idx
                pl.BlockSpec((1, Ap, Fp), lambda l, t, w: (l, 0, 0)),        # w_in2f
                pl.BlockSpec((1, Fp, Ap), lambda l, t, w: (l, 0, 0)),        # w_o1
                pl.BlockSpec((1, 1, Ap), lambda l, t, w: (l, 0, 0)),         # b_o1
                pl.BlockSpec((1, Ap, Ap), lambda l, t, w: (l, 0, 0)),        # w_o2
                pl.BlockSpec((1, 1, Ap), lambda l, t, w: (l, 0, 0)),         # b_o2
                pl.BlockSpec((Ap, Ap), lambda l, t, w: (0, 0)),              # w_h1
                pl.BlockSpec((1, Ap), lambda l, t, w: (0, 0)),               # b_h1
                pl.BlockSpec((Ap, 1), lambda l, t, w: (0, 0)),               # w_h2
            ],
            out_specs=pl.BlockSpec((1, n_graphs), lambda l, t, w: (0, 0)),
            scratch_shapes=[
                pltpu.VMEM((N_pad, Ap), f32),    # x (atom state, persists)
                pltpu.VMEM((N_pad, Fp), bf16),   # xf = in2f(x)
                pltpu.VMEM((N_pad, Fp), f32),    # agg accumulator
            ],
        ),
        compiler_params=cparams_main,
    )(data["win_off"], data["idx_j"], data["idx_i"], Wij,
      x0, data["batch"],
      w_in2f, w_o1, b_o1, w_o2, b_o2, w_h1, b_h1, w_h2)
    return out[0]


# ----------------------------------------------------------------------------
# Pure-JAX reference (f32, index-based) mirroring the PyTorch semantics.
# ----------------------------------------------------------------------------
def reference_forward(x0, d, edge_attr, idx_i, idx_j, batch, n_graphs, p, *,
                      n_interactions, rbf_coeff, cutoff):
    d = d[:, None]
    rbf = jnp.exp(rbf_coeff * (d - p["rbf_off"]) ** 2)
    f_ij = rbf + p["edge_emb"][edge_attr]
    rcut = 0.5 * (jnp.cos(d * (math.pi / cutoff)) + 1.0) * (d < cutoff).astype(jnp.float32)
    x = x0
    for l in range(n_interactions):
        xf = x @ p["w_in2f"][l]
        wf = _ssp(f_ij @ p["w_f1"][l] + p["b_f1"][l])
        wf = (wf @ p["w_f2"][l] + p["b_f2"][l]) * rcut
        x_ij = xf[idx_j] * wf
        agg = jax.ops.segment_sum(x_ij, idx_i, num_segments=x.shape[0])
        v = _ssp(agg @ p["w_o1"][l] + p["b_o1"][l])
        v = v @ p["w_o2"][l] + p["b_o2"][l]
        x = x + v
    h = x / jnp.maximum(jnp.linalg.norm(x, axis=-1, keepdims=True), 1e-12)
    h = jax.nn.silu(h)
    h = h @ p["w_h1"] + p["b_h1"]
    h = jax.nn.silu(h)
    h = h @ p["w_h2"]
    return jax.ops.segment_sum(h, batch, num_segments=n_graphs)[:, 0]


if __name__ == "__main__":
    # ----- small, forward-consistent hyper-parameters -----
    A = 32      # n_atom_basis (padded to 128 inside the wrapper)
    F = 32      # n_filters    (padded to 128 inside the wrapper)
    R = 16      # n_rbf
    L = 3       # n_interactions
    CUTOFF = 10.0
    MAX_Z = 100
    N_EDGE_TYPES = 4
    B = 2                 # number of graphs
    ATOMS_PER_GRAPH = 8
    N = B * ATOMS_PER_GRAPH
    EDGE_TILE = 64        # small toy tile; use 512-2048 at real graph sizes

    key = jax.random.PRNGKey(0)
    ks = iter(jax.random.split(key, 32))

    def w(shape, scale=0.1):
        return jax.random.normal(next(ks), shape, jnp.float32) * scale

    # ----- deterministic parameters (shapes from the module __init__) -----
    ele_emb = w((MAX_Z, A))
    res_emb = w((MAX_Z, A))
    edge_emb = w((N_EDGE_TYPES, R))

    rbf_off = jnp.linspace(0.0, CUTOFF, R, dtype=jnp.float32).reshape(1, R)
    rbf_width = CUTOFF / (R - 1)
    rbf_coeff = float(-0.5 / (rbf_width ** 2))

    params = dict(
        rbf_off=rbf_off, edge_emb=edge_emb,
        w_in2f=w((L, A, F)),
        w_f1=w((L, R, F)), b_f1=w((L, 1, F), 0.01),
        w_f2=w((L, F, F)), b_f2=w((L, 1, F), 0.01),
        w_o1=w((L, F, A)), b_o1=w((L, 1, A), 0.01),
        w_o2=w((L, A, A)), b_o2=w((L, 1, A), 0.01),
        w_h1=w((A, A)), b_h1=w((1, A), 0.01),
        w_h2=w((A, 1)),
    )

    # ----- deterministic synthetic inputs (graph glue in numpy/JAX) -----
    z = np.asarray(jax.random.randint(next(ks), (N,), 2, MAX_Z))       # mask all-True
    z_type = np.asarray(jax.random.randint(next(ks), (N,), 0, 2))
    z_res = np.asarray(jax.random.randint(next(ks), (N,), 0, MAX_Z))
    pos = jax.random.uniform(next(ks), (N, 3), jnp.float32, 0.0, 5.0)
    batch = np.repeat(np.arange(B), ATOMS_PER_GRAPH)
    y = jnp.zeros((B,), jnp.float32)                                   # pass-through target

    # mask = (z > 1) | (z_type == 1)  -> all True by construction
    mask = np.logical_or(z > 1, z_type == 1)
    assert mask.all()

    # pos = pos[mask] + uniform(-1, 1) noise (deterministic key here)
    noise = jax.random.uniform(next(ks), pos.shape, jnp.float32, -1.0, 1.0)
    pos = np.asarray(pos + noise)

    # TODO(synk): KNNBatchEdgeConstructor replaced by fully-connected intra-graph
    # edges with edge type 0 (edges grouped per graph -> narrow atom windows).
    src, dst = [], []
    for g in range(B):
        idxs = np.where(batch == g)[0]
        for a_ in idxs:
            for b_ in idxs:
                if a_ != b_:
                    src.append(a_)
                    dst.append(b_)
    idx_i = np.asarray(src, np.int32)
    idx_j = np.asarray(dst, np.int32)
    E = idx_i.shape[0]
    edge_attr = np.zeros((E,), np.int32)

    r_ij = pos[idx_i] - pos[idx_j]
    d_ij = np.linalg.norm(r_ij, axis=1).astype(np.float32)
    x0 = np.asarray(ele_emb)[z] + np.asarray(res_emb)[z_res]

    # ----- pad atoms (multiple of 16) and edges (multiple of EDGE_TILE).
    # Padded edges get d >= cutoff so their filter is exactly zero (inert) and
    # indices inside their tile's atom window; padded atoms get batch id = B so
    # they never enter the readout (their state drifts from biases -> harmless).
    N_pad = ((N + 15) // 16) * 16
    E_pad = ((E + EDGE_TILE - 1) // EDGE_TILE) * EDGE_TILE
    n_tiles = E_pad // EDGE_TILE

    # per-tile atom-window offsets (16-aligned) and common window size
    win_off = np.zeros((n_tiles,), np.int32)
    spans = []
    for t in range(n_tiles):
        lo, hi = t * EDGE_TILE, min((t + 1) * EDGE_TILE, E)
        if hi > lo:
            mn = int(min(idx_i[lo:hi].min(), idx_j[lo:hi].min()))
            mx = int(max(idx_i[lo:hi].max(), idx_j[lo:hi].max()))
            win_off[t] = (mn // 16) * 16
            spans.append(mx + 1 - win_off[t])
    W_win = int(-(-max(spans) // 16) * 16) if spans else 16
    W_win = max(16, min(W_win, N_pad))
    win_off = np.minimum(win_off, N_pad - W_win).astype(np.int32)

    d_p = np.full((E_pad, 1), CUTOFF + 1.0, np.float32)
    d_p[:E, 0] = d_ij
    etype_p = np.zeros((E_pad, 1), np.int32)
    etype_p[:E, 0] = edge_attr
    ii_flat = np.zeros((E_pad,), np.int32)
    jj_flat = np.zeros((E_pad,), np.int32)
    ii_flat[:E] = idx_i
    jj_flat[:E] = idx_j
    for e in range(E, E_pad):
        ii_flat[e] = win_off[e // EDGE_TILE]
        jj_flat[e] = win_off[e // EDGE_TILE]
    ii_p = ii_flat.reshape(n_tiles, 1, EDGE_TILE)
    jj_p = jj_flat.reshape(n_tiles, 1, EDGE_TILE)
    x0_p = np.zeros((N_pad, A), np.float32)
    x0_p[:N] = x0
    batch_p = np.full((N_pad, 1), B, np.int32)
    batch_p[:N, 0] = batch

    data = dict(
        x0=jnp.asarray(x0_p),
        d=jnp.asarray(d_p),
        etype=jnp.asarray(etype_p),
        idx_i=jnp.asarray(ii_p),
        idx_j=jnp.asarray(jj_p),
        batch=jnp.asarray(batch_p),
        win_off=jnp.asarray(win_off),
        win_size=W_win,
    )

    # ----- run kernels -----
    new_y = schnet_forward(data, params, n_interactions=L, n_graphs=B,
                           rbf_coeff=rbf_coeff, cutoff=CUTOFF)
    new_y = jax.block_until_ready(new_y)

    # module returns [y, new_y.squeeze(-1)]
    outputs = [y, new_y]

    # ----- validate against pure-JAX f32 reference (kernel uses bf16 MXU ops) -----
    ref = jax.block_until_ready(
        reference_forward(jnp.asarray(x0), jnp.asarray(d_ij), edge_attr,
                          idx_i, idx_j, batch, B, params,
                          n_interactions=L, rbf_coeff=rbf_coeff, cutoff=CUTOFF))
    np.testing.assert_allclose(np.asarray(new_y), np.asarray(ref),
                               rtol=2e-2, atol=2e-2)

    print("KERNEL_OK")
</pallas_src>

<mosaic_0001>
module attributes {stable_mosaic.version = 11 : i64} {
  func.func @filter_kernel(%arg0: i32, %arg1: memref<64x1xf32, #tpu.memory_space<vmem>>, %arg2: memref<64x1xi32, #tpu.memory_space<vmem>>, %arg3: memref<1x16xf32, #tpu.memory_space<vmem>>, %arg4: memref<4x16xf32, #tpu.memory_space<vmem>>, %arg5: memref<16x384xbf16, #tpu.memory_space<vmem>>, %arg6: memref<1x384xf32, #tpu.memory_space<vmem>>, %arg7: memref<3x128x128xbf16, #tpu.memory_space<vmem>>, %arg8: memref<3x1x128xf32, #tpu.memory_space<vmem>>, %arg9: memref<64x384xbf16, #tpu.memory_space<vmem>>) attributes {dimension_semantics = [#tpu.dimension_semantics<parallel>], iteration_bounds = array<i64: 2>, scalar_prefetch = 0 : i64, scratch_operands = 0 : i64, tpu.core_type = #tpu.core_type<tc>, window_params = [{transform_indices = @transform_0, window_bounds = array<i64: 64, 1>}, {transform_indices = @transform_1, window_bounds = array<i64: 64, 1>}, {pipeline_mode = #tpu.pipeline_mode<synchronous>, transform_indices = @transform_2, window_bounds = array<i64: 1, 16>}, {pipeline_mode = #tpu.pipeline_mode<synchronous>, transform_indices = @transform_3, window_bounds = array<i64: 4, 16>}, {pipeline_mode = #tpu.pipeline_mode<synchronous>, transform_indices = @transform_4, window_bounds = array<i64: 16, 384>}, {pipeline_mode = #tpu.pipeline_mode<synchronous>, transform_indices = @transform_5, window_bounds = array<i64: 1, 384>}, {pipeline_mode = #tpu.pipeline_mode<synchronous>, transform_indices = @transform_6, window_bounds = array<i64: 3, 128, 128>}, {pipeline_mode = #tpu.pipeline_mode<synchronous>, transform_indices = @transform_7, window_bounds = array<i64: 3, 1, 128>}, {transform_indices = @transform_8, window_bounds = array<i64: 64, 384>}]} {
    %c0 = arith.constant 0 : index
    %c0_0 = arith.constant 0 : index
    %0 = vector.load %arg1[%c0, %c0_0] : memref<64x1xf32, #tpu.memory_space<vmem>>, vector<64x1xf32>
    %c0_1 = arith.constant 0 : index
    %c0_2 = arith.constant 0 : index
    %1 = vector.load %arg3[%c0_1, %c0_2] : memref<1x16xf32, #tpu.memory_space<vmem>>, vector<1x16xf32>
    %2 = vector.broadcast %0 : vector<64x1xf32> to vector<64x16xf32>
    %3 = vector.broadcast %1 : vector<1x16xf32> to vector<64x16xf32>
    %4 = arith.subf %2, %3 : vector<64x16xf32>
    %5 = arith.mulf %4, %4 : vector<64x16xf32>
    %cst = arith.constant -1.125000e+00 : f32
    %6 = vector.broadcast %cst : f32 to vector<64x16xf32>
    %7 = arith.mulf %6, %5 : vector<64x16xf32>
    %8 = math.exp %7 : vector<64x16xf32>
    %c0_3 = arith.constant 0 : index
    %c0_4 = arith.constant 0 : index
    %9 = vector.load %arg2[%c0_3, %c0_4] : memref<64x1xi32, #tpu.memory_space<vmem>>, vector<64x1xi32>
    %10 = tpu.iota {dimensions = array<i32: 1>} : vector<64x4xi32>
    %11 = vector.broadcast %9 : vector<64x1xi32> to vector<64x4xi32>
    %12 = arith.cmpi eq, %11, %10 : vector<64x4xi32>
    %13 = arith.extui %12 : vector<64x4xi1> to vector<64x4xi32>
    %14 = arith.sitofp %13 : vector<64x4xi32> to vector<64x4xf32>
    %c0_5 = arith.constant 0 : index
    %c0_6 = arith.constant 0 : index
    %15 = vector.load %arg4[%c0_5, %c0_6] : memref<4x16xf32, #tpu.memory_space<vmem>>, vector<4x16xf32>
    %cst_7 = arith.constant dense<0.000000e+00> : vector<64x16xf32>
    %16 = tpu.matmul %14, %15, %cst_7 {dimension_numbers = #tpu.dot_dimension_numbers<[1], [0], [0], [1], [0, 0, 1, 1], [], []>} : vector<64x4xf32>, vector<4x16xf32>, vector<64x16xf32> -> vector<64x16xf32>
    %17 = arith.addf %8, %16 : vector<64x16xf32>
    %cst_8 = arith.constant 0.314159274 : f32
    %18 = vector.broadcast %cst_8 : f32 to vector<64x1xf32>
    %19 = arith.mulf %0, %18 : vector<64x1xf32>
    %20 = math.cos %19 : vector<64x1xf32>
    %cst_9 = arith.constant 1.000000e+00 : f32
    %21 = vector.broadcast %cst_9 : f32 to vector<64x1xf32>
    %22 = arith.addf %20, %21 : vector<64x1xf32>
    %cst_10 = arith.constant 5.000000e-01 : f32
    %23 = vector.broadcast %cst_10 : f32 to vector<64x1xf32>
    %24 = arith.mulf %23, %22 : vector<64x1xf32>
    %cst_11 = arith.constant 1.000000e+01 : f32
    %25 = vector.broadcast %cst_11 : f32 to vector<64x1xf32>
    %26 = arith.cmpf olt, %0, %25 : vector<64x1xf32>
    %27 = arith.extui %26 : vector<64x1xi1> to vector<64x1xi32>
    %28 = arith.sitofp %27 : vector<64x1xi32> to vector<64x1xf32>
    %29 = arith.mulf %24, %28 : vector<64x1xf32>
    %30 = arith.truncf %17 : vector<64x16xf32> to vector<64x16xbf16>
    %c0_12 = arith.constant 0 : index
    %c0_13 = arith.constant 0 : index
    %31 = vector.load %arg5[%c0_12, %c0_13] : memref<16x384xbf16, #tpu.memory_space<vmem>>, vector<16x384xbf16>
    %cst_14 = arith.constant dense<0.000000e+00> : vector<64x384xf32>
    %32 = tpu.matmul %30, %31, %cst_14 {dimension_numbers = #tpu.dot_dimension_numbers<[1], [0], [0], [1], [0, 0, 1, 1], [], []>} : vector<64x16xbf16>, vector<16x384xbf16>, vector<64x384xf32> -> vector<64x384xf32>
    %c0_15 = arith.constant 0 : index
    %c0_16 = arith.constant 0 : index
    %33 = vector.load %arg6[%c0_15, %c0_16] : memref<1x384xf32, #tpu.memory_space<vmem>>, vector<1x384xf32>
    %34 = vector.broadcast %33 : vector<1x384xf32> to vector<64x384xf32>
    %35 = arith.addf %32, %34 : vector<64x384xf32>
    %cst_17 = arith.constant 0.000000e+00 : f32
    %36 = vector.broadcast %cst_17 : f32 to vector<64x384xf32>
    %37 = arith.maximumf %35, %36 : vector<64x384xf32>
    %38 = vector.broadcast %cst_17 : f32 to vector<64x384xf32>
    %39 = arith.subf %35, %38 : vector<64x384xf32>
    %40 = arith.cmpf one, %39, %39 : vector<64x384xf32>
    %41 = vector.broadcast %cst_17 : f32 to vector<64x384xf32>
    %42 = arith.addf %35, %41 : vector<64x384xf32>
    %43 = math.absf %39 : vector<64x384xf32>
    %cst_18 = arith.constant 0.000000e+00 : f32
    %44 = vector.broadcast %cst_18 : f32 to vector<64x384xf32>
    %45 = arith.subf %44, %43 : vector<64x384xf32>
    %46 = math.exp %45 : vector<64x384xf32>
    %47 = math.log1p %46 : vector<64x384xf32>
    %48 = arith.addf %37, %47 : vector<64x384xf32>
    %49 = arith.select %40, %42, %48 : vector<64x384xi1>, vector<64x384xf32>
    %cst_19 = arith.constant 0.693147182 : f32
    %50 = vector.broadcast %cst_19 : f32 to vector<64x384xf32>
    %51 = arith.subf %49, %50 : vector<64x384xf32>
    %52 = vector.shape_cast %29 : vector<64x1xf32> to vector<64x1xf32>
    %53 = vector.broadcast %52 : vector<64x1xf32> to vector<64x128xf32>
    %54 = vector.extract_strided_slice %51 {offsets = [0, 0], sizes = [64, 128], strides = [1, 1]} : vector<64x384xf32> to vector<64x128xf32>
    %55 = arith.truncf %54 : vector<64x128xf32> to vector<64x128xbf16>
    %c0_20 = arith.constant 0 : index
    %c0_21 = arith.constant 0 : index
    %c0_22 = arith.constant 0 : index
    %56 = vector.load %arg7[%c0_20, %c0_21, %c0_22] : memref<3x128x128xbf16, #tpu.memory_space<vmem>>, vector<1x128x128xbf16>
    %57 = vector.shape_cast %56 : vector<1x128x128xbf16> to vector<128x128xbf16>
    %cst_23 = arith.constant dense<0.000000e+00> : vector<64x128xf32>
    %58 = tpu.matmul %55, %57, %cst_23 {dimension_numbers = #tpu.dot_dimension_numbers<[1], [0], [0], [1], [0, 0, 1, 1], [], []>} : vector<64x128xbf16>, vector<128x128xbf16>, vector<64x128xf32> -> vector<64x128xf32>
    %c0_24 = arith.constant 0 : index
    %c0_25 = arith.constant 0 : index
    %c0_26 = arith.constant 0 : index
    %59 = vector.load %arg8[%c0_24, %c0_25, %c0_26] : memref<3x1x128xf32, #tpu.memory_space<vmem>>, vector<1x1x128xf32>
    %60 = vector.shape_cast %59 : vector<1x1x128xf32> to vector<1x128xf32>
    %61 = vector.broadcast %60 : vector<1x128xf32> to vector<64x128xf32>
    %62 = arith.addf %58, %61 : vector<64x128xf32>
    %63 = arith.mulf %62, %53 : vector<64x128xf32>
    %64 = arith.truncf %63 : vector<64x128xf32> to vector<64x128xbf16>
    %c0_27 = arith.constant 0 : index
    %c0_28 = arith.constant 0 : index
    %65 = vector.load %arg9[%c0_27, %c0_28] : memref<64x384xbf16, #tpu.memory_space<vmem>>, vector<64x128xbf16>
    tpu.vector_store %arg9[%c0_27, %c0_28], %64 {strides = array<i32>} : memref<64x384xbf16, #tpu.memory_space<vmem>>, vector<64x128xbf16>,
    %66 = vector.extract_strided_slice %51 {offsets = [0, 128], sizes = [64, 128], strides = [1, 1]} : vector<64x384xf32> to vector<64x128xf32>
    %67 = arith.truncf %66 : vector<64x128xf32> to vector<64x128xbf16>
    %c1 = arith.constant 1 : index
    %c0_29 = arith.constant 0 : index
    %c0_30 = arith.constant 0 : index
    %68 = vector.load %arg7[%c1, %c0_29, %c0_30] : memref<3x128x128xbf16, #tpu.memory_space<vmem>>, vector<1x128x128xbf16>
    %69 = vector.shape_cast %68 : vector<1x128x128xbf16> to vector<128x128xbf16>
    %cst_31 = arith.constant dense<0.000000e+00> : vector<64x128xf32>
    %70 = tpu.matmul %67, %69, %cst_31 {dimension_numbers = #tpu.dot_dimension_numbers<[1], [0], [0], [1], [0, 0, 1, 1], [], []>} : vector<64x128xbf16>, vector<128x128xbf16>, vector<64x128xf32> -> vector<64x128xf32>
    %c1_32 = arith.constant 1 : index
    %c0_33 = arith.constant 0 : index
    %c0_34 = arith.constant 0 : index
    %71 = vector.load %arg8[%c1_32, %c0_33, %c0_34] : memref<3x1x128xf32, #tpu.memory_space<vmem>>, vector<1x1x128xf32>
    %72 = vector.shape_cast %71 : vector<1x1x128xf32> to vector<1x128xf32>
    %73 = vector.broadcast %72 : vector<1x128xf32> to vector<64x128xf32>
    %74 = arith.addf %70, %73 : vector<64x128xf32>
    %75 = arith.mulf %74, %53 : vector<64x128xf32>
    %76 = arith.truncf %75 : vector<64x128xf32> to vector<64x128xbf16>
    %c0_35 = arith.constant 0 : index
    %c128 = arith.constant 128 : index
    %77 = vector.load %arg9[%c0_35, %c128] : memref<64x384xbf16, #tpu.memory_space<vmem>>, vector<64x128xbf16>
    tpu.vector_store %arg9[%c0_35, %c128], %76 {strides = array<i32>} : memref<64x384xbf16, #tpu.memory_space<vmem>>, vector<64x128xbf16>,
    %78 = vector.extract_strided_slice %51 {offsets = [0, 256], sizes = [64, 128], strides = [1, 1]} : vector<64x384xf32> to vector<64x128xf32>
    %79 = arith.truncf %78 : vector<64x128xf32> to vector<64x128xbf16>
    %c2 = arith.constant 2 : index
    %c0_36 = arith.constant 0 : index
    %c0_37 = arith.constant 0 : index
    %80 = vector.load %arg7[%c2, %c0_36, %c0_37] : memref<3x128x128xbf16, #tpu.memory_space<vmem>>, vector<1x128x128xbf16>
    %81 = vector.shape_cast %80 : vector<1x128x128xbf16> to vector<128x128xbf16>
    %cst_38 = arith.constant dense<0.000000e+00> : vector<64x128xf32>
    %82 = tpu.matmul %79, %81, %cst_38 {dimension_numbers = #tpu.dot_dimension_numbers<[1], [0], [0], [1], [0, 0, 1, 1], [], []>} : vector<64x128xbf16>, vector<128x128xbf16>, vector<64x128xf32> -> vector<64x128xf32>
    %c2_39 = arith.constant 2 : index
    %c0_40 = arith.constant 0 : index
    %c0_41 = arith.constant 0 : index
    %83 = vector.load %arg8[%c2_39, %c0_40, %c0_41] : memref<3x1x128xf32, #tpu.memory_space<vmem>>, vector<1x1x128xf32>
    %84 = vector.shape_cast %83 : vector<1x1x128xf32> to vector<1x128xf32>
    %85 = vector.broadcast %84 : vector<1x128xf32> to vector<64x128xf32>
    %86 = arith.addf %82, %85 : vector<64x128xf32>
    %87 = arith.mulf %86, %53 : vector<64x128xf32>
    %88 = arith.truncf %87 : vector<64x128xf32> to vector<64x128xbf16>
    %c0_42 = arith.constant 0 : index
    %c256 = arith.constant 256 : index
    %89 = vector.load %arg9[%c0_42, %c256] : memref<64x384xbf16, #tpu.memory_space<vmem>>, vector<64x128xbf16>
    tpu.vector_store %arg9[%c0_42, %c256], %88 {strides = array<i32>} : memref<64x384xbf16, #tpu.memory_space<vmem>>, vector<64x128xbf16>,
    return
  }
  func.func @transform_0(%arg0: i32) -> (i32, i32) {
    %c0_i32 = arith.constant 0 : i32
    %c0_i32_0 = arith.constant 0 : i32
    return %arg0, %c0_i32 : i32, i32
  }
  func.func @transform_1(%arg0: i32) -> (i32, i32) {
    %c0_i32 = arith.constant 0 : i32
    %c0_i32_0 = arith.constant 0 : i32
    return %arg0, %c0_i32 : i32, i32
  }
  func.func @transform_2(%arg0: i32) -> (i32, i32) {
    %c0_i32 = arith.constant 0 : i32
    %c0_i32_0 = arith.constant 0 : i32
    %c0_i32_1 = arith.constant 0 : i32
    return %c0_i32, %c0_i32_0 : i32, i32
  }
  func.func @transform_3(%arg0: i32) -> (i32, i32) {
    %c0_i32 = arith.constant 0 : i32
    %c0_i32_0 = arith.constant 0 : i32
    %c0_i32_1 = arith.constant 0 : i32
    return %c0_i32, %c0_i32_0 : i32, i32
  }
  func.func @transform_4(%arg0: i32) -> (i32, i32) {
    %c0_i32 = arith.constant 0 : i32
    %c0_i32_0 = arith.constant 0 : i32
    %c0_i32_1 = arith.constant 0 : i32
    return %c0_i32, %c0_i32_0 : i32, i32
  }
  func.func @transform_5(%arg0: i32) -> (i32, i32) {
    %c0_i32 = arith.constant 0 : i32
    %c0_i32_0 = arith.constant 0 : i32
    %c0_i32_1 = arith.constant 0 : i32
    return %c0_i32, %c0_i32_0 : i32, i32
  }
  func.func @transform_6(%arg0: i32) -> (i32, i32, i32) {
    %c0_i32 = arith.constant 0 : i32
    %c0_i32_0 = arith.constant 0 : i32
    %c0_i32_1 = arith.constant 0 : i32
    %c0_i32_2 = arith.constant 0 : i32
    return %c0_i32, %c0_i32_0, %c0_i32_1 : i32, i32, i32
  }
  func.func @transform_7(%arg0: i32) -> (i32, i32, i32) {
    %c0_i32 = arith.constant 0 : i32
    %c0_i32_0 = arith.constant 0 : i32
    %c0_i32_1 = arith.constant 0 : i32
    %c0_i32_2 = arith.constant 0 : i32
    return %c0_i32, %c0_i32_0, %c0_i32_1 : i32, i32, i32
  }
  func.func @transform_8(%arg0: i32) -> (i32, i32) {
    %c0_i32 = arith.constant 0 : i32
    %c0_i32_0 = arith.constant 0 : i32
    return %arg0, %c0_i32 : i32, i32
  }
}

</mosaic_0001>

<bundles_post_ra>
// kernel: tpu_custom_call.1
= control target key start
LH: loop header
LB: loop body
LE: loop exit
PB: predicated region body
PF: predicated region fallthrough
CT: control target
= control target key end

     0   :  { %13 = vsyncpa [#allocation3], 0  ;;  %s5377_s0 = inlined_call_operand.vmem [shape: f32[128,1], index: 0, kind: input, shape index: {}]   ;;  %s5378_s1 = inlined_call_operand.vmem [shape: s32[128,1], index: 1, kind: input, shape index: {}]   ;;  %s5379_s2 = inlined_call_operand.vmem [shape: f32[1,16], index: 2, kind: input, shape index: {}]   ;;  %s5380_s3 = inlined_call_operand.vmem [shape: f32[4,16], index: 3, kind: input, shape index: {}]   ;;  %s5381_s4 = inlined_call_operand.vmem [shape: bf16[16,384], index: 4, kind: input, shape index: {}]   ;;  %s5382_s5 = inlined_call_operand.vmem [shape: f32[1,384], index: 5, kind: input, shape index: {}]   ;;  %s5383_s6 = inlined_call_operand.vmem [shape: bf16[3,128,128], index: 6, kind: input, shape index: {}]   ;;  %s5384_s7 = inlined_call_operand.vmem [shape: f32[3,1,128], index: 7, kind: input, shape index: {}]   ;;  %s5385_s8 = inlined_call_operand.hbm [shape: bf16[128,384], index: 8, kind: output, shape index: {}]  }
   0x1   :  { %15 = vsyncpa [#allocation3 + $0x1], 0  ;;  %s3595_s27 = smov 0   ;;  %s3597_s28 = smov 0  }
   0x2   :  { %s3599_s29 = smov 0   ;;  %s3601_s30 = smov 0  }
   0x3 LB: > { %s3616_s9 = sadd.s32 4294967295, %s3537_s30   ;;  %s2851_s10 = sadd.s32 4294967294, %s3537_s30   ;;  %s3537_s30 = sphi %s3601_s30, %s5480_s30   ;;  %s3533_s29 = sphi %s3599_s29, %s5479_s29   ;;  %s3529_s28 = sphi %s3597_s28, %s5478_s28   ;;  %s3525_s27 = sphi %s3595_s27, %s5477_s27  }
   0x4   : > { %s3620_s11 = sadd.s32 1, %s3537_s30   ;;  %s206_s12 = sadd.s32 1, %s3533_s29 }
   0x5   : > { %s203_s13 = ssub.s32 %s3537_s30, %s3620_s11  ;;  %p216_p0 = scmp.ne.s32.totalorder %s3533_s29, %s3529_s28 }
   0x6   : > { %p204_p1 = scmp.eq.s32.totalorder %s203_s13, 0  ;;  %p217_p2 = scmp.eq.s32.totalorder %s3616_s9, 1 }
   0x7   : > { %p222_p3 = scmp.ne.s32.totalorder %s3529_s28, %s3525_s27  ;;  %p223_p4 = scmp.eq.s32.totalorder %s2851_s10, 1 }
   0x8   : > { %s3631_s14 = scalar_select %p204_p1, %s3533_s29, %s206_s12  }
   0x9   : > { %p3633_p5 = por %p217_p2, %p216_p0  ;;  %p3637_p6 = por %p223_p4, %p222_p3 }
   0xa   : > { %p2854_p7 = scmp.ge.s32.totalorder %s3537_s30, 1  ;;  %p277_p8 = scmp.lt.s32.totalorder %s3537_s30, 3 }
   0xc   : > { %p278_p9 = pnand %p2854_p7, %p277_p8 }
   0xd   : > { %s2855_s17 = sshll.u32 (!%p278_p9), %s3616_s9, 3  ;;  %s313_s20 = sand.u32 (!%p278_p9), 1, %s3529_s28  }
   0xe   : > { %281 = sbr.rel (%p278_p9) target bundleno = 975 (0x3cf), region = 52  ;;  %p317_p10 = scmp.lt.s32.totalorder (!%p278_p9), %s2855_s17, 15 }
   0xf   : > { %s3212_s23 = smul.u32 (!%p278_p9), 96, %s313_s20 }
  0x10   : > { %s3245_s13 = smul.u32 (!%p278_p9), 1536, %s3616_s9  ;;  %s5337_s9 = scalar_lea.sflag (!%p278_p9), [#allocation3], %s313_s20 }
  0x11   : > { %s5249_s26 = scalar_lea.vmem (!%p278_p9), [#allocation2], %s3212_s23  ;;  %s3547_s23 = smov (!%p278_p9), [#allocation2]  }
  0x13   : > { %v5386_v0 = vmov 0   ;;  %s5482_s17 = smov (!%p317_p10, %s2855_s17), 15  ;;  %v3540_v52 = vmov 683565275   ;;  %v3541_v54 = vmov 2475754826  }
  0x14   : > { %3296 = vset.pattern.permute.xlu1 %v5386_v0  ;;  %3295 = vset.pattern.permute.xlu0 %v5386_v0  ;;  %s2856_s18 = sshll.u32 %s5482_s17, 3  ;;  %v3542_v56 = vmov 2131351028   ;;  %v3543_v58 = vmov 2102212464   ;;  %s2777_s17 = sshll.u32 %s5249_s26, 4  ;;  %s5326_s17 = int_to_ptr.vmem [resolvable:$true] %s2777_s17 }
  0x15   : > { %1592 = vmatprep.mubr.bf16.mxu1 %v5386_v0  ;;  %s3650_s21 = scalar_lea.vmem %s5378_s1, %s2856_s18  ;;  %s3655_s24 = scalar_lea.vmem %s5377_s0, %s2856_s18  ;;  %v3544_v60 = vmov 920167782  }
  0x16   : > { %v427_v1 = vld [vmem:[%s3650_s21 + $0x10] sm:$0xff]  ;;  %v425_v2 = vld [vmem:[%s3650_s21] sm:$0xff]  ;;  %v428_v3 = vld [vmem:[%s3650_s21 + $0x18] sm:$0xff]  ;;  %s3477_s22 = scalar_lea.vmem %s5326_s17, 1536 }
  0x17   : > { %442 = vperm.xlu1 %3296, %v427_v1   ;;  %436 = vperm.xlu0 %3295, %v425_v2   ;;  %v426_v4 = vld [vmem:[%s3650_s21 + $0x8] sm:$0xff]  ;;  %v330_v7 = vld [vmem:[%s3655_s24] sm:$0xff]  ;;  %v3666_v8 = vld [vmem:[%s3655_s24 + $0x18] sm:$0xff]  ;;  %p3478_p11 = scmp.ne.s32.totalorder %s5326_s17, %s3477_s22 }
  0x18   : > { %v331_v5 = vld [vmem:[%s3655_s24 + $0x8] sm:$0xff]  ;;  %v3669_v9 = vld [vmem:[%s3655_s24 + $0x10] sm:$0xff]  ;;  %v3671_v10 = vmul.f32 0.31415927, %v330_v7  ;;  %v3674_v11 = vmul.f32 0.31415927, %v3666_v8 }
  0x19   : > { %v3662_v6 = vmul.f32 0.31415927, %v331_v5  ;;  %v430_v12 = vld [vmem:[%s3650_s21 + $0x28] sm:$0xff]  ;;  %v3680_v15 = vmul.f32 0.31415927, %v3669_v9  ;;  %v429_v16 = vld [vmem:[%s3650_s21 + $0x20] sm:$0xff]  ;;  %p3479_p12 = pnand %p3478_p11, %p3633_p5 }
  0x1a   : > { %v634_v17 = vand.u32 2147483647, %v3671_v10  ;;  %v637_v18 = vand.u32 2139095040, %v3671_v10  ;;  %v943_v19 = vand.u32 2147483647, %v3674_v11  ;;  %v946_v22 = vand.u32 2139095040, %v3674_v11 }
  0x1b   : > { %445 = vperm.xlu1 %3296, %v428_v3   ;;  %439 = vperm.xlu0 %3295, %v426_v4   ;;  %v737_v13 = vand.u32 2147483647, %v3662_v6  ;;  %v740_v14 = vand.u32 2139095040, %v3662_v6  ;;  %v432_v29 = vld [vmem:[%s3650_s21 + $0x38] sm:$0xff]  ;;  %v431_v30 = vld [vmem:[%s3650_s21 + $0x30] sm:$0xff]  ;;  %v843_v34 = vand.u32 2139095040, %v3680_v15  ;;  %s5332_s21 = scalar_lea.hbm %s5385_s8, %s3245_s13  ;;  %p3480_p13 = pneg %p3479_p12 }
  0x1c   : > { %v638_v23 = vshrl.u32 %v637_v18, 23  ;;  %v641_v24 = vand.u32 8388607, %v634_v17  ;;  %v950_v25 = vand.u32 8388607, %v943_v19  ;;  %v947_v28 = vshrl.u32 %v946_v22, 23 }
  0x1d   : > { %v741_v20 = vshrl.u32 %v740_v14, 23  ;;  %v744_v21 = vand.u32 8388607, %v737_v13  ;;  %v844_v38 = vshrl.u32 %v843_v34, 23  ;;  %v3545_v4 = vmov 1326507024  }
  0x1e   : > { %v2877_v31 = vadd.s32 4294967169, %v638_v23  ;;  %v642_v32 = vor.u32 8388608, %v641_v24  ;;  %v951_v33 = vor.u32 8388608, %v950_v25  ;;  %v2889_v36 = vadd.s32 4294967169, %v947_v28  ;;  %v3727_v22 = vld [vmem:[%s3655_s24 + $0x28] sm:$0xff] }
  0x1f   : > { %451 = vperm.xlu1 %3296, %v430_v12   ;;  %448 = vperm.xlu0 %3295, %v429_v16   ;;  %v2881_v26 = vadd.s32 4294967169, %v741_v20  ;;  %v745_v27 = vor.u32 8388608, %v744_v21  ;;  %v3708_v50 = vadd.s32 4294967169, %v844_v38  ;;  %v3752_v38 = vld [vmem:[%s3655_s24 + $0x38] sm:$0xff] }
  0x20   : > { %v644_v37 = vadd.s32 1, %v2877_v31  ;;  %v953_v40 = vadd.s32 1, %v2889_v36  ;;  %v3698_v42 = vshll.u32 %v642_v32, 8  ;;  %v3700_v43 = vshll.u32 %v951_v33, 8 }
  0x21   : > { %v747_v35 = vadd.s32 1, %v2881_v26  ;;  %v3696_v39 = vshll.u32 %v745_v27, 8  ;;  %v3734_v27 = vld [vmem:[%s3655_s24 + $0x20] sm:$0xff] }
  0x22   : > { %vm645_vm1 = vcmp.gt.s32.totalorder %v644_v37, 0  ;;  %vm954_vm2 = vcmp.gt.s32.totalorder %v953_v40, 0 }
  0x23   : > { %457 = vperm.xlu1 %3296, %v432_v29   ;;  %454 = vperm.xlu0 %3295, %v431_v30   ;;  %vm748_vm0 = vcmp.gt.s32.totalorder %v747_v35, 0  ;;  %v646_v46 = vsel %vm645_vm1, %v644_v37, 0  ;;  %v3706_v49 = vsel %vm954_vm2, %v953_v40, 0 }
  0x24   : > { %v749_v41 = vsel %vm748_vm0, %v747_v35, 0  ;;  %v3702_v47 = vshrl.u32 %v646_v46, 5  ;;  %v3704_v48 = vand.u32 31, %v646_v46 }
  0x25   : > { %v750_v44 = vshrl.u32 %v749_v41, 5  ;;  %v751_v45 = vand.u32 31, %v749_v41 }
  0x26   : > { %v649_v16 = vsub.s32 32, %v3704_v48  ;;  %v651_v21 = vshll.u32 %v3540_v52, %v3704_v48  ;;  %v654_v29 = vshll.u32 %v3541_v54, %v3704_v48  ;;  %vm666_vm7 = vcmp.lt.s32.totalorder %v3702_v47, 1 }
  0x27   : > { %346 = vperm.xlu1 %3296, %v331_v5   ;;  %v752_v51 = vsub.s32 32, %v751_v45  ;;  %v754_v53 = vshll.u32 %v3540_v52, %v751_v45  ;;  %v757_v55 = vshll.u32 %v3541_v54, %v751_v45  ;;  %v760_v57 = vshll.u32 %v3542_v56, %v751_v45  ;;  %341 = vperm.xlu0 %3295, %v330_v7  }
  0x28   : > { %v763_v59 = vshll.u32 %v3543_v58, %v751_v45  ;;  %v766_v61 = vshll.u32 %v3544_v60, %v751_v45  ;;  %vm769_vm3 = vcmp.lt.s32.totalorder %v750_v44, 1  ;;  %vm770_vm4 = vcmp.lt.s32.totalorder %v750_v44, 2 }
  0x29   : > { %v753_v62 = vshrl.u32 %v3540_v52, %v752_v51  ;;  %v755_v63 = vshrl.u32 %v3541_v54, %v752_v51  ;;  %v758_v1 = vshrl.u32 %v3542_v56, %v752_v51  ;;  %v761_v2 = vshrl.u32 %v3543_v58, %v752_v51 }
  0x2a   : > { %v764_v3 = vshrl.u32 %v3544_v60, %v752_v51  ;;  %v767_v5 = vshrl.u32 %v3545_v4, %v752_v51  ;;  %vm771_vm5 = vcmp.lt.s32.totalorder %v750_v44, 3  ;;  %vm772_vm6 = vcmp.lt.s32.totalorder %v750_v44, 4  ;;  %v3764_v51 = vld [vmem:[%s3655_s24 + $0x30] sm:$0xff] }
  0x2b   : > { %v756_v7 = vor.u32 %v755_v63, %v754_v53  ;;  %v759_v12 = vor.u32 %v758_v1, %v757_v55  ;;  %v762_v14 = vor.u32 %v761_v2, %v760_v57  ;;  %356 = vperm.xlu1 %3296, %v3666_v8   ;;  %351 = vperm.xlu0 %3295, %v3669_v9   ;;  %vm667_vm8 = vcmp.lt.s32.totalorder %v3702_v47, 2 }
  0x2c   : > { %v765_v18 = vor.u32 %v764_v3, %v763_v59  ;;  %v768_v20 = vor.u32 %v767_v5, %v766_v61  ;;  %v650_v32 = vshrl.u32 %v3540_v52, %v649_v16  ;;  %v652_v33 = vshrl.u32 %v3541_v54, %v649_v16 }
  0x2d   : > { %v773_v23 = vsel %vm769_vm3, %v753_v62, %v756_v7  ;;  %v774_v24 = vsel %vm772_vm6, %v762_v14, 2102212464  ;;  %v777_v25 = vsel %vm769_vm3, %v756_v7, %v759_v12  ;;  %v781_v26 = vsel %vm769_vm3, %v759_v12, %v762_v14 }
  0x2e   : > { %v775_v8 = vsel %vm771_vm5, %v759_v12, %v774_v24  ;;  %v778_v9 = vsel %vm772_vm6, %v765_v18, 920167782  ;;  %v782_v28 = vsel %vm772_vm6, %v768_v20, 1326507024  ;;  %v655_v37 = vshrl.u32 %v3542_v56, %v649_v16 }
  0x2f   : > { %v779_v30 = vsel %vm771_vm5, %v762_v14, %v778_v9  ;;  %v783_v31 = vsel %vm771_vm5, %v765_v18, %v782_v28  ;;  %366 = vperm.xlu1 %3296, %v3727_v22   ;;  %v776_v34 = vsel %vm770_vm4, %v773_v23, %v775_v8  ;;  %361 = vperm.xlu0 %3295, %v3734_v27   ;;  %vm668_vm10 = vcmp.lt.s32.totalorder %v3702_v47, 3 }
  0x30   : > { %v780_v35 = vsel %vm770_vm4, %v777_v25, %v779_v30  ;;  %v784_v36 = vsel %vm770_vm4, %v781_v26, %v783_v31  ;;  %v653_v53 = vor.u32 %v652_v33, %v651_v21  ;;  %v656_v44 = vor.u32 %v655_v37, %v654_v29 }
  0x31   : > { %v3755_v40 = vmul.u32.u64.low %v3696_v39, %v784_v36  ;;  %v3756_v41 = vmul.u32.u64.high %v3696_v39, %v784_v36, %v3755_v40  ;;  %v3759_v45 = vmul.u32.u64.low %v3696_v39, %v780_v35  ;;  %v3760_v46 = vmul.u32.u64.high %v3696_v39, %v780_v35, %v3759_v45 }
  0x32   : > { %v657_v55 = vshll.u32 %v3542_v56, %v3704_v48  ;;  %v658_v57 = vshrl.u32 %v3543_v58, %v649_v16  ;;  %v660_v59 = vshll.u32 %v3543_v58, %v3704_v48  ;;  %v661_v61 = vshrl.u32 %v3544_v60, %v649_v16 }
  0x33   : > { %v663_v62 = vshll.u32 %v3544_v60, %v3704_v48  ;;  %v664_v63 = vshrl.u32 %v3545_v4, %v649_v16  ;;  %376 = vperm.xlu1 %3296, %v3752_v38   ;;  %v792_v1 = vmul.u32 %v3696_v39, %v776_v34  ;;  %371 = vperm.xlu0 %3295, %v3764_v51   ;;  %v795_v3 = vadd.s32 1, %v3760_v46 }
  0x34   : > { %v659_v2 = vor.u32 %v658_v57, %v657_v55  ;;  %vm794_vm9 = vc.u32 %v3756_v41, %v3759_v45  ;;  %v662_v5 = vor.u32 %v661_v61, %v660_v59  ;;  %vm669_vm11 = vcmp.lt.s32.totalorder %v3702_v47, 4 }
  0x35   : > { %v665_v48 = vor.u32 %v664_v63, %v663_v62  ;;  %v670_v7 = vsel %vm666_vm7, %v650_v32, %v653_v53  ;;  %v674_v39 = vsel %vm666_vm7, %v653_v53, %v656_v44  ;;  %v796_v12 = vsel %vm794_vm9, %v795_v3, %v3760_v46 }
  0x36   : > { %v671_v14 = vsel %vm669_vm11, %v659_v2, 2102212464  ;;  %v675_v16 = vsel %vm669_vm11, %v662_v5, 920167782  ;;  %v678_v18 = vsel %vm666_vm7, %v656_v44, %v659_v2  ;;  %v797_v20 = vadd.s32 %v796_v12, %v792_v1 }
  0x37   : > { %v672_v21 = vsel %vm668_vm10, %v656_v44, %v671_v14  ;;  %v676_v23 = vsel %vm668_vm10, %v659_v2, %v675_v16  ;;  %v679_v24 = vsel %vm669_vm11, %v665_v48, 1326507024  ;;  %v956_v9 = vshrl.u32 %v3706_v49, 5 }
  0x38   : > { %v673_v25 = vsel %vm667_vm8, %v670_v7, %v672_v21  ;;  %v677_v26 = vsel %vm667_vm8, %v674_v39, %v676_v23  ;;  %v680_v8 = vsel %vm668_vm10, %v662_v5, %v679_v24  ;;  %v798_v28 = vadd.s32 536870912, %v797_v20 }
  0x39   : > { %v681_v29 = vsel %vm667_vm8, %v678_v18, %v680_v8  ;;  %v3794_v30 = vmul.u32.u64.low %v3698_v42, %v677_v26  ;;  %v3795_v31 = vmul.u32.u64.high %v3698_v42, %v677_v26, %v3794_v30  ;;  %v957_v34 = vand.u32 31, %v3706_v49 }
  0x3a   : > { %v3799_v32 = vmul.u32.u64.low %v3698_v42, %v681_v29  ;;  %v3800_v33 = vmul.u32.u64.high %v3698_v42, %v681_v29, %v3799_v32  ;;  %v850_v35 = vadd.s32 1, %v3708_v50  ;;  %v3804_v36 = vshrl.u32 %v798_v28, 30 }
  0x3b   : > { %v689_v37 = vmul.u32 %v3698_v42, %v673_v25  ;;  %vm975_vm12 = vcmp.lt.s32.totalorder %v956_v9, 1  ;;  %vm976_vm13 = vcmp.lt.s32.totalorder %v956_v9, 2  ;;  %v958_v47 = vsub.s32 32, %v957_v34 }
  0x3c   : > { %v960_v40 = vshll.u32 %v3540_v52, %v957_v34  ;;  %v963_v46 = vshll.u32 %v3541_v54, %v957_v34  ;;  %vm977_vm14 = vcmp.lt.s32.totalorder %v956_v9, 3  ;;  %v800_v53 = vshll.u32 %v3804_v36, 30 }
  0x3d   : > { %v692_v44 = vadd.s32 1, %v3795_v31  ;;  %v966_v49 = vshll.u32 %v3542_v56, %v957_v34  ;;  %v969_v50 = vshll.u32 %v3543_v58, %v957_v34  ;;  %vm691_vm15 = vc.u32 %v3800_v33, %v3794_v30 }
  0x3e   : > { %v959_v42 = vshrl.u32 %v3540_v52, %v958_v47  ;;  %v961_v55 = vshrl.u32 %v3541_v54, %v958_v47  ;;  %v972_v57 = vshll.u32 %v3544_v60, %v957_v34  ;;  %v3818_v59 = vsub.s32 %v797_v20, %v800_v53 }
  0x3f   : > { %v693_v61 = vsel %vm691_vm15, %v692_v44, %v3795_v31  ;;  %v964_v62 = vshrl.u32 %v3542_v56, %v958_v47  ;;  %v967_v63 = vshrl.u32 %v3543_v58, %v958_v47  ;;  %v970_v3 = vshrl.u32 %v3544_v60, %v958_v47 }
  0x40   : > { %v694_v1 = vadd.s32 %v693_v61, %v689_v37  ;;  %v962_v2 = vor.u32 %v961_v55, %v960_v40  ;;  %v973_v5 = vshrl.u32 %v3545_v4, %v958_v47  ;;  %v803_v48 = vsub.s32 0, %v3818_v59 }
  0x41   : > { %v965_v7 = vor.u32 %v964_v62, %v963_v46  ;;  %v968_v39 = vor.u32 %v967_v63, %v966_v49  ;;  %vm978_vm0 = vcmp.lt.s32.totalorder %v956_v9, 4  ;;  %v971_v14 = vor.u32 %v970_v3, %v969_v50 }
  0x42   : > { %v695_v12 = vadd.s32 536870912, %v694_v1  ;;  %v974_v16 = vor.u32 %v973_v5, %v972_v57  ;;  %v979_v18 = vsel %vm975_vm12, %v959_v42, %v962_v2  ;;  %v2882_v20 = vmin.u32 %v803_v48, %v3818_v59 }
  0x43   : > { %v980_v21 = vsel %vm978_vm0, %v968_v39, 2102212464  ;;  %v983_v23 = vsel %vm975_vm12, %v962_v2, %v965_v7  ;;  %v987_v24 = vsel %vm975_vm12, %v965_v7, %v968_v39  ;;  %v984_v8 = vsel %vm978_vm0, %v971_v14, 920167782 }
  0x44   : > { %v3830_v25 = vshrl.u32 %v695_v12, 30  ;;  %v981_v26 = vsel %vm977_vm14, %v965_v7, %v980_v21  ;;  %v988_v28 = vsel %vm978_vm0, %v974_v16, 1326507024  ;;  %v805_v29 = vclz %v2882_v20 }
  0x45   : > { %v985_v31 = vsel %vm977_vm14, %v968_v39, %v984_v8  ;;  %v989_v32 = vsel %vm977_vm14, %v971_v14, %v988_v28  ;;  %v982_v37 = vsel %vm976_vm13, %v979_v18, %v981_v26  ;;  %vm851_vm1 = vcmp.gt.s32.totalorder %v850_v35, 0 }
  0x46   : > { %v697_v34 = vshll.u32 %v3830_v25, 30  ;;  %v986_v47 = vsel %vm976_vm13, %v983_v23, %v985_v31  ;;  %v990_v40 = vsel %vm976_vm13, %v987_v24, %v989_v32  ;;  %v2883_v46 = vadd.s32 4294967294, %v805_v29 }
  0x47   : > { %v3840_v53 = vmul.u32.u64.low %v3700_v43, %v990_v40  ;;  %v3841_v44 = vmul.u32.u64.high %v3700_v43, %v990_v40, %v3840_v53  ;;  %v3846_v50 = vmul.u32.u64.low %v3700_v43, %v986_v47  ;;  %v3847_v42 = vmul.u32.u64.high %v3700_v43, %v986_v47, %v3846_v50 }
  0x48   : > { %v3843_v49 = vsub.s32 %v694_v1, %v697_v34  ;;  %v852_v55 = vsel %vm851_vm1, %v850_v35, 0  ;;  %vm2884_vm2 = vcmp.lt.s32.totalorder %v2883_v46, 0  ;;  %v840_v62 = vand.u32 2147483647, %v3680_v15 }
  0x49   : > { %v854_v57 = vand.u32 31, %v852_v55  ;;  %v808_v61 = vsel %vm2884_vm2, 0, %v2883_v46  ;;  %v793_v63 = vadd.s32 %v3759_v45, %v3756_v41  ;;  %v998_v1 = vmul.u32 %v3700_v43, %v982_v37 }
  0x4a   : > { %v700_v9 = vsub.s32 0, %v3843_v49  ;;  %v809_v2 = vsub.s32 32, %v808_v61  ;;  %v813_v3 = vsub.s32 4294967266, %v808_v61  ;;  %vm1000_vm3 = vc.u32 %v3841_v44, %v3846_v50 }
  0x4b   : > { %v1001_v35 = vadd.s32 1, %v3847_v42  ;;  %v855_v48 = vsub.s32 32, %v854_v57  ;;  %v847_v14 = vand.u32 8388607, %v840_v62  ;;  %v810_v41 = vshll.u32 %v3818_v59, %v808_v61 }
  0x4c   : > { %v2878_v5 = vmin.u32 %v700_v9, %v3843_v49  ;;  %v814_v7 = vadd.s32 127, %v813_v3  ;;  %v811_v45 = vshrl.u32 %v793_v63, %v809_v2  ;;  %v853_v43 = vshrl.u32 %v852_v55, 5 }
  0x4d   : > { %v1002_v12 = vsel %vm1000_vm3, %v1001_v35, %v3847_v42  ;;  %v857_v20 = vshll.u32 %v3540_v52, %v854_v57  ;;  %v858_v21 = vshrl.u32 %v3541_v54, %v855_v48  ;;  %v860_v23 = vshll.u32 %v3541_v54, %v854_v57 }
  0x4e   : > { %v702_v39 = vclz %v2878_v5  ;;  %v1003_v16 = vadd.s32 %v1002_v12, %v998_v1  ;;  %v815_v24 = vshll.u32 %v814_v7, 23  ;;  %v861_v8 = vshrl.u32 %v3542_v56, %v855_v48 }
  0x4f   : > { %v863_v28 = vshll.u32 %v3542_v56, %v854_v57  ;;  %v864_v29 = vshrl.u32 %v3543_v58, %v855_v48  ;;  %v866_v59 = vshll.u32 %v3543_v58, %v854_v57  ;;  %v867_v31 = vshrl.u32 %v3544_v60, %v855_v48 }
  0x50   : > { %v2879_v18 = vadd.s32 4294967294, %v702_v39  ;;  %v1004_v26 = vadd.s32 536870912, %v1003_v16  ;;  %v848_v34 = vor.u32 8388608, %v847_v14  ;;  %v869_v37 = vshll.u32 %v3544_v60, %v854_v57 }
  0x51   : > { %v3875_v47 = vmul.f32 0.31415927, %v3727_v22  ;;  %v812_v40 = vor.u32 %v811_v45, %v810_v41  ;;  %v690_v46 = vadd.s32 %v3794_v30, %v3800_v33  ;;  %v856_v53 = vshrl.u32 %v3540_v52, %v855_v48 }
  0x52   : > { %vm2880_vm4 = vcmp.lt.s32.totalorder %v2879_v18, 0  ;;  %v3871_v32 = vshrl.u32 %v1004_v26, 30  ;;  %v859_v42 = vor.u32 %v858_v21, %v857_v20  ;;  %v862_v9 = vor.u32 %v861_v8, %v860_v23 }
  0x53   : > { %v3880_v55 = vsel %vm2880_vm4, 0, %v2879_v18  ;;  %v870_v63 = vshrl.u32 %v3545_v4, %v855_v48  ;;  %v816_v2 = vor.u32 4788187, %v815_v24  ;;  %v865_v3 = vor.u32 %v864_v29, %v863_v28 }
  0x54   : > { %v1006_v61 = vshll.u32 %v3871_v32, 30  ;;  %v868_v57 = vor.u32 %v867_v31, %v866_v59  ;;  %vm872_vm5 = vcmp.lt.s32.totalorder %v853_v43, 1  ;;  %vm875_vm6 = vcmp.lt.s32.totalorder %v853_v43, 4 }
  0x55   : > { %v871_v1 = vor.u32 %v870_v63, %v869_v37  ;;  %v888_v5 = vshll.u32 %v848_v34, 8  ;;  %v710_v30 = vsub.s32 4294967266, %v3880_v55  ;;  %vm873_vm7 = vcmp.lt.s32.totalorder %v853_v43, 2 }
  0x56   : > { %v3884_v22 = vsub.s32 %v1003_v16, %v1006_v61  ;;  %vm874_vm8 = vcmp.lt.s32.totalorder %v853_v43, 3  ;;  %v877_v33 = vsel %vm875_vm6, %v865_v3, 2102212464  ;;  %v876_v7 = vsel %vm872_vm5, %v856_v53, %v859_v42 }
  0x57   : > { %v878_v48 = vsel %vm874_vm8, %v862_v9, %v877_v33  ;;  %v880_v39 = vsel %vm872_vm5, %v859_v42, %v862_v9  ;;  %v817_v12 = vand.u32 2147483647, %v816_v2  ;;  %v819_v14 = vcvt.s32.f32 %v812_v40 }
  0x58   : > { %v1009_v35 = vsub.s32 0, %v3884_v22  ;;  %v706_v41 = vsub.s32 32, %v3880_v55  ;;  %v881_v45 = vsel %vm875_vm6, %v868_v57, 920167782  ;;  %v884_v20 = vsel %vm872_vm5, %v862_v9, %v865_v3 }
  0x59   : > { %v882_v18 = vsel %vm874_vm8, %v865_v3, %v881_v45  ;;  %v885_v21 = vsel %vm875_vm6, %v871_v1, 1326507024  ;;  %v711_v23 = vadd.s32 127, %v710_v30  ;;  %v879_v24 = vsel %vm873_vm7, %v876_v7, %v878_v48 }
  0x5a   : > { %v2890_v16 = vmin.u32 %v1009_v35, %v3884_v22  ;;  %v883_v26 = vsel %vm873_vm7, %v880_v39, %v882_v18  ;;  %v886_v8 = vsel %vm874_vm8, %v868_v57, %v885_v21  ;;  %v5390_v40 = vand.u32 2147483647, %v3875_v47 }
  0x5b   : > { %v887_v29 = vsel %vm873_vm7, %v884_v20, %v886_v8  ;;  %v3902_v59 = vmul.u32.u64.low %v888_v5, %v883_v26  ;;  %v3903_v31 = vmul.u32.u64.high %v888_v5, %v883_v26, %v3902_v59  ;;  %v1152_v53 = vand.u32 2139095040, %v3875_v47 }
  0x5c   : > { %v1011_v28 = vclz %v2890_v16  ;;  %v3906_v34 = vmul.u32.u64.low %v888_v5, %v887_v29  ;;  %v3907_v37 = vmul.u32.u64.high %v888_v5, %v887_v29, %v3906_v34  ;;  %v707_v42 = vshll.u32 %v3843_v49, %v3880_v55 }
  0x5d   : > { %v820_v9 = vmul.f32 %v819_v14, %v817_v12  ;;  %v708_v63 = vshrl.u32 %v690_v46, %v706_v41  ;;  %v895_v2 = vmul.u32 %v888_v5, %v879_v24  ;;  %v1153_v43 = vshrl.u32 %v1152_v53, 23 }
  0x5e   : > { %v2891_v61 = vadd.s32 4294967294, %v1011_v28  ;;  %v712_v3 = vshll.u32 %v711_v23, 23  ;;  %v898_v57 = vadd.s32 1, %v3903_v31  ;;  %v3915_v1 = vmul.f32 0.31415927, %v3734_v27 }
  0x5f   : > { %v999_v30 = vadd.s32 %v3846_v50, %v3841_v44  ;;  %vm897_vm10 = vc.u32 %v3907_v37, %v3902_v59  ;;  %v1156_v49 = vand.u32 8388607, %v5390_v40  ;;  %v821_v7 = vxor.u32 2147483648, %v820_v9 }
  0x60   : > { %vm2892_vm9 = vcmp.lt.s32.totalorder %v2891_v61, 0  ;;  %v899_v5 = vsel %vm897_vm10, %v898_v57, %v3903_v31  ;;  %v5389_v35 = vand.u32 2147483647, %v3915_v1  ;;  %v2897_v27 = vadd.s32 4294967169, %v1153_v43 }
  0x61   : > { %v1014_v33 = vsel %vm2892_vm9, 0, %v2891_v61  ;;  %v900_v48 = vadd.s32 %v899_v5, %v895_v2  ;;  %vm739_vm11 = vcmp.lt.s32.totalorder %v3662_v6, 0  ;;  %v3926_v39 = vor.u32 %v708_v63, %v707_v42 }
  0x62   : > { %v1015_v46 = vsub.s32 32, %v1014_v33  ;;  %v1019_v55 = vsub.s32 4294967266, %v1014_v33  ;;  %v3928_v44 = vor.u32 4788187, %v712_v3  ;;  %v1049_v50 = vand.u32 2139095040, %v3915_v1 }
  0x63   : > { %v901_v12 = vadd.s32 536870912, %v900_v48  ;;  %v1157_v14 = vor.u32 8388608, %v1156_v49  ;;  %v1159_v41 = vadd.s32 1, %v2897_v27  ;;  %v1016_v45 = vshll.u32 %v3884_v22, %v1014_v33 }
  0x64   : > { %v1017_v16 = vshrl.u32 %v999_v30, %v1015_v46  ;;  %v1020_v18 = vadd.s32 127, %v1019_v55  ;;  %v3934_v20 = vand.u32 8388607, %v5389_v35  ;;  %v3938_v21 = vsel %vm739_vm11, %v821_v7, %v820_v9 }
  0x65   : > { %v3940_v23 = vshrl.u32 %v901_v12, 30  ;;  %vm1160_vm12 = vcmp.gt.s32.totalorder %v1159_v41, 0  ;;  %v3943_v24 = vmul.f32 0.31415927, %v3752_v38  ;;  %v714_v26 = vand.u32 2147483647, %v3928_v44 }
  0x66   : > { %v716_v22 = vcvt.s32.f32 %v3926_v39  ;;  %v1161_v8 = vsel %vm1160_vm12, %v1159_v41, 0  ;;  %v1050_v28 = vshrl.u32 %v1049_v50, 23  ;;  %v3948_v34 = vshll.u32 %v1157_v14, 8 }
  0x67   : > { %v903_v29 = vshll.u32 %v3940_v23, 30  ;;  %v1163_v31 = vand.u32 31, %v1161_v8  ;;  %v5388_v53 = vand.u32 2147483647, %v3943_v24  ;;  %v3951_v42 = vor.u32 %v1017_v16, %v1016_v45 }
  0x68   : > { %v1021_v61 = vshll.u32 %v1020_v18, 23  ;;  %v1162_v9 = vshrl.u32 %v1161_v8, 5  ;;  %v1054_v38 = vor.u32 8388608, %v3934_v20  ;;  %v2893_v49 = vadd.s32 4294967169, %v1050_v28 }
  0x69   : > { %v3954_v63 = vsub.s32 %v900_v48, %v903_v29  ;;  %v1164_v2 = vsub.s32 32, %v1163_v31  ;;  %v1166_v43 = vshll.u32 %v3540_v52, %v1163_v31  ;;  %v1169_v3 = vshll.u32 %v3541_v54, %v1163_v31 }
  0x6a   : > { %v1172_v57 = vshll.u32 %v3542_v56, %v1163_v31  ;;  %v1175_v30 = vshll.u32 %v3543_v58, %v1163_v31  ;;  %v1178_v33 = vshll.u32 %v3544_v60, %v1163_v31  ;;  %v1358_v7 = vand.u32 2139095040, %v3943_v24 }
  0x6b   : > { %v906_v46 = vsub.s32 0, %v3954_v63  ;;  %v1167_v55 = vshrl.u32 %v3541_v54, %v1164_v2  ;;  %v1170_v5 = vshrl.u32 %v3542_v56, %v1164_v2  ;;  %v1165_v48 = vshrl.u32 %v3540_v52, %v1164_v2 }
  0x6c   : > { %v1173_v27 = vshrl.u32 %v3543_v58, %v1164_v2  ;;  %v1176_v39 = vshrl.u32 %v3544_v60, %v1164_v2  ;;  %v1179_v44 = vshrl.u32 %v3545_v4, %v1164_v2  ;;  %vm1181_vm13 = vcmp.lt.s32.totalorder %v1162_v9, 1 }
  0x6d   : > { %v2886_v50 = vmin.u32 %v906_v46, %v3954_v63  ;;  %v1168_v12 = vor.u32 %v1167_v55, %v1166_v43  ;;  %v1171_v14 = vor.u32 %v1170_v5, %v1169_v3  ;;  %v1056_v18 = vadd.s32 1, %v2893_v49 }
  0x6e   : > { %v1174_v41 = vor.u32 %v1173_v27, %v1172_v57  ;;  %v1177_v45 = vor.u32 %v1176_v39, %v1175_v30  ;;  %v1180_v16 = vor.u32 %v1179_v44, %v1178_v33  ;;  %vm1182_vm14 = vcmp.lt.s32.totalorder %v1162_v9, 2 }
  0x6f   : > { %v908_v20 = vclz %v2886_v50  ;;  %vm1183_vm15 = vcmp.lt.s32.totalorder %v1162_v9, 3  ;;  %vm1184_vm0 = vcmp.lt.s32.totalorder %v1162_v9, 4  ;;  %v3970_v8 = vor.u32 4788187, %v1021_v61 }
  0x70   : > { %v1186_v28 = vsel %vm1184_vm0, %v1174_v41, 2102212464  ;;  %v1189_v29 = vsel %vm1181_vm13, %v1168_v12, %v1171_v14  ;;  %v1190_v31 = vsel %vm1184_vm0, %v1177_v45, 920167782  ;;  %v1185_v46 = vsel %vm1181_vm13, %v1165_v48, %v1168_v12 }
  0x71   : > { %v2887_v2 = vadd.s32 4294967294, %v908_v20  ;;  %v1191_v43 = vsel %vm1183_vm15, %v1174_v41, %v1190_v31  ;;  %v1193_v3 = vsel %vm1181_vm13, %v1171_v14, %v1174_v41  ;;  %v1187_v57 = vsel %vm1183_vm15, %v1171_v14, %v1186_v28 }
  0x72   : > { %v1192_v30 = vsel %vm1182_vm14, %v1189_v29, %v1191_v43  ;;  %v1194_v33 = vsel %vm1184_vm0, %v1180_v16, 1326507024  ;;  %vm1057_vm1 = vcmp.gt.s32.totalorder %v1056_v18, 0  ;;  %v3981_v5 = vmul.f32 %v716_v22, %v714_v26 }
  0x73   : > { %vm2888_vm2 = vcmp.lt.s32.totalorder %v2887_v2, 0  ;;  %v1195_v49 = vsel %vm1183_vm15, %v1177_v45, %v1194_v33  ;;  %v3977_v61 = vmul.u32.u64.low %v3948_v34, %v1192_v30  ;;  %v3978_v55 = vmul.u32.u64.high %v3948_v34, %v1192_v30, %v3977_v61 }
  0x74   : > { %v896_v48 = vadd.s32 %v3902_v59, %v3907_v37  ;;  %v1196_v27 = vsel %vm1182_vm14, %v1193_v3, %v1195_v49  ;;  %v1058_v39 = vsel %vm1057_vm1, %v1056_v18, 0  ;;  %v1025_v44 = vcvt.s32.f32 %v3951_v42 }
  0x75   : > { %v1188_v50 = vsel %vm1182_vm14, %v1185_v46, %v1187_v57  ;;  %v1359_v12 = vshrl.u32 %v1358_v7, 23  ;;  %v3990_v14 = vand.u32 8388607, %v5388_v53  ;;  %v911_v41 = vsel %vm2888_vm2, 0, %v2887_v2 }
  0x76   : > { %v3993_v45 = vmul.u32.u64.low %v3948_v34, %v1196_v27  ;;  %v3994_v26 = vmul.u32.u64.high %v3948_v34, %v1196_v27, %v3993_v45  ;;  %v1060_v22 = vand.u32 31, %v1058_v39  ;;  %v1023_v59 = vand.u32 2147483647, %v3970_v8 }
  0x77   : > { %v912_v37 = vsub.s32 32, %v911_v41  ;;  %v1207_v16 = vadd.s32 1, %v3978_v55  ;;  %v3998_v18 = vshll.u32 %v1054_v38, 8  ;;  %v913_v42 = vshll.u32 %v3954_v63, %v911_v41 }
  0x78   : > { %v1204_v9 = vmul.u32 %v3948_v34, %v1188_v50  ;;  %v1061_v7 = vsub.s32 32, %v1060_v22  ;;  %v1063_v20 = vshll.u32 %v3540_v52, %v1060_v22  ;;  %v916_v28 = vsub.s32 4294967266, %v911_v41 }
  0x79   : > { %v1059_v29 = vshrl.u32 %v1058_v39, 5  ;;  %v1066_v31 = vshll.u32 %v3541_v54, %v1060_v22  ;;  %v2905_v2 = vadd.s32 4294967169, %v1359_v12  ;;  %vm1206_vm3 = vc.u32 %v3994_v26, %v3977_v61 }
  0x7a   : > { %v1064_v8 = vshrl.u32 %v3541_v54, %v1061_v7  ;;  %v1069_v38 = vshll.u32 %v3542_v56, %v1060_v22  ;;  %v1072_v46 = vshll.u32 %v3543_v58, %v1060_v22  ;;  %v914_v63 = vshrl.u32 %v896_v48, %v912_v37 }
  0x7b   : > { %v1208_v34 = vsel %vm1206_vm3, %v1207_v16, %v3978_v55  ;;  %v1067_v43 = vshrl.u32 %v3542_v56, %v1061_v7  ;;  %v1075_v3 = vshll.u32 %v3544_v60, %v1060_v22  ;;  %v1070_v33 = vshrl.u32 %v3543_v58, %v1061_v7 }
  0x7c   : > { %v1209_v57 = vadd.s32 %v1208_v34, %v1204_v9  ;;  %v1065_v30 = vor.u32 %v1064_v8, %v1063_v20  ;;  %v1073_v49 = vshrl.u32 %v3544_v60, %v1061_v7  ;;  %v1062_v27 = vshrl.u32 %v3540_v52, %v1061_v7 }
  0x7d   : > { %v1068_v39 = vor.u32 %v1067_v43, %v1066_v31  ;;  %v1076_v50 = vshrl.u32 %v3545_v4, %v1061_v7  ;;  %vm1078_vm4 = vcmp.lt.s32.totalorder %v1059_v29, 1  ;;  %v1071_v48 = vor.u32 %v1070_v33, %v1069_v38 }
  0x7e   : > { %v1210_v12 = vadd.s32 536870912, %v1209_v57  ;;  %v1074_v41 = vor.u32 %v1073_v49, %v1072_v46  ;;  %vm1080_vm5 = vcmp.lt.s32.totalorder %v1059_v29, 3  ;;  %v917_v55 = vadd.s32 127, %v916_v28 }
  0x7f   : > { %v1077_v45 = vor.u32 %v1076_v50, %v1075_v3  ;;  %vm1079_vm6 = vcmp.lt.s32.totalorder %v1059_v29, 2  ;;  %vm1081_vm7 = vcmp.lt.s32.totalorder %v1059_v29, 4  ;;  %v1086_v16 = vsel %vm1078_vm4, %v1065_v30, %v1068_v39 }
  0x80   : > { %v4016_v22 = vshrl.u32 %v1210_v12, 30  ;;  %v1083_v37 = vsel %vm1081_vm7, %v1071_v48, 2102212464  ;;  %v1087_v9 = vsel %vm1081_vm7, %v1074_v41, 920167782  ;;  %v1082_v20 = vsel %vm1078_vm4, %v1062_v27, %v1065_v30 }
  0x81   : > { %v1084_v31 = vsel %vm1080_vm5, %v1068_v39, %v1083_v37  ;;  %v1088_v7 = vsel %vm1080_vm5, %v1071_v48, %v1087_v9  ;;  %v1090_v8 = vsel %vm1078_vm4, %v1068_v39, %v1071_v48  ;;  %v4023_v38 = vmul.f32 %v1025_v44, %v1023_v59 }
  0x82   : > { %v1212_v28 = vshll.u32 %v4016_v22, 30  ;;  %v1089_v46 = vsel %vm1079_vm6, %v1086_v16, %v1088_v7  ;;  %v1091_v34 = vsel %vm1081_vm7, %v1077_v45, 1326507024  ;;  %v918_v43 = vshll.u32 %v917_v55, 23 }
  0x83   : > { %v1092_v3 = vsel %vm1080_vm5, %v1074_v41, %v1091_v34  ;;  %v4029_v33 = vmul.u32.u64.low %v3998_v18, %v1089_v46  ;;  %v4030_v49 = vmul.u32.u64.high %v3998_v18, %v1089_v46, %v4029_v33  ;;  %v1085_v27 = vsel %vm1079_vm6, %v1082_v20, %v1084_v31 }
  0x84   : > { %v4033_v30 = vsub.s32 %v1209_v57, %v1212_v28  ;;  %v1093_v44 = vsel %vm1079_vm6, %v1090_v8, %v1092_v3  ;;  %v1365_v59 = vadd.s32 1, %v2905_v2  ;;  %v4037_v39 = vor.u32 %v914_v63, %v913_v42 }
  0x85   : > { %v4040_v50 = vmul.u32.u64.low %v3998_v18, %v1093_v44  ;;  %v4041_v12 = vmul.u32.u64.high %v3998_v18, %v1093_v44, %v4040_v50  ;;  %v1363_v48 = vor.u32 8388608, %v3990_v14  ;;  %v718_v41 = vxor.u32 2147483648, %v3981_v5 }
  0x86   : > { %v1027_v55 = vxor.u32 2147483648, %v4023_v38  ;;  %v1215_v57 = vsub.s32 0, %v4033_v30  ;;  %vm1366_vm8 = vcmp.gt.s32.totalorder %v1365_v59, 0  ;;  %v1101_v45 = vmul.u32 %v3998_v18, %v1085_v27 }
  0x87   : > { %v1104_v29 = vadd.s32 1, %v4030_v49  ;;  %v1367_v2 = vsel %vm1366_vm8, %v1365_v59, 0  ;;  %v4050_v42 = vmul.f32 0.31415927, %v3764_v51  ;;  %v4052_v63 = vor.u32 4788187, %v918_v43 }
  0x88   : > { %v1205_v14 = vadd.s32 %v3977_v61, %v3994_v26  ;;  %v2898_v37 = vmin.u32 %v1215_v57, %v4033_v30  ;;  %v1369_v16 = vand.u32 31, %v1367_v2  ;;  %v922_v9 = vcvt.s32.f32 %v4037_v39 }
  0x89   : > { %vm1103_vm9 = vc.u32 %v4041_v12, %v4029_v33  ;;  %v4060_v18 = vshrl.u32 %v1367_v2, 5  ;;  %v4062_v20 = vshll.u32 %v1363_v48, 8  ;;  %v1255_v46 = vand.u32 2139095040, %v4050_v42 }
  0x8a   : > { %v1217_v31 = vclz %v2898_v37  ;;  %v1105_v51 = vsel %vm1103_vm9, %v1104_v29, %v4030_v49  ;;  %v1370_v7 = vsub.s32 32, %v1369_v16  ;;  %v1372_v8 = vshll.u32 %v3540_v52, %v1369_v16 }
  0x8b   : > { %v1106_v28 = vadd.s32 %v1105_v51, %v1101_v45  ;;  %v1375_v61 = vshll.u32 %v3541_v54, %v1369_v16  ;;  %v1381_v26 = vshll.u32 %v3543_v58, %v1369_v16  ;;  %v1378_v27 = vshll.u32 %v3542_v56, %v1369_v16 }
  0x8c   : > { %v2899_v34 = vadd.s32 4294967294, %v1217_v31  ;;  %v1373_v43 = vshrl.u32 %v3541_v54, %v1370_v7  ;;  %v1376_v3 = vshrl.u32 %v3542_v56, %v1370_v7  ;;  %v1379_v49 = vshrl.u32 %v3543_v58, %v1370_v7 }
  0x8d   : > { %v1107_v44 = vadd.s32 536870912, %v1106_v28  ;;  %v1382_v59 = vshrl.u32 %v3544_v60, %v1370_v7  ;;  %v1384_v50 = vshll.u32 %v3544_v60, %v1369_v16  ;;  %v1371_v48 = vshrl.u32 %v3540_v52, %v1370_v7 }
  0x8e   : > { %vm2900_vm10 = vcmp.lt.s32.totalorder %v2899_v34, 0  ;;  %v1374_v57 = vor.u32 %v1373_v43, %v1372_v8  ;;  %v1385_v45 = vshrl.u32 %v3545_v4, %v1370_v7  ;;  %vm636_vm12 = vcmp.lt.s32.totalorder %v3671_v10, 0 }
  0x8f   : > { %v1220_v29 = vsel %vm2900_vm10, 0, %v2899_v34  ;;  %v4078_v2 = vshrl.u32 %v1107_v44, 30  ;;  %v1377_v37 = vor.u32 %v1376_v3, %v1375_v61  ;;  %v1383_v31 = vor.u32 %v1382_v59, %v1381_v26 }
  0x90   : > { %v1221_v51 = vsub.s32 32, %v1220_v29  ;;  %v1222_v0 = vshll.u32 %v4033_v30, %v1220_v29  ;;  %v1225_v53 = vsub.s32 4294967266, %v1220_v29  ;;  %v1380_v35 = vor.u32 %v1379_v49, %v1378_v27 }
  0x91   : > { %vm945_vm13 = vcmp.lt.s32.totalorder %v3674_v11, 0  ;;  %v1109_v16 = vshll.u32 %v4078_v2, 30  ;;  %v1386_v40 = vor.u32 %v1385_v45, %v1384_v50  ;;  %vm1387_vm14 = vcmp.lt.s32.totalorder %v4060_v18, 1 }
  0x92   : > { %vm1389_vm15 = vcmp.lt.s32.totalorder %v4060_v18, 3  ;;  %v1226_v7 = vadd.s32 127, %v1225_v53  ;;  %vm1388_vm0 = vcmp.lt.s32.totalorder %v4060_v18, 2  ;;  %vm1390_vm1 = vcmp.lt.s32.totalorder %v4060_v18, 4 }
  0x93   : > { %v1391_v8 = vsel %vm1387_vm14, %v1371_v48, %v1374_v57  ;;  %v4089_v30 = vsub.s32 %v1106_v28, %v1109_v16  ;;  %v1392_v61 = vsel %vm1390_vm1, %v1380_v35, 2102212464  ;;  %v1395_v26 = vsel %vm1387_vm14, %v1374_v57, %v1377_v37 }
  0x94   : > { %v1396_v34 = vsel %vm1390_vm1, %v1383_v31, 920167782  ;;  %v1223_v43 = vshrl.u32 %v1205_v14, %v1221_v51  ;;  %v1227_v3 = vshll.u32 %v1226_v7, 23  ;;  %v1393_v27 = vsel %vm1389_vm15, %v1377_v37, %v1392_v61 }
  0x95   : > { %v1397_v53 = vsel %vm1389_vm15, %v1380_v35, %v1396_v34  ;;  %v920_v44 = vand.u32 2147483647, %v4052_v63  ;;  %v1112_v49 = vsub.s32 0, %v4089_v30  ;;  %v1399_v59 = vsel %vm1387_vm14, %v1377_v37, %v1380_v35 }
  0x96   : > { %v1398_v28 = vsel %vm1388_vm0, %v1395_v26, %v1397_v53  ;;  %v1394_v14 = vsel %vm1388_vm0, %v1391_v8, %v1393_v27  ;;  %v1400_v50 = vsel %vm1390_vm1, %v1386_v40, 1326507024  ;;  %v1252_v48 = vand.u32 2147483647, %v4050_v42 }
  0x97   : > { %vm4108_vm2 = vcmp.le.f32.partialorder %v737_v13, 0.7853982  ;;  %v2894_v63 = vmin.u32 %v1112_v49, %v4089_v30  ;;  %v1401_v45 = vsel %vm1389_vm15, %v1383_v31, %v1400_v50  ;;  %v1224_v37 = vor.u32 %v1223_v43, %v1222_v0 }
  0x98   : > { %v4116_v29 = vmul.u32.u64.low %v4062_v20, %v1398_v28  ;;  %v4117_v35 = vmul.u32.u64.high %v4062_v20, %v1398_v28, %v4116_v29  ;;  %v1228_v51 = vor.u32 4788187, %v1227_v3  ;;  %v1402_v40 = vsel %vm1388_vm0, %v1399_v59, %v1401_v45 }
  0x99   : > { %v1256_v16 = vshrl.u32 %v1255_v46, 23  ;;  %v1114_v7 = vclz %v2894_v63  ;;  %v4122_v13 = vmul.u32.u64.low %v4062_v20, %v1402_v40  ;;  %v4123_v8 = vmul.u32.u64.high %v4062_v20, %v1402_v40, %v4122_v13 }
  0x9a   : > { %v823_v61 = vsub.s32 4, %v3804_v36  ;;  %v4131_v31 = vsel %vm636_vm12, %v718_v41, %v3981_v5  ;;  %v1410_v0 = vmul.u32 %v4062_v20, %v1394_v14  ;;  %v1413_v46 = vadd.s32 1, %v4117_v35 }
  0x9b   : > { %v2901_v26 = vadd.s32 4294967169, %v1256_v16  ;;  %v2895_v18 = vadd.s32 4294967294, %v1114_v7  ;;  %v1259_v34 = vand.u32 8388607, %v1252_v48  ;;  %v825_v43 = vsel %vm4108_vm2, %v3662_v6, %v3938_v21 }
  0x9c   : > { %v4146_v5 = vsel %vm945_vm13, %v1027_v55, %v4023_v38  ;;  %v4150_v41 = vmul.f32 %v922_v9, %v920_v44  ;;  %v824_v3 = vsel %vm739_vm11, %v823_v61, %v3804_v36  ;;  %v1229_v27 = vand.u32 2147483647, %v1228_v51 }
  0x9d   : > { %v1262_v20 = vadd.s32 1, %v2901_v26  ;;  %v1231_v53 = vcvt.s32.f32 %v1224_v37  ;;  %vm2896_vm3 = vcmp.lt.s32.totalorder %v2895_v18, 0  ;;  %vm1412_vm4 = vc.u32 %v4123_v8, %v4116_v29 }
  0x9e   : > { %v1117_v21 = vsel %vm2896_vm3, 0, %v2895_v18  ;;  %v1414_v49 = vsel %vm1412_vm4, %v1413_v46, %v4117_v35  ;;  %3325 = vsinq.f32 %v825_v43  ;;  %v1260_v39 = vor.u32 8388608, %v1259_v34 }
  0x9f   : > { %vm1263_vm5 = vcmp.gt.s32.totalorder %v1262_v20, 0  ;;  %v1122_v38 = vsub.s32 4294967266, %v1117_v21  ;;  %v1415_v55 = vadd.s32 %v1414_v49, %v1410_v0  ;;  %v826_v9 = vsel %vm4108_vm2, 0, %v824_v3 }
  0xa0   : > { %v924_v44 = vxor.u32 2147483648, %v4150_v41  ;;  %v1264_v28 = vsel %vm1263_vm5, %v1262_v20, 0  ;;  %3327 = vcosq.f32 %v825_v43  ;;  %v1102_v36 = vadd.s32 %v4029_v33, %v4041_v12 }
  0xa1   : > { %v1118_v59 = vsub.s32 32, %v1117_v21  ;;  %v1123_v14 = vadd.s32 127, %v1122_v38  ;;  %v1416_v50 = vadd.s32 536870912, %v1415_v55  ;;  %v4162_v63 = vmul.f32 %v1231_v53, %v1229_v27 }
  0xa2   : > { %v1265_v45 = vshrl.u32 %v1264_v28, 5  ;;  %v1266_v35 = vand.u32 31, %v1264_v28  ;;  %v4164_v37 = vand.u32 3, %v826_v9  ;;  %v1119_v51 = vshll.u32 %v4089_v30, %v1117_v21  ;;  %v3469_v9 = vld [vmem:[%s3655_s24 + $0x8] sm:$0xff] }
  0xa3   : > { %v4168_v57 = vadd.s32 %v4116_v29, %v4123_v8  ;;  %v4170_v40 = vshrl.u32 %v1416_v50, 30  ;;  %v4172_v16 = vshll.u32 %v1260_v39, 8  ;;  %v1120_v61 = vshrl.u32 %v1102_v36, %v1118_v59 }
  0xa4   : > { %v1267_v7 = vsub.s32 32, %v1266_v35  ;;  %v1269_v33 = vshll.u32 %v3540_v52, %v1266_v35  ;;  %v1272_v12 = vshll.u32 %v3541_v54, %v1266_v35  ;;  %v1275_v13 = vshll.u32 %v3542_v56, %v1266_v35 }
  0xa5   : > { %v1124_v0 = vshll.u32 %v1123_v14, 23  ;;  %v1418_v26 = vshll.u32 %v4170_v40, 30  ;;  %v1278_v30 = vshll.u32 %v3543_v58, %v1266_v35  ;;  %vm1284_vm11 = vcmp.lt.s32.totalorder %v1265_v45, 1 }
  0xa6   : > { %v1270_v29 = vshrl.u32 %v3541_v54, %v1267_v7  ;;  %v1273_v8 = vshrl.u32 %v3542_v56, %v1267_v7  ;;  %v1276_v18 = vshrl.u32 %v3543_v58, %v1267_v7  ;;  %vm832_vm6 = vcmp.eq.s32.totalorder %v4164_v37, 0 }
  0xa7   : > { %v4183_v46 = vsub.s32 %v1415_v55, %v1418_v26  ;;  %v1268_v34 = vshrl.u32 %v3540_v52, %v1267_v7  ;;  %v1279_v43 = vshrl.u32 %v3544_v60, %v1267_v7  ;;  %v1281_v20 = vshll.u32 %v3544_v60, %v1266_v35 }
  0xa8   : > { %v1271_v3 = vor.u32 %v1270_v29, %v1269_v33  ;;  %v1274_v27 = vor.u32 %v1273_v8, %v1272_v12  ;;  %v1277_v53 = vor.u32 %v1276_v18, %v1275_v13  ;;  %v1282_v54 = vshrl.u32 %v3545_v4, %v1267_v7 }
  0xa9   : > { %v1121_v56 = vor.u32 %v1120_v61, %v1119_v51  ;;  %v1125_v21 = vor.u32 4788187, %v1124_v0  ;;  %v1421_v58 = vsub.s32 0, %v4183_v46  ;;  %v1280_v49 = vor.u32 %v1279_v43, %v1278_v30 }
  0xaa   : > { %vm831_vm7 = vcmp.lt.s32.totalorder %v4164_v37, 2  ;;  %v1283_v38 = vor.u32 %v1282_v54, %v1281_v20  ;;  %vm1285_vm8 = vcmp.lt.s32.totalorder %v1265_v45, 2  ;;  %vm1286_vm9 = vcmp.lt.s32.totalorder %v1265_v45, 3 }
  0xab   : > { %vm1287_vm10 = vcmp.lt.s32.totalorder %v1265_v45, 4  ;;  %vm829_vm14 = vweird.f32 %v3662_v6  ;;  %v3326_v52 = vpop.eup %3325  ;;  %v2906_v60 = vmin.u32 %v1421_v58, %v4183_v46  ;;  %v1288_v55 = vsel %vm1284_vm11, %v1268_v34, %v1271_v3 }
  0xac   : > { %v1289_v4 = vsel %vm1287_vm10, %v1277_v53, 2102212464  ;;  %v1292_v39 = vsel %vm1284_vm11, %v1271_v3, %v1274_v27  ;;  %vm1475_vm15 = vcmp.lt.f32.partialorder %v3469_v9, 10.0  ;;  %v1293_v36 = vsel %vm1287_vm10, %v1280_v49, 920167782 }
  0xad   : > { %v1290_v28 = vsel %vm1286_vm9, %v1274_v27, %v1289_v4  ;;  %v1296_v59 = vsel %vm1284_vm11, %v1274_v27, %v1277_v53  ;;  %v1297_v14 = vsel %vm1287_vm10, %v1283_v38, 1326507024  ;;  %v3328_v50 = vpop.eup %3327  ;;  %v1128_v35 = vcvt.s32.f32 %v1121_v56  ;;  %v3470_v56 = vld [vmem:[%s3655_s24] sm:$0xff] }
  0xae   : > { %v1423_v51 = vclz %v2906_v60  ;;  %v1294_v7 = vsel %vm1286_vm9, %v1277_v53, %v1293_v36  ;;  %vm835_vm0 = vcmp.eq.s32.totalorder %v4164_v37, 2  ;;  %v1291_v33 = vsel %vm1285_vm8, %v1288_v55, %v1290_v28 }
  0xaf   : > { %v1295_v12 = vsel %vm1285_vm8, %v1292_v39, %v1294_v7  ;;  %v1298_v13 = vsel %vm1286_vm9, %v1280_v49, %v1297_v14  ;;  %v833_v61 = vxor.u32 2147483648, %v3326_v52  ;;  %vm842_vm1 = vcmp.lt.s32.totalorder %v3680_v15, 0 }
  0xb0   : > { %v2907_v0 = vadd.s32 4294967294, %v1423_v51  ;;  %v1299_v26 = vsel %vm1285_vm8, %v1296_v59, %v1298_v13  ;;  %v4206_v30 = vmul.u32.u64.low %v4172_v16, %v1295_v12  ;;  %v4207_v29 = vmul.u32.u64.high %v4172_v16, %v1295_v12, %v4206_v30  ;;  %v3471_v59 = vld [vmem:[%s3655_s24 + $0x18] sm:$0xff] }
  0xb1   : > { %vm1151_vm2 = vcmp.lt.s32.totalorder %v3875_v47, 0  ;;  %v1126_v8 = vand.u32 2147483647, %v1125_v21  ;;  %v4212_v18 = vmul.u32.u64.low %v4172_v16, %v1299_v26  ;;  %v4213_v34 = vmul.u32.u64.high %v4172_v16, %v1299_v26, %v4212_v18 }
  0xb2   : > { %v836_v43 = vxor.u32 2147483648, %v3328_v50  ;;  %vm2908_vm3 = vcmp.lt.s32.totalorder %v2907_v0, 0  ;;  %v1307_v20 = vmul.u32 %v4172_v16, %v1291_v33  ;;  %v834_v45 = vsel %vm832_vm6, %v3328_v50, %v833_v61 }
  0xb3   : > { %vm4220_vm4 = vcmp.le.f32.partialorder %v634_v17, 0.7853982  ;;  %v1426_v27 = vsel %vm2908_vm3, 0, %v2907_v0  ;;  %v720_v54 = vsub.s32 4, %v3830_v25  ;;  %vm1474_vm5 = vcmp.lt.f32.partialorder %v3470_v56, 10.0 }
  0xb4   : > { %v837_v53 = vsel %vm835_vm0, %v836_v43, %v3326_v52  ;;  %v722_v16 = vsel %vm4220_vm4, %v3671_v10, %v4131_v31  ;;  %v1427_v21 = vsub.s32 32, %v1426_v27  ;;  %v1428_v17 = vshll.u32 %v4183_v46, %v1426_v27 }
  0xb5   : > { %v1431_v58 = vsub.s32 4294967266, %v1426_v27  ;;  %v1310_v49 = vadd.s32 1, %v4207_v29  ;;  %v1233_v38 = vxor.u32 2147483648, %v4162_v63  ;;  %v1129_v60 = vmul.f32 %v1128_v35, %v1126_v8 }
  0xb6   : > { %vm1309_vm11 = vc.u32 %v4213_v34, %v4206_v30  ;;  %v838_v52 = vsel %vm831_vm7, %v834_v45, %v837_v53  ;;  %v1429_v31 = vshrl.u32 %v4168_v57, %v1427_v21  ;;  %v721_v36 = vsel %vm636_vm12, %v720_v54, %v3830_v25 }
  0xb7   : > { %v1432_v55 = vadd.s32 127, %v1431_v58  ;;  %v1311_v4 = vsel %vm1309_vm11, %v1310_v49, %v4207_v29  ;;  %v839_v46 = vsel %vm829_vm14, nan, %v838_v52  ;;  %3329 = vcosq.f32 %v722_v16 }
  0xb8   : > { %v1312_v39 = vadd.s32 %v1311_v4, %v1307_v20  ;;  %v1459_v28 = vadd.f32 1.0, %v839_v46  ;;  %vm1477_vm6 = vcmp.lt.f32.partialorder %v3471_v59, 10.0  ;;  %v1430_v14 = vor.u32 %v1429_v31, %v1428_v17 }
  0xb9   : > { %v1433_v37 = vshll.u32 %v1432_v55, 23  ;;  %v3546_v50 = vmov 0.0   ;;  %3331 = vsinq.f32 %v722_v16  ;;  %vm4251_vm7 = vcmp.le.f32.partialorder %v943_v19, 0.7853982 }
  0xba   : > { %v2910_v57 = vsel %vm1475_vm15, 1.0, %v3546_v50  ;;  %v1313_v35 = vadd.s32 536870912, %v1312_v39  ;;  %v1467_v51 = vmul.f32 0.5, %v1459_v28  ;;  %v1029_v25 = vsub.s32 4, %v3871_v32 }
  0xbb   : > { %vm1048_vm12 = vcmp.lt.s32.totalorder %v3915_v1, 0  ;;  %v1130_v7 = vxor.u32 2147483648, %v1129_v60  ;;  %v1434_v33 = vor.u32 4788187, %v1433_v37  ;;  %v723_v12 = vsel %vm4220_vm4, 0, %v721_v36 }
  0xbc   : > { %v925_v9 = vsel %vm842_vm1, %v924_v44, %v4150_v41  ;;  %v4264_v13 = vshrl.u32 %v1313_v35, 30  ;;  %v1499_v19 = vmul.f32 %v2910_v57, %v1467_v51  ;;  %v1030_v61 = vsel %vm945_vm13, %v1029_v25, %v3871_v32 }
  0xbd   : > { %v1234_v0 = vsel %vm1151_vm2, %v1233_v38, %v4162_v63  ;;  %v1435_v26 = vand.u32 2147483647, %v1434_v33  ;;  %v1437_v29 = vcvt.s32.f32 %v1430_v14  ;;  %v1031_v8 = vsel %vm4251_vm7, %v3674_v11, %v4146_v5 }
  0xbe   : > { %vm1357_vm8 = vcmp.lt.s32.totalorder %v3943_v24, 0  ;;  %v1315_v41 = vshll.u32 %v4264_v13, 30  ;;  %2161 = vperm.xlu1 %3296, %v1499_v19   ;;  %v727_v44 = vand.u32 3, %v723_v12  ;;  %v1032_v32 = vsel %vm4251_vm7, 0, %v1030_v61 }
  0xbf   : > { %3333 = vcosq.f32 %v1031_v8  ;;  %v1131_v63 = vsel %vm1048_vm12, %v1130_v7, %v1129_v60  ;;  %vm4284_vm13 = vcmp.le.f32.partialorder %v840_v62, 0.7853982  ;;  %v926_v5 = vsub.s32 4, %v3940_v23 }
  0xc0   : > { %3335 = vsinq.f32 %v1031_v8  ;;  %v4291_v43 = vadd.s32 %v4206_v30, %v4213_v34  ;;  %v4293_v20 = vsub.s32 %v1312_v39, %v1315_v41  ;;  %vm726_vm9 = vweird.f32 %v3671_v10  ;;  %v3473_v10 = vld [vmem:[%s3655_s24 + $0x28] sm:$0xff] }
  0xc1   : > { %v4298_v45 = vsel %vm1474_vm5, 1.0, %v3546_v50  ;;  %v1438_v3 = vmul.f32 %v1437_v29, %v1435_v26  ;;  %v4300_v27 = vand.u32 3, %v1032_v32  ;;  %v927_v62 = vsel %vm842_vm1, %v926_v5, %v3940_v23 }
  0xc2   : > { %v928_v30 = vsel %vm4284_vm13, %v3680_v15, %v925_v9  ;;  %v1318_v34 = vsub.s32 0, %v4293_v20  ;;  %vm728_vm10 = vcmp.lt.s32.totalorder %v727_v44, 2  ;;  %v929_v53 = vsel %vm4284_vm13, 0, %v927_v62  ;;  %v3472_v9 = vld [vmem:[%s3655_s24 + $0x10] sm:$0xff] }
  0xc3   : > { %3337 = vcosq.f32 %v928_v30  ;;  %vm729_vm14 = vcmp.eq.s32.totalorder %v727_v44, 0  ;;  %vm732_vm15 = vcmp.eq.s32.totalorder %v727_v44, 2  ;;  %v5401_v54 = vand.u32 2147483647, %v3875_v47 }
  0xc4   : > { %3339 = vsinq.f32 %v928_v30  ;;  %v2902_v23 = vmin.u32 %v1318_v34, %v4293_v20  ;;  %v4320_v56 = vsel %vm1477_vm6, 1.0, %v3546_v50  ;;  %v1235_v21 = vsub.s32 4, %v4016_v22  ;;  %v3330_v58 = vpop.eup %3329 }
  0xc5   : > { %vm4313_vm0 = vcmp.le.f32.partialorder %v5401_v54, 0.7853982  ;;  %v1439_v49 = vxor.u32 2147483648, %v1438_v3  ;;  %vm1037_vm1 = vcmp.lt.s32.totalorder %v4300_v27, 2  ;;  %v4327_v38 = vand.u32 3, %v929_v53 }
  0xc6   : > { %v1237_v17 = vsel %vm4313_vm0, %v3875_v47, %v1234_v0  ;;  %v3332_v60 = vpop.eup %3331  ;;  %v1320_v52 = vclz %v2902_v23  ;;  %v733_v31 = vxor.u32 2147483648, %v3330_v58  ;;  %vm1035_vm3 = vweird.f32 %v3674_v11 }
  0xc7   : > { %3341 = vcosq.f32 %v1237_v17  ;;  %v1236_v55 = vsel %vm1151_vm2, %v1235_v21, %v4016_v22  ;;  %v730_v4 = vxor.u32 2147483648, %v3332_v60  ;;  %vm1038_vm4 = vcmp.eq.s32.totalorder %v4300_v27, 0 }
  0xc8   : > { %3343 = vsinq.f32 %v1237_v17  ;;  %v1238_v46 = vsel %vm4313_vm0, 0, %v1236_v55  ;;  %v5404_v39 = vand.u32 2147483647, %v3915_v1  ;;  %v2903_v36 = vadd.s32 4294967294, %v1320_v52 }
  0xc9   : > { %v734_v59 = vsel %vm732_vm15, %v733_v31, %v3332_v60  ;;  %vm1041_vm11 = vcmp.eq.s32.totalorder %v4300_v27, 2  ;;  %v1132_v22 = vsub.s32 4, %v4078_v2  ;;  %v4347_v14 = vsel %vm1357_vm8, %v1439_v49, %v1438_v3 }
  0xca   : > { %vm4338_vm5 = vcmp.le.f32.partialorder %v5404_v39, 0.7853982  ;;  %v731_v37 = vsel %vm729_vm14, %v3330_v58, %v730_v4  ;;  %vm934_vm2 = vcmp.lt.s32.totalorder %v4327_v38, 2  ;;  %v4351_v57 = vand.u32 3, %v1238_v46  ;;  %v4396_v39 = vpop.permute.xlu0 %436 }
  0xcb   : > { %vm2904_vm6 = vcmp.lt.s32.totalorder %v2903_v36, 0  ;;  %v735_v35 = vsel %vm728_vm10, %v731_v37, %v734_v59  ;;  %vm932_vm7 = vweird.f32 %v3680_v15  ;;  %vm935_vm13 = vcmp.eq.s32.totalorder %v4327_v38, 0 }
  0xcc   : > { %v1134_v51 = vsel %vm4338_vm5, %v3915_v1, %v1131_v63  ;;  %v3334_v6 = vpop.eup %3333  ;;  %v1323_v25 = vsel %vm2904_vm6, 0, %v2903_v36  ;;  %v736_v7 = vsel %vm726_vm9, nan, %v735_v35  ;;  %vm938_vm14 = vcmp.eq.s32.totalorder %v4327_v38, 2 }
  0xcd   : > { %v1133_v33 = vsel %vm1048_vm12, %v1132_v22, %v4078_v2  ;;  %v3336_v12 = vpop.eup %3335  ;;  %vm1476_vm10 = vcmp.lt.f32.partialorder %v3472_v9, 10.0  ;;  %v1324_v19 = vsub.s32 32, %v1323_v25  ;;  %v1325_v61 = vshll.u32 %v4293_v20, %v1323_v25  ;;  %v443_v9 = vpop.permute.xlu1 %442 }
  0xce   : > { %v1328_v0 = vsub.s32 4294967266, %v1323_v25  ;;  %v1458_v26 = vadd.f32 1.0, %v736_v7  ;;  %v1039_v29 = vxor.u32 2147483648, %v3336_v12  ;;  %v1042_v8 = vxor.u32 2147483648, %v3334_v6 }
  0xcf   : > { %vm1241_vm15 = vweird.f32 %v3875_v47  ;;  %vm1243_vm9 = vcmp.lt.s32.totalorder %v4351_v57, 2  ;;  %3345 = vcosq.f32 %v1134_v51  ;;  %vm1479_vm0 = vcmp.lt.f32.partialorder %v3473_v10, 10.0 }
  0xd0   : > { %v1326_v41 = vshrl.u32 %v4291_v43, %v1324_v19  ;;  %v1329_v2 = vadd.s32 127, %v1328_v0  ;;  %v1466_v44 = vmul.f32 0.5, %v1458_v26  ;;  %3347 = vsinq.f32 %v1134_v51  ;;  %v3338_v32 = vpop.eup %3337  ;;  %v440_v0 = vpop.permute.xlu0 %439 }
  0xd1   : > { %v1040_v63 = vsel %vm1038_vm4, %v3334_v6, %v1039_v29  ;;  %v1043_v18 = vsel %vm1041_vm11, %v1042_v8, %v3336_v12  ;;  %vm1244_vm12 = vcmp.eq.s32.totalorder %v4351_v57, 0  ;;  %v1135_v5 = vsel %vm4338_vm5, 0, %v1133_v33  ;;  %v3340_v20 = vpop.eup %3339 }
  0xd2   : > { %v1327_v3 = vor.u32 %v1326_v41, %v1325_v61  ;;  %v1330_v62 = vshll.u32 %v1329_v2, 23  ;;  %v1498_v43 = vmul.f32 %v4298_v45, %v1466_v44  ;;  %v1044_v30 = vsel %vm1037_vm1, %v1040_v63, %v1043_v18  ;;  %v3474_v18 = vld [vmem:[%s3655_s24 + $0x20] sm:$0xff] }
  0xd3   : > { %v1045_v34 = vsel %vm1035_vm3, nan, %v1044_v30  ;;  %v936_v53 = vxor.u32 2147483648, %v3340_v20  ;;  %v939_v54 = vxor.u32 2147483648, %v3338_v32  ;;  %vm1247_vm4 = vcmp.eq.s32.totalorder %v4351_v57, 2 }
  0xd4   : > { %v3342_v16 = vpop.eup %3341  ;;  %v1331_v23 = vor.u32 4788187, %v1330_v62  ;;  %v1334_v21 = vcvt.s32.f32 %v1327_v3  ;;  %2156 = vperm.xlu0 %3295, %v1498_v43   ;;  %v1461_v17 = vadd.f32 1.0, %v1045_v34  ;;  %v5407_v58 = vand.u32 2147483647, %v3943_v24  ;;  %v446_v3 = vpop.permute.xlu1 %445 }
  0xd5   : > { %v3344_v45 = vpop.eup %3343  ;;  %v937_v11 = vsel %vm935_vm13, %v3338_v32, %v936_v53  ;;  %v940_v27 = vsel %vm938_vm14, %v939_v54, %v3340_v20  ;;  %v1248_v60 = vxor.u32 2147483648, %v3342_v16  ;;  %v1139_v52 = vand.u32 3, %v1135_v5  ;;  %v483_v62 = vld [vmem:[%s5380_s3] sm:$0xf]  ;;  %v449_v30 = vpop.permute.xlu0 %448 }
  0xd6   : > { %vm4386_vm5 = vcmp.le.f32.partialorder %v5407_v58, 0.7853982  ;;  %v1332_v31 = vand.u32 2147483647, %v1331_v23  ;;  %v1469_v55 = vmul.f32 0.5, %v1461_v17  ;;  %v941_v4 = vsel %vm934_vm2, %v937_v11, %v940_v27 }
  0xd7   : > { %v1245_v46 = vxor.u32 2147483648, %v3344_v45  ;;  %v942_v28 = vsel %vm932_vm7, nan, %v941_v4  ;;  %v1249_v36 = vsel %vm1247_vm4, %v1248_v60, %v3344_v45  ;;  %v1441_v59 = vsub.s32 4, %v4170_v40 }
  0xd8   : > { %v1443_v22 = vsel %vm4386_vm5, %v3943_v24, %v4347_v14  ;;  %v1335_v37 = vmul.f32 %v1334_v21, %v1332_v31  ;;  %v1501_v38 = vmul.f32 %v4320_v56, %v1469_v55  ;;  %v1460_v35 = vadd.f32 1.0, %v942_v28  ;;  %v452_v11 = vpop.permute.xlu1 %451 }
  0xd9   : > { %v1246_v51 = vsel %vm1244_vm12, %v3342_v16, %v1245_v46  ;;  %vm1254_vm1 = vcmp.lt.s32.totalorder %v4050_v42, 0  ;;  %v2911_v15 = vsel %vm1476_vm10, 1.0, %v3546_v50  ;;  %3349 = vcosq.f32 %v1443_v22 }
  0xda   : > { %v1250_v6 = vsel %vm1243_vm9, %v1246_v51, %v1249_v36  ;;  %v1336_v25 = vxor.u32 2147483648, %v1335_v37  ;;  %2171 = vperm.xlu1 %3296, %v1501_v38   ;;  %v1468_v7 = vmul.f32 0.5, %v1460_v35  ;;  %v1442_v56 = vsel %vm1357_vm8, %v1441_v59, %v4170_v40  ;;  %v3475_v36 = vld [vmem:[%s3655_s24 + $0x38] sm:$0xff] }
  0xdb   : > { %v1251_v14 = vsel %vm1241_vm15, nan, %v1250_v6  ;;  %v2914_v12 = vsel %vm1479_vm0, 1.0, %v3546_v50  ;;  %3351 = vsinq.f32 %v1443_v22  ;;  %vm1144_vm3 = vcmp.eq.s32.totalorder %v1139_v52, 2 }
  0xdc   : > { %v1463_v33 = vadd.f32 1.0, %v1251_v14  ;;  %v3346_v19 = vpop.eup %3345  ;;  %v1337_v57 = vsel %vm1254_vm1, %v1336_v25, %v1335_v37  ;;  %v1500_v61 = vmul.f32 %v2911_v15, %v1468_v7  ;;  %vm4426_vm11 = vcmp.le.f32.partialorder %v1252_v48, 0.7853982 }
  0xdd   : > { %v3348_v40 = vpop.eup %3347  ;;  %vm1141_vm8 = vcmp.eq.s32.totalorder %v1139_v52, 0  ;;  %v1145_v29 = vxor.u32 2147483648, %v3346_v19  ;;  %v1444_v8 = vsel %vm4386_vm5, 0, %v1442_v56  ;;  %vm1140_vm2 = vcmp.lt.s32.totalorder %v1139_v52, 2  ;;  %v455_v52 = vpop.permute.xlu0 %454 }
  0xde   : > { %v1471_v26 = vmul.f32 0.5, %v1463_v33  ;;  %2166 = vperm.xlu0 %3295, %v1500_v61   ;;  %v1142_v10 = vxor.u32 2147483648, %v3348_v40  ;;  %v1338_v41 = vsub.s32 4, %v4264_v13  ;;  %v1340_v48 = vsel %vm4426_vm11, %v4050_v42, %v1337_v57  ;;  %v3476_v33 = vld [vmem:[%s3655_s24 + $0x30] sm:$0xff]  ;;  %s3481_s24 = sshll.u32 %s3547_s23, 4  ;;  %s3482_s24 = int_to_ptr.vmem [resolvable:$false] %s3481_s24 }
  0xdf   : > { %vm1138_vm6 = vweird.f32 %v3915_v1  ;;  %v1146_v44 = vsel %vm1144_vm3, %v1145_v29, %v3348_v40  ;;  %3353 = vcosq.f32 %v1340_v48  ;;  %v1448_v63 = vand.u32 3, %v1444_v8  ;;  %v3297_v40 = vld [vmem:[%s5381_s4 + $0x4] ss:$12 sps:$4 sm:$0xff]   ;;  %v3300_v29 = vld [vmem:[%s5381_s4 + $0x8] ss:$12 sps:$4 sm:$0xff]   ;;  %s3483_s25 = scalar_lea.vmem %s3482_s24, 3072  ;;  %p3484_p0 = scmp.lt.s32.totalorder %s5326_s17, %s3482_s24 }
  0xe0   : > { %v1503_v2 = vmul.f32 %v2914_v12, %v1471_v26  ;;  %v1143_v32 = vsel %vm1141_vm8, %v3346_v19, %v1142_v10  ;;  %3355 = vsinq.f32 %v1340_v48  ;;  %vm1478_vm7 = vcmp.lt.f32.partialorder %v3474_v18, 10.0  ;;  %v3299_v26 = vld [vmem:[%s5381_s4] ss:$12 sps:$4 sm:$0xff]   ;;  %1574 = vmatprep.subr.bf16.mxu1 %v3297_v40  ;;  %p3485_p1 = scmp.lt.s32.totalorder %s3483_s25, %s3477_s22 }
  0xe1   : > { %v1147_v5 = vsel %vm1140_vm2, %v1143_v32, %v1146_v44  ;;  %v433_v20 = vlaneseq  ;;  %v1339_v1 = vsel %vm1254_vm1, %v1338_v41, %v4264_v13  ;;  %vm509_vm13 = vcmask 1043456   ;;  %1575 = vmatpush1.bf16.msra.mxu1 %v3299_v26  ;;  %v342_v8 = vpop.permute.xlu0 %341  ;;  %v2859_v10 = vld [vmem:[%s5379_s2] ss:$0 sm:$0xff] }
  0xe2   : > { %2181 = vperm.xlu1 %3296, %v1503_v2   ;;  %v1148_v43 = vsel %vm1138_vm6, nan, %v1147_v5  ;;  %v2913_v54 = vsel %vm1478_vm7, 1.0, %v3546_v50  ;;  %vm1453_vm14 = vcmp.eq.s32.totalorder %v1448_v63, 2  ;;  %vm484_vm10 = vcmask 31744   ;;  %3116 = vmatprep.subr.msk.mxu0 %vm509_vm13, %v483_v62  ;;  %p3486_p2 = por %p3485_p1, %p3484_p0 }
  0xe3   : > { %v1462_v34 = vadd.f32 1.0, %v1148_v43  ;;  %v4445_v53 = vand.u32 127, %v433_v20  ;;  %v1341_v23 = vsel %vm4426_vm11, 0, %v1339_v1  ;;  %3117 = vmatpush3.msk.msra.mxu0 %vm509_vm13, %v483_v62  ;;  %vm1450_vm4 = vcmp.eq.s32.totalorder %v1448_v63, 0 }
  0xe4   : > { %v1345_v60 = vand.u32 3, %v1341_v23  ;;  %vm1449_vm1 = vcmp.lt.s32.totalorder %v1448_v63, 2  ;;  %vm1447_vm3 = vweird.f32 %v3943_v24  ;;  %vm1481_vm8 = vcmp.lt.f32.partialorder %v3475_v36, 10.0  ;;  %v458_v24 = vpop.permute.xlu1 %457  ;;  %3130 = vmatprep.subr.bf16.mxu0 %v3300_v29  ;;  %p3487_p3 = pnand %p3486_p2, %p3480_p13 }
  0xe5   : > { %v1470_v16 = vmul.f32 0.5, %v1462_v34  ;;  %vm461_vm15 = vcmp.eq.s32.totalorder %v443_v9, %v4445_v53  ;;  %vm459_vm9 = vcmp.eq.s32.totalorder %v4396_v39, %v4445_v53  ;;  %vm462_vm0 = vcmp.eq.s32.totalorder %v446_v3, %v4445_v53  ;;  %v352_v48 = vpop.permute.xlu0 %351 }
  0xe6   : > { %v3350_v13 = vpop.eup %3349  ;;  %v2862_v21 = vsel %vm461_vm15, 1.0, %v3546_v50  ;;  %v2860_v17 = vsel %vm459_vm9, 1.0, %v3546_v50  ;;  %vm460_vm12 = vcmp.eq.s32.totalorder %v440_v0, %v4445_v53  ;;  %vm463_vm5 = vcmp.eq.s32.totalorder %v449_v30, %v4445_v53 }
  0xe7   : > { %v1502_v58 = vmul.f32 %v2913_v54, %v1470_v16  ;;  %v1454_v49 = vxor.u32 2147483648, %v3350_v13  ;;  %3118 = vmatprep.mubr.msk.f32.mxu0 %vm484_vm10, %v2860_v17  ;;  %v2861_v45 = vsel %vm460_vm12, 1.0, %v3546_v50  ;;  %v2863_v4 = vsel %vm462_vm0, 1.0, %v3546_v50 }
  0xe8   : > { %v3352_v27 = vpop.eup %3351  ;;  %3119 = vmatmul.mubr.msk.f32.vlgmr.msra.gmra.mxu0 %vm484_vm10, %v2861_v45  ;;  %v2864_v46 = vsel %vm463_vm5, 1.0, %v3546_v50  ;;  %vm465_vm11 = vcmp.eq.s32.totalorder %v455_v52, %v4445_v53  ;;  %vm1350_vm2 = vcmp.eq.s32.totalorder %v1345_v60, 2  ;;  %vm464_vm6 = vcmp.eq.s32.totalorder %v452_v11, %v4445_v53 }
  0xe9   : > { %2176 = vperm.xlu0 %3295, %v1502_v58   ;;  %v1451_v31 = vxor.u32 2147483648, %v3352_v27  ;;  %v1455_v55 = vsel %vm1453_vm14, %v1454_v49, %v3352_v27  ;;  %3121 = vmatprep.mubr.msk.f32.mxu0 %vm484_vm10, %v2862_v21  ;;  %vm1347_vm7 = vcmp.eq.s32.totalorder %v1345_v60, 0  ;;  %vm1346_vm13 = vcmp.lt.s32.totalorder %v1345_v60, 2  ;;  %v362_v5 = vpop.permute.xlu0 %361 }
  0xea   : > { %v2866_v15 = vsel %vm465_vm11, 1.0, %v3546_v50  ;;  %v2916_v6 = vsel %vm1481_vm8, 1.0, %v3546_v50  ;;  %vm1344_vm14 = vweird.f32 %v4050_v42  ;;  %v2865_v7 = vsel %vm464_vm6, 1.0, %v3546_v50  ;;  %3131 = vmatpush3.bf16.msra.mxu0 %v3300_v29 }
  0xeb   : > { %v1452_v39 = vsel %vm1450_vm4, %v3350_v13, %v1451_v31  ;;  %vm466_vm15 = vcmp.eq.s32.totalorder %v458_v24, %v4445_v53  ;;  %vm1480_vm9 = vcmp.lt.f32.partialorder %v3476_v33, 10.0  ;;  %v385_v44 = vsub.f32 %v342_v8, %v2859_v10 }
  0xec   : > { %v3354_v28 = vpop.eup %3353  ;;  %v1456_v59 = vsel %vm1449_vm1, %v1452_v39, %v1455_v55  ;;  %3122 = vmatmul.mubr.msk.f32.gmra.mxu0 %vm484_vm10, %v2863_v4  ;;  %v2867_v61 = vsel %vm466_vm15, 1.0, %v3546_v50  ;;  %v2915_v42 = vsel %vm1480_vm9, 1.0, %v3546_v50  ;;  %v347_v50 = vpop.permute.xlu1 %346  ;;  %v387_v62 = vsub.f32 %v352_v48, %v2859_v10 }
  0xed   : > { %v3356_v22 = vpop.eup %3355  ;;  %v1457_v37 = vsel %vm1447_vm3, nan, %v1456_v59  ;;  %v1351_v38 = vxor.u32 2147483648, %v3354_v28  ;;  %3124 = vmatprep.mubr.msk.f32.mxu0 %vm484_vm10, %v2864_v46  ;;  %v386_v2 = vsub.f32 %v347_v50, %v2859_v10  ;;  %v393_v3 = vmul.f32 %v385_v44, %v385_v44  ;;  %v372_v23 = vpop.permute.xlu0 %371 }
  0xee   : > { %v1465_v35 = vadd.f32 1.0, %v1457_v37  ;;  %v1348_v51 = vxor.u32 2147483648, %v3356_v22  ;;  %v395_v53 = vmul.f32 %v387_v62, %v387_v62  ;;  %v389_v54 = vsub.f32 %v362_v5, %v2859_v10  ;;  %v3304_v5 = vld [vmem:[%s5383_s6 + $0x70] sm:$0xff]   ;;  %v3306_v62 = vld [vmem:[%s5383_s6 + $0x68] sm:$0xff]  }
  0xef   : > { %v1352_v25 = vsel %vm1350_vm2, %v1351_v38, %v3356_v22  ;;  %v394_v63 = vmul.f32 %v386_v2, %v386_v2  ;;  %v401_v34 = vmul.f32 -1.125, %v393_v3  ;;  %v391_v27 = vsub.f32 %v372_v23, %v2859_v10  ;;  %v3305_v3 = vld [vmem:[%s5383_s6 + $0x28] sm:$0xff]  }
  0xf0   : > { %v1473_v14 = vmul.f32 0.5, %v1465_v35  ;;  %v1349_v56 = vsel %vm1347_vm7, %v3354_v28, %v1348_v51  ;;  %3125 = vmatmul.mubr.msk.f32.gmra.mxu0 %vm484_vm10, %v2865_v7  ;;  %v357_v41 = vpop.permute.xlu1 %356  ;;  %v403_v45 = vmul.f32 -1.125, %v395_v53  ;;  %v397_v11 = vmul.f32 %v389_v54, %v389_v54  ;;  %v3311_v53 = vld [vmem:[%s5383_s6 + $0x10] sm:$0xff]  }
  0xf1   : > { %v1353_v12 = vsel %vm1346_vm13, %v1349_v56, %v1352_v25  ;;  %3127 = vmatprep.mubr.msk.f32.mxu0 %vm484_vm10, %v2866_v15  ;;  %v388_v18 = vsub.f32 %v357_v41, %v2859_v10  ;;  %v402_v43 = vmul.f32 -1.125, %v394_v63  ;;  %v409_v49 = vmul.f32 1.442695, %v401_v34  ;;  %v3302_v63 = vld [vmem:[%s5383_s6 + $0x78] sm:$0xff]   ;;  %v3312_v54 = vld [vmem:[%s5383_s6 + $0x50] sm:$0xff]  }
  0xf2   : > { %v1505_v9 = vmul.f32 %v2916_v6, %v1473_v14  ;;  %v1354_v19 = vsel %vm1344_vm14, nan, %v1353_v12  ;;  %v413_v55 = vmul.f32 1.442695, %v403_v45  ;;  %v405_v4 = vmul.f32 -1.125, %v397_v11  ;;  %3164 = vmatprep.subr.bf16.mxu0 %v3302_v63  ;;  %v3310_v34 = vld [vmem:[%s5383_s6 + $0x58] sm:$0xff]   ;;  %v3314_v11 = vld [vmem:[%s5383_s6 + $0x48] sm:$0xff]  }
  0xf3   : > { %v1464_v57 = vadd.f32 1.0, %v1354_v19  ;;  %v396_v1 = vmul.f32 %v388_v18, %v388_v18  ;;  %v411_v13 = vmul.f32 1.442695, %v402_v43  ;;  %v399_v46 = vmul.f32 %v391_v27, %v391_v27  ;;  %v3303_v18 = vld [vmem:[%s5383_s6 + $0x30] sm:$0xff]   ;;  %v3307_v43 = vld [vmem:[%s5383_s6 + $0x20] sm:$0xff]  }
  0xf4   : > { %2191 = vperm.xlu1 %3296, %v1505_v9   ;;  %3128 = vmatmul.mubr.msk.f32.gmra.mxu0 %vm484_vm10, %v2867_v61  ;;  %v367_v32 = vpop.permute.xlu1 %366  ;;  %v417_v36 = vmul.f32 1.442695, %v405_v4  ;;  %vm1547_vm10 = vcmask 130048   ;;  %v1517_v23 = vshrl.u32 %v433_v20, 7  ;;  %v3315_v27 = vld [vmem:[%s5383_s6] sm:$0xff]  }
  0xf5   : > { %v1472_v47 = vmul.f32 0.5, %v1464_v57  ;;  %v390_v30 = vsub.f32 %v367_v32, %v2859_v10  ;;  %v404_v21 = vmul.f32 -1.125, %v396_v1  ;;  %3357 = vpow2.f32 %v411_v13  ;;  %v3301_v32 = vld [vmem:[%s5383_s6 + $0x38] sm:$0xff]   ;;  %v3308_v1 = vld [vmem:[%s5383_s6 + $0x60] sm:$0xff]  }
  0xf6   : > { %3359 = vpow2.f32 %v409_v49  ;;  %v407_v59 = vmul.f32 -1.125, %v399_v46  ;;  %v5412_v57 = vmov 0   ;;  %3140 = vmatprep.subr.bf16.mxu1 %v3301_v32  ;;  %v1518_v13 = vsub.s32 0, %v1517_v23  ;;  %v3316_v20 = vld [vmem:[%s5383_s6 + $0x40] sm:$0xff]  }
  0xf7   : > { %v1504_v0 = vmul.f32 %v2915_v42, %v1472_v47  ;;  %v398_v17 = vmul.f32 %v390_v30, %v390_v30  ;;  %v415_v60 = vmul.f32 1.442695, %v404_v21  ;;  %v3309_v30 = vld [vmem:[%s5383_s6 + $0x18] sm:$0xff]   ;;  %v1514_v21 = vld [vmem:[%s5382_s5] sm:$0x7]  ;;  %v1526_v49 = vsub.s32 2, %v1517_v23 }
  0xf8   : > { %v377_v16 = vpop.permute.xlu1 %376  ;;  %v421_v37 = vmul.f32 1.442695, %v407_v59 }
  0xf9   : > { %2186 = vperm.xlu0 %3295, %v1504_v0   ;;  %v392_v58 = vsub.f32 %v377_v16, %v2859_v10  ;;  %v406_v52 = vmul.f32 -1.125, %v398_v17  ;;  %3361 = vpow2.f32 %v415_v60  ;;  %v3313_v16 = vld [vmem:[%s5383_s6 + $0x8] sm:$0xff]   ;;  %v1522_v17 = vsub.s32 1, %v1517_v23 }
  0xfa   : > { %3363 = vpow2.f32 %v413_v55  ;;  %v4573_v4 = vrot.slane %v1514_v21, %v1526_v49 }
  0xfb   : > { %v400_v31 = vmul.f32 %v392_v58, %v392_v58  ;;  %v419_v39 = vmul.f32 1.442695, %v406_v52  ;;  %v4552_v58 = vrot.slane %v1514_v21, %v1518_v13  ;;  %v4554_v45 = vrot.slane %v1514_v21, %v1522_v17  ;;  %v4568_v52 = vld [vmem:[%s5383_s6 + $0xb8] sm:$0xff]  }
  0xfd   : > { %v408_v28 = vmul.f32 -1.125, %v400_v31  ;;  %3365 = vpow2.f32 %v419_v39 }
  0xfe   : > { %3367 = vpow2.f32 %v417_v36 }
  0xff   : > { %v423_v22 = vmul.f32 1.442695, %v408_v28 }
 0x101   : > { %3369 = vpow2.f32 %v423_v22 }
 0x102   : > { %v3358_v24 = vpop.eup %3357  ;;  %3371 = vpow2.f32 %v421_v37 }
 0x103   : > { %v3360_v35 = vpop.eup %3359 }
 0x106   : > { %v3362_v7 = vpop.eup %3361 }
 0x107   : > { %v3364_v56 = vpop.eup %3363 }
 0x10a   : > { %v3366_v61 = vpop.eup %3365 }
 0x10b   : > { %v3368_v47 = vpop.eup %3367 }
 0x10e   : > { %v3370_v50 = vpop.eup %3369 }
 0x10f   : > { %v3372_v10 = vpop.eup %3371 }
 0x1a8   : > { %v3120_v38 = vpop.f32.mrf.mxu0 }
 0x1a9   : > { %v619_v15 = vadd.f32 %v3358_v24, %v3120_v38 }
 0x1aa   : > { %v579_v51 = vpop.f32.mrf.mxu0 }
 0x1ab   : > { %v618_v6 = vadd.f32 %v3360_v35, %v579_v51 }
 0x1ac   : > { %v3123_v25 = vpop.f32.mrf.mxu0 }
 0x1ad   : > { %v1506_v14 = vpack.c.bf16 %v619_v15, %v618_v6  ;;  %v621_v12 = vadd.f32 %v3362_v7, %v3123_v25 }
 0x1ae   : > { %v589_v33 = vpop.f32.mrf.mxu0 }
 0x1af   : > { %v620_v9 = vadd.f32 %v3364_v56, %v589_v33  ;;  %2920 = vmatmul.mubr.msk.bf16.vlgmr.msra.gmra.mxu1 %vm1547_vm10, %v1506_v14  ;;  %3132 = vmatprep.mubr.msk.bf16.mxu0 %vm1547_vm10, %v1506_v14 }
 0x1b0   : > { %v3126_v19 = vpop.f32.mrf.mxu0  ;;  %1602 = vmatprep.mubr.bf16.mxu1 %v5412_v57  ;;  %3141 = vmatpush3.bf16.msra.mxu1 %v3301_v32 }
 0x1b1   : > { %v1507_v42 = vpack.c.bf16 %v621_v12, %v620_v9  ;;  %v623_v40 = vadd.f32 %v3366_v61, %v3126_v19  ;;  %3142 = vmatprep.subr.bf16.mxu1 %v3303_v18 }
 0x1b2   : > { %v599_v0 = vpop.f32.mrf.mxu0 }
 0x1b3   : > { %v622_v26 = vadd.f32 %v3368_v47, %v599_v0  ;;  %3133 = vmatmul.mubr.msk.bf16.vlgmr.msra.gmra.mxu0 %vm1547_vm10, %v1507_v42 }
 0x1b4   : > { %v3129_v29 = vpop.f32.mrf.mxu0  ;;  %3165 = vmatpush3.bf16.msra.mxu0 %v3302_v63  ;;  %3143 = vmatpush3.bf16.msra.mxu1 %v3303_v18 }
 0x1b5   : > { %v1508_v8 = vpack.c.bf16 %v623_v40, %v622_v26  ;;  %v625_v48 = vadd.f32 %v3370_v50, %v3129_v29  ;;  %3166 = vmatprep.subr.bf16.mxu0 %v3304_v5  ;;  %3144 = vmatprep.subr.bf16.mxu1 %v3305_v3 }
 0x1b6   : > { %v609_v41 = vpop.f32.mrf.mxu0 }
 0x1b7   : > { %v624_v2 = vadd.f32 %v3372_v10, %v609_v41  ;;  %2921 = vmatmul.mubr.msk.bf16.gmra.mxu1 %vm1547_vm10, %v1507_v42  ;;  %3136 = vmatprep.mubr.msk.bf16.mxu0 %vm1547_vm10, %v1508_v8 }
 0x1b8   : > { %1612 = vmatprep.mubr.bf16.mxu1 %v5412_v57  ;;  %3167 = vmatpush3.bf16.msra.mxu0 %v3304_v5 }
 0x1b9   : > { %v1509_v44 = vpack.c.bf16 %v625_v48, %v624_v2  ;;  %3145 = vmatpush3.bf16.msra.mxu1 %v3305_v3  ;;  %3168 = vmatprep.subr.bf16.mxu0 %v3306_v62 }
 0x1ba   : > { %3146 = vmatprep.subr.bf16.mxu1 %v3307_v43 }
 0x1bb   : > { %3137 = vmatmul.mubr.msk.bf16.gmra.mxu0 %vm1547_vm10, %v1509_v44 }
 0x1bc   : > { %3169 = vmatpush3.bf16.msra.mxu0 %v3306_v62 }
 0x1bd   : > { %3147 = vmatpush3.bf16.msra.mxu1 %v3307_v43  ;;  %3170 = vmatprep.subr.bf16.mxu0 %v3308_v1 }
 0x1be   : > { %3148 = vmatprep.subr.bf16.mxu1 %v3309_v30 }
 0x1bf   : > { %2922 = vmatmul.mubr.msk.bf16.gmra.mxu1 %vm1547_vm10, %v1508_v8 }
 0x1c0   : > { %1622 = vmatprep.mubr.bf16.mxu1 %v5412_v57  ;;  %3171 = vmatpush3.bf16.msra.mxu0 %v3308_v1 }
 0x1c1   : > { %3149 = vmatpush3.bf16.msra.mxu1 %v3309_v30  ;;  %3172 = vmatprep.subr.bf16.mxu0 %v3310_v34 }
 0x1c2   : > { %3150 = vmatprep.subr.bf16.mxu1 %v3311_v53 }
 0x1c4   : > { %3173 = vmatpush3.bf16.msra.mxu0 %v3310_v34 }
 0x1c5   : > { %3151 = vmatpush3.bf16.msra.mxu1 %v3311_v53  ;;  %3174 = vmatprep.subr.bf16.mxu0 %v3312_v54 }
 0x1c6   : > { %3152 = vmatprep.subr.bf16.mxu1 %v3313_v16 }
 0x1c7   : > { %2923 = vmatmul.mubr.msk.bf16.gmra.mxu1 %vm1547_vm10, %v1509_v44 }
 0x1c8   : > { %3175 = vmatpush3.bf16.msra.mxu0 %v3312_v54 }
 0x1c9   : > { %3153 = vmatpush3.bf16.msra.mxu1 %v3313_v16  ;;  %3176 = vmatprep.subr.bf16.mxu0 %v3314_v11 }
 0x1ca   : > { %3154 = vmatprep.subr.bf16.mxu1 %v3315_v27 }
 0x1cc   : > { %3177 = vmatpush3.bf16.msra.mxu0 %v3314_v11 }
 0x1cd   : > { %3155 = vmatpush3.bf16.msra.mxu1 %v3315_v27  ;;  %3178 = vmatprep.subr.bf16.mxu0 %v3316_v20 }
 0x1ce   : > { %3188 = vmatprep.subr.bf16.mxu1 %v4568_v52 }
 0x1d0   : > { %3179 = vmatpush3.bf16.msra.mxu0 %v3316_v20 }
 0x26f   : > { %v1594_v60 = vpop.f32.mrf.mxu1 }
 0x270   : > { %v4571_v31 = vadd.f32 %v1594_v60, %v4552_v58 }
 0x271   : > { %v1596_v55 = vpop.f32.mrf.mxu1 }
 0x272   : > { %v1770_v46 = vand.u32 2147483647, %v4571_v31  ;;  %v4577_v39 = vadd.f32 %v1596_v55, %v4554_v45  ;;  %v1698_v55 = vmax.f32 %v4571_v31, 0.0 }
 0x273   : > { %v1598_v28 = vpop.f32.mrf.mxu1  ;;  %v3134_v36 = vpop.f32.mrf.mxu0 }
 0x274   : > { %v1771_v59 = vand.u32 2147483647, %v4577_v39  ;;  %v4582_v22 = vadd.f32 %v1598_v28, %v4552_v58  ;;  %v4585_v37 = vadd.f32 %v3134_v36, %v4573_v4  ;;  %v1794_v35 = vsub.f32 0.0, %v1770_v46 }
 0x275   : > { %v1600_v38 = vpop.f32.mrf.mxu1  ;;  %v1667_v24 = vpop.f32.mrf.mxu0  ;;  %v1699_v46 = vmax.f32 %v4577_v39, 0.0 }
 0x276   : > { %v1773_v51 = vand.u32 2147483647, %v4582_v22  ;;  %v1795_v15 = vsub.f32 0.0, %v1771_v59  ;;  %v1778_v6 = vand.u32 2147483647, %v4585_v37  ;;  %v4590_v25 = vadd.f32 %v1600_v38, %v4554_v45 }
 0x277   : > { %v1604_v7 = vpop.f32.mrf.mxu1  ;;  %v3135_v33 = vpop.f32.mrf.mxu0  ;;  %v1818_v12 = vmul.f32 1.442695, %v1794_v35  ;;  %v4597_v47 = vadd.f32 %v1667_v24, %v4573_v4  ;;  %vm1730_vm8 = vcmp.ne.f32.partialorder %v4585_v37, %v4585_v37 }
 0x278   : > { %v1774_v14 = vand.u32 2147483647, %v4590_v25  ;;  %v4594_v56 = vadd.f32 %v1604_v7, %v4552_v58  ;;  %v1797_v9 = vsub.f32 0.0, %v1773_v51  ;;  %v1820_v57 = vmul.f32 1.442695, %v1795_v15 }
 0x279   : > { %v1606_v19 = vpop.f32.mrf.mxu1  ;;  %v1802_v61 = vsub.f32 0.0, %v1778_v6  ;;  %v4601_v40 = vadd.f32 %v3135_v33, %v4573_v4  ;;  %3373 = vpow2.f32 %v1818_v12  ;;  %v1670_v8 = vpop.f32.mrf.mxu0  ;;  %v1772_v2 = vand.u32 2147483647, %v4597_v47 }
 0x27a   : > { %v1798_v42 = vsub.f32 0.0, %v1774_v14  ;;  %v1776_v0 = vand.u32 2147483647, %v4594_v56  ;;  %v4604_v26 = vadd.f32 %v1606_v19, %v4554_v45  ;;  %v1824_v29 = vmul.f32 1.442695, %v1797_v9 }
 0x27b   : > { %3375 = vpow2.f32 %v1820_v57  ;;  %v1834_v10 = vmul.f32 1.442695, %v1802_v61  ;;  %v1781_v41 = vand.u32 2147483647, %v4601_v40  ;;  %v4610_v18 = vadd.f32 %v1670_v8, %v4573_v4  ;;  %v1608_v30 = vpop.f32.mrf.mxu1  ;;  %v3138_v11 = vpop.f32.mrf.mxu0 }
 0x27c   : > { %v1800_v50 = vsub.f32 0.0, %v1776_v0  ;;  %v1826_v48 = vmul.f32 1.442695, %v1798_v42  ;;  %v1777_v44 = vand.u32 2147483647, %v4604_v26  ;;  %3377 = vpow2.f32 %v1824_v29 }
 0x27d   : > { %v1805_v63 = vsub.f32 0.0, %v1781_v41  ;;  %3379 = vpow2.f32 %v1834_v10  ;;  %v1796_v3 = vsub.f32 0.0, %v1772_v2  ;;  %v1775_v43 = vand.u32 2147483647, %v4610_v18  ;;  %v1610_v21 = vpop.f32.mrf.mxu1  ;;  %v1683_v61 = vpop.f32.mrf.mxu0 }
 0x27e   : > { %v1830_v32 = vmul.f32 1.442695, %v1800_v50  ;;  %v1801_v5 = vsub.f32 0.0, %v1777_v44  ;;  %3381 = vpow2.f32 %v1826_v48  ;;  %v4614_v54 = vadd.f32 %v1608_v30, %v4552_v58 }
 0x27f   : > { %v1840_v62 = vmul.f32 1.442695, %v1805_v63  ;;  %v1822_v34 = vmul.f32 1.442695, %v1796_v3  ;;  %v1799_v53 = vsub.f32 0.0, %v1775_v43  ;;  %v4630_v28 = vadd.f32 %v1610_v21, %v4554_v45 }
 0x280   : > { %3383 = vpow2.f32 %v1830_v32  ;;  %v1832_v1 = vmul.f32 1.442695, %v1801_v5  ;;  %v1779_v49 = vand.u32 2147483647, %v4614_v54  ;;  %v4637_v24 = vadd.f32 %v3138_v11, %v4573_v4 }
 0x281   : > { %3385 = vpow2.f32 %v1840_v62  ;;  %v1828_v13 = vmul.f32 1.442695, %v1799_v53  ;;  %v1780_v57 = vand.u32 2147483647, %v4630_v28  ;;  %v4660_v32 = vadd.f32 %v1683_v61, %v4573_v4 }
 0x282   : > { %3387 = vpow2.f32 %v1832_v1  ;;  %v1803_v6 = vsub.f32 0.0, %v1779_v49  ;;  %v1790_v8 = vand.u32 2147483647, %v4637_v24  ;;  %vm1728_vm7 = vcmp.ne.f32.partialorder %v4594_v56, %v4594_v56 }
 0x283   : > { %3389 = vpow2.f32 %v1822_v34  ;;  %v1804_v62 = vsub.f32 0.0, %v1780_v57  ;;  %vm1733_vm13 = vcmp.ne.f32.partialorder %v4601_v40, %v4601_v40  ;;  %vm1729_vm14 = vcmp.ne.f32.partialorder %v4604_v26, %v4604_v26 }
 0x284   : > { %3391 = vpow2.f32 %v1828_v13  ;;  %v1836_v48 = vmul.f32 1.442695, %v1803_v6  ;;  %v4669_v30 = vsub.f32 0.0, %v1790_v8  ;;  %vm1731_vm9 = vcmp.ne.f32.partialorder %v4614_v54, %v4614_v54 }
 0x286   : > { %v4616_v16 = vpop.eup %3373 }
 0x287   : > { %v1866_v17 = vadd.f32 1.0, %v4616_v16  ;;  %v1869_v51 = vmul.f32 -0.5, %v4616_v16  ;;  %v1872_v1 = vand.u32 2147483647, %v4616_v16 }
 0x288   : > { %v4618_v23 = vpop.eup %3375 }
 0x289   : > { %v4622_v27 = vpop.eup %3377  ;;  %v1875_v20 = vadd.f32 1.0, %v4618_v23  ;;  %3393 = vlog2.f32 %v1866_v17  ;;  %v1870_v10 = vadd.f32 1.0, %v1869_v51  ;;  %v1878_v41 = vmul.f32 -0.5, %v4618_v23  ;;  %v1614_v17 = vpop.f32.mrf.mxu1 }
 0x28a   : > { %v4625_v60 = vpop.eup %3379  ;;  %v1893_v15 = vadd.f32 1.0, %v4622_v27  ;;  %v1896_v2 = vmul.f32 -0.5, %v4622_v27  ;;  %v1881_v21 = vand.u32 2147483647, %v4618_v23  ;;  %vm4681_vm0 = vcmp.lt.f32.partialorder %v1872_v1, 0.0004427343 }
 0x28b   : > { %v4632_v36 = vpop.eup %3381  ;;  %3395 = vlog2.f32 %v1875_v20  ;;  %v1938_v7 = vadd.f32 1.0, %v4625_v60  ;;  %v4673_v53 = vmul.f32 %v4616_v16, %v1870_v10  ;;  %v1879_v13 = vadd.f32 1.0, %v1878_v41  ;;  %v1616_v34 = vpop.f32.mrf.mxu1 }
 0x28c   : > { %v1902_v12 = vadd.f32 1.0, %v4632_v36  ;;  %3397 = vlog2.f32 %v1893_v15  ;;  %v1897_v49 = vadd.f32 1.0, %v1896_v2  ;;  %v1941_v11 = vmul.f32 -0.5, %v4625_v60 }
 0x28d   : > { %v4639_v35 = vpop.eup %3383  ;;  %3399 = vlog2.f32 %v1938_v7  ;;  %v1905_v20 = vmul.f32 -0.5, %v4632_v36  ;;  %v1838_v7 = vmul.f32 1.442695, %v1804_v62  ;;  %v1944_v57 = vand.u32 2147483647, %v4625_v60 }
 0x28e   : > { %v4650_v42 = vpop.eup %3385  ;;  %v1920_v0 = vadd.f32 1.0, %v4639_v35  ;;  %3401 = vlog2.f32 %v1902_v12  ;;  %v1899_v12 = vand.u32 2147483647, %v4622_v27  ;;  %v1923_v61 = vmul.f32 -0.5, %v4639_v35 }
 0x28f   : > { %v4662_v63 = vpop.eup %3387  ;;  %v1965_v5 = vadd.f32 1.0, %v4650_v42  ;;  %v4694_v10 = vmul.f32 %v4618_v23, %v1879_v13  ;;  %vm4696_vm12 = vcmp.lt.f32.partialorder %v1881_v21, 0.0004427343  ;;  %v4703_v62 = vmul.f32 %v4622_v27, %v1897_v49 }
 0x290   : > { %v4666_v43 = vpop.eup %3389  ;;  %3403 = vlog2.f32 %v1920_v0  ;;  %v1929_v51 = vadd.f32 1.0, %v4662_v63  ;;  %v4689_v0 = vadd.f32 %v1614_v17, %v4552_v58  ;;  %v1932_v2 = vmul.f32 -0.5, %v4662_v63 }
 0x291   : > { %3405 = vpow2.f32 %v1836_v48  ;;  %v1884_v15 = vadd.f32 1.0, %v4666_v43  ;;  %v1887_v6 = vmul.f32 -0.5, %v4666_v43  ;;  %v4691_v8 = vpop.eup %3391  ;;  %v1968_v48 = vmul.f32 -0.5, %v4650_v42 }
 0x292   : > { %3407 = vlog2.f32 %v1965_v5  ;;  %v1942_v1 = vadd.f32 1.0, %v1941_v11  ;;  %v1782_v17 = vand.u32 2147483647, %v4689_v0  ;;  %v1906_v23 = vadd.f32 1.0, %v1905_v20 }
 0x293   : > { %3409 = vpow2.f32 %v1838_v7  ;;  %v1888_v13 = vadd.f32 1.0, %v1887_v6  ;;  %v1926_v21 = vand.u32 2147483647, %v4639_v35  ;;  %v1908_v50 = vand.u32 2147483647, %v4632_v36 }
 0x294   : > { %3411 = vlog2.f32 %v1929_v51  ;;  %v1890_v44 = vand.u32 2147483647, %v4666_v43  ;;  %v1924_v7 = vadd.f32 1.0, %v1923_v61  ;;  %v1911_v33 = vadd.f32 1.0, %v4691_v8  ;;  %v3139_v61 = vpop.f32.mrf.mxu0 }
 0x295   : > { %3413 = vlog2.f32 %v1884_v15  ;;  %vm4710_vm4 = vcmp.lt.f32.partialorder %v1944_v57, 0.0004427343  ;;  %v1969_v11 = vadd.f32 1.0, %v1968_v48  ;;  %v1933_v51 = vadd.f32 1.0, %v1932_v2  ;;  %v1618_v2 = vpop.f32.mrf.mxu1 }
 0x296   : > { %v3394_v5 = vpop.eup %3393  ;;  %v1806_v20 = vsub.f32 0.0, %v1782_v17  ;;  %v4715_v29 = vmul.f32 %v4625_v60, %v1942_v1  ;;  %v1971_v19 = vand.u32 2147483647, %v4650_v42  ;;  %v1914_v14 = vmul.f32 -0.5, %v4691_v8 }
 0x297   : > { %v1868_v27 = vmul.f32 0.6931472, %v3394_v5  ;;  %vm4719_vm5 = vcmp.lt.f32.partialorder %v1899_v12, 0.0004427343  ;;  %v4724_v57 = vmul.f32 %v4632_v36, %v1906_v23  ;;  %v4727_v48 = vmul.f32 %v4666_v43, %v1888_v13 }
 0x298   : > { %v3396_v3 = vpop.eup %3395  ;;  %vm4729_vm1 = vcmp.lt.f32.partialorder %v1926_v21, 0.0004427343  ;;  %v1784_v60 = vand.u32 2147483647, %v4660_v32  ;;  %vm4734_vm3 = vcmp.lt.f32.partialorder %v1908_v50, 0.0004427343  ;;  %v1925_v12 = vmul.f32 %v4639_v35, %v1924_v7 }
 0x299   : > { %v3398_v15 = vpop.eup %3397  ;;  %v1877_v6 = vmul.f32 0.6931472, %v3396_v3  ;;  %v1935_v36 = vand.u32 2147483647, %v4662_v63  ;;  %3415 = vlog2.f32 %v1911_v33  ;;  %v4741_v43 = vadd.f32 %v1616_v34, %v4554_v45 }
 0x29a   : > { %v3400_v59 = vpop.eup %3399  ;;  %v1874_v13 = vsel %vm4681_vm0, %v4673_v53, %v1868_v27  ;;  %v4747_v21 = vmul.f32 %v4650_v42, %v1969_v11  ;;  %v4750_v50 = vmul.f32 %v4662_v63, %v1933_v51  ;;  %v1842_v9 = vmul.f32 1.442695, %v1806_v20  ;;  %v1686_v42 = vpop.f32.mrf.mxu0 }
 0x29b   : > { %v3402_v1 = vpop.eup %3401  ;;  %v1883_v35 = vsel %vm4696_vm12, %v4694_v10, %v1877_v6  ;;  %v1940_v33 = vmul.f32 0.6931472, %v3400_v59  ;;  %vm4757_vm11 = vcmp.lt.f32.partialorder %v1971_v19, 0.0004427343  ;;  %v1915_v16 = vadd.f32 1.0, %v1914_v14  ;;  %v1620_v51 = vpop.f32.mrf.mxu1 }
 0x29c   : > { %v4762_v53 = vadd.f32 %v3139_v61, %v4573_v4  ;;  %v1917_v63 = vand.u32 2147483647, %v4691_v8  ;;  %v1858_v27 = vmul.f32 1.442695, %v4669_v30  ;;  %v1808_v11 = vsub.f32 0.0, %v1784_v60 }
 0x29d   : > { %v3404_v23 = vpop.eup %3403  ;;  %v4769_v59 = vadd.f32 %v1874_v13, %v1698_v55  ;;  %v1895_v19 = vmul.f32 0.6931472, %v3398_v15  ;;  %v1783_v10 = vand.u32 2147483647, %v4741_v43  ;;  %v4776_v20 = vadd.f32 %v1883_v35, %v1699_v46 }
 0x29e   : > { %v4752_v38 = vpop.eup %3405  ;;  %v1922_v14 = vmul.f32 0.6931472, %v3404_v23  ;;  %v1904_v6 = vmul.f32 0.6931472, %v3402_v1  ;;  %vm4778_vm2 = vcmp.lt.f32.partialorder %v1935_v36, 0.0004427343  ;;  %3417 = vpow2.f32 %v1842_v9 }
 0x29f   : > { %v1947_v7 = vadd.f32 1.0, %v4752_v38  ;;  %v3408_v41 = vpop.eup %3407  ;;  %v4783_v55 = vadd.f32 %v1686_v42, %v4573_v4  ;;  %v1946_v61 = vsel %vm4710_vm4, %v4715_v29, %v1940_v33  ;;  %vm4790_vm6 = vcmp.lt.f32.partialorder %v1890_v44, 0.0004427343  ;;  %v1624_v29 = vpop.f32.mrf.mxu1 }
 0x2a0   : > { %v4785_v15 = vpop.eup %3409  ;;  %v4795_v46 = vmul.f32 %v4691_v8, %v1915_v16  ;;  %v1793_v1 = vand.u32 2147483647, %v4762_v53  ;;  %v1967_v4 = vmul.f32 0.6931472, %v3408_v41  ;;  %v1846_v49 = vmul.f32 1.442695, %v1808_v11 }
 0x2a1   : > { %3419 = vlog2.f32 %v1947_v7  ;;  %v3412_v9 = vpop.eup %3411  ;;  %v1956_v36 = vadd.f32 1.0, %v4785_v15  ;;  %v1901_v23 = vsel %vm4719_vm5, %v4703_v62, %v1895_v19  ;;  %v1928_v13 = vsel %vm4729_vm1, %v1925_v12, %v1922_v14 }
 0x2a2   : > { %3421 = vpow2.f32 %v1858_v27  ;;  %v3414_v44 = vpop.eup %3413  ;;  %v1807_v35 = vsub.f32 0.0, %v1783_v10  ;;  %v4807_v33 = vadd.f32 %v1618_v2, %v4552_v58  ;;  %v5431_v16 = vmax.f32 %v4585_v37, 0.0 }
 0x2a3   : > { %v1910_v7 = vsel %vm4734_vm3, %v4724_v57, %v1904_v6  ;;  %v1787_v62 = vand.u32 2147483647, %v4783_v55  ;;  %v1931_v3 = vmul.f32 0.6931472, %v3412_v9  ;;  %3423 = vlog2.f32 %v1956_v36  ;;  %v1626_v57 = vpop.f32.mrf.mxu1 }
 0x2a4   : > { %v2090_v42 = vadd.f32 %v1946_v61, %v5431_v16  ;;  %v1817_v12 = vsub.f32 0.0, %v1793_v1  ;;  %v1844_v27 = vmul.f32 1.442695, %v1807_v35  ;;  %v1886_v2 = vmul.f32 0.6931472, %v3414_v44 }
 0x2a5   : > { %v5432_v11 = vmax.f32 %v4594_v56, 0.0  ;;  %v1973_v17 = vsel %vm4757_vm11, %v4747_v21, %v1967_v4  ;;  %3425 = vpow2.f32 %v1846_v49  ;;  %v1811_v19 = vsub.f32 0.0, %v1787_v62 }
 0x2a6   : > { %3427 = vpow2.f32 %v1844_v27  ;;  %v1785_v14 = vand.u32 2147483647, %v4807_v33  ;;  %v4825_v10 = vadd.f32 %v1620_v51, %v4554_v45  ;;  %v3416_v6 = vpop.eup %3415  ;;  %v5433_v61 = vmax.f32 %v4582_v22, 0.0 }
 0x2a7   : > { %v2088_v41 = vadd.f32 %v1928_v13, %v5432_v11  ;;  %v4835_v34 = vsel %vm1730_vm8, %v4585_v37, %v2090_v42  ;;  %v1710_v21 = vmax.f32 %v4689_v0, 0.0  ;;  %v4839_v9 = vadd.f32 %v1624_v29, %v4552_v58 }
 0x2a8   : > { %v4829_v1 = vadd.f32 %v1901_v23, %v5433_v61  ;;  %v5434_v4 = vmax.f32 %v4590_v25, 0.0  ;;  %v5435_v36 = vmax.f32 %v4601_v40, 0.0  ;;  %v1937_v44 = vsel %vm4778_vm2, %v4750_v50, %v1931_v3  ;;  %v1628_v50 = vpop.f32.mrf.mxu1 }
 0x2a9   : > { %v1864_v23 = vmul.f32 1.442695, %v1817_v12  ;;  %v1892_v37 = vsel %vm4790_vm6, %v4727_v48, %v1886_v2  ;;  %vm4857_vm15 = vcmp.lt.f32.partialorder %v1917_v63, 0.0004427343  ;;  %v1809_v35 = vsub.f32 0.0, %v1785_v14 }
 0x2aa   : > { %v4843_v51 = vadd.f32 %v1910_v7, %v5434_v4  ;;  %v2093_v49 = vadd.f32 %v1973_v17, %v5435_v36  ;;  %v1786_v30 = vand.u32 2147483647, %v4825_v10  ;;  %v2112_v48 = vsel %vm1728_vm7, %v4594_v56, %v2088_v41 }
 0x2ab   : > { %v4867_v60 = vmul.f32 0.6931472, %v3416_v6  ;;  %v1950_v16 = vmul.f32 -0.5, %v4752_v38  ;;  %v1852_v8 = vmul.f32 1.442695, %v1811_v19  ;;  %v5438_v63 = vmax.f32 %v4604_v26, 0.0  ;;  %v4873_v12 = vpop.eup %3417 }
 0x2ac   : > { %v1848_v7 = vmul.f32 1.442695, %v1809_v35  ;;  %v1810_v62 = vsub.f32 0.0, %v1786_v30  ;;  %v1788_v3 = vand.u32 2147483647, %v4839_v9  ;;  %v2117_v27 = vsel %vm1733_vm13, %v4601_v40, %v2093_v49 }
 0x2ad   : > { %v2089_v42 = vadd.f32 %v1937_v44, %v5438_v63  ;;  %3429 = vpow2.f32 %v1864_v23  ;;  %v4880_v56 = vadd.f32 %v1626_v57, %v4554_v45  ;;  %v4883_v2 = vadd.f32 %v1628_v50, %v4552_v58 }
 0x2ae   : > { %v3420_v11 = vpop.eup %3419  ;;  %v1959_v41 = vmul.f32 -0.5, %v4785_v15  ;;  %3431 = vpow2.f32 %v1848_v7  ;;  %v1850_v17 = vmul.f32 1.442695, %v1810_v62  ;;  %v1812_v19 = vsub.f32 0.0, %v1788_v3 }
 0x2af   : > { %v4886_v14 = vpop.eup %3421  ;;  %v1951_v6 = vadd.f32 1.0, %v1950_v16  ;;  %v1953_v61 = vand.u32 2147483647, %v4752_v38  ;;  %3433 = vpow2.f32 %v1852_v8  ;;  %v1789_v40 = vand.u32 2147483647, %v4880_v56 }
 0x2b0   : > { %v1974_v57 = vadd.f32 1.0, %v4873_v12  ;;  %3435 = vpow2.f32 %v1850_v17  ;;  %v1854_v4 = vmul.f32 1.442695, %v1812_v19  ;;  %v1791_v58 = vand.u32 2147483647, %v4883_v2  ;;  %v3424_v30 = vpop.eup %3423 }
 0x2b1   : > { %v5439_v36 = vmax.f32 %v4597_v47, 0.0  ;;  %v4896_v44 = vadd.f32 -0.6931472, %v2112_v48  ;;  %v1949_v23 = vmul.f32 0.6931472, %v3420_v11  ;;  %v1711_v35 = vmax.f32 %v4741_v43, 0.0 }
 0x2b2   : > { %v4899_v50 = vadd.f32 -0.6931472, %v2117_v27  ;;  %v1960_v16 = vadd.f32 1.0, %v1959_v41  ;;  %3437 = vpow2.f32 %v1854_v4  ;;  %v4902_v63 = vpop.eup %3425  ;;  %v1919_v48 = vsel %vm4857_vm15, %v4795_v46, %v4867_v60 }
 0x2b3   : > { %v4894_v49 = vadd.f32 %v1892_v37, %v5439_v36  ;;  %v2113_v37 = vsel %vm1729_vm14, %v4604_v26, %v2089_v42  ;;  %v1952_v7 = vmul.f32 %v4752_v38, %v1951_v6  ;;  %v1813_v62 = vsub.f32 0.0, %v1789_v40  ;;  %v4915_v3 = vpop.eup %3427  ;;  %v1630_v42 = vpop.f32.mrf.mxu1 }
 0x2b4   : > { %vm4917_vm10 = vcmp.lt.f32.partialorder %v1953_v61, 0.0004427343  ;;  %v1962_v11 = vand.u32 2147483647, %v4785_v15  ;;  %3439 = vlog2.f32 %v1974_v57  ;;  %v1815_v26 = vsub.f32 0.0, %v1791_v58 }
 0x2b5   : > { %v1955_v46 = vsel %vm4917_vm10, %v1952_v7, %v1949_v23  ;;  %v2046_v29 = vadd.f32 1.0, %v4886_v14  ;;  %v1958_v60 = vmul.f32 0.6931472, %v3424_v30  ;;  %v1983_v38 = vadd.f32 1.0, %v4915_v3 }
 0x2b6   : > { %v2049_v41 = vmul.f32 -0.5, %v4886_v14  ;;  %v1961_v17 = vmul.f32 %v4785_v15, %v1960_v16  ;;  %v1977_v19 = vmul.f32 -0.5, %v4873_v12  ;;  %v1856_v6 = vmul.f32 1.442695, %v1813_v62 }
 0x2b7   : > { %vm1732_vm0 = vcmp.ne.f32.partialorder %v4630_v28, %v4630_v28  ;;  %v1992_v61 = vadd.f32 1.0, %v4902_v63  ;;  %3441 = vlog2.f32 %v1983_v38  ;;  %v1860_v40 = vmul.f32 1.442695, %v1815_v26 }
 0x2b8   : > { %v4933_v57 = vadd.f32 %v1630_v42, %v4554_v45  ;;  %v5442_v4 = vmax.f32 %v4614_v54, 0.0  ;;  %vm4937_vm12 = vcmp.lt.f32.partialorder %v1962_v11, 0.0004427343  ;;  %v1995_v15 = vmul.f32 -0.5, %v4902_v63 }
 0x2b9   : > { %3443 = vpow2.f32 %v1856_v6  ;;  %v4942_v23 = vadd.f32 -0.6931472, %v2113_v37  ;;  %v5445_v30 = vmax.f32 %v4610_v18, 0.0  ;;  %v1964_v45 = vsel %vm4937_vm12, %v1961_v17, %v1958_v60 }
 0x2ba   : > { %v2091_v58 = vadd.f32 %v1955_v46, %v5442_v4  ;;  %3445 = vpow2.f32 %v1860_v40  ;;  %vm1722_vm4 = vcmp.ne.f32.partialorder %v4571_v31, %v4571_v31  ;;  %v4952_v7 = vpop.eup %3429  ;;  %v4954_v62 = vadd.f32 1.0, %v2049_v41 }
 0x2bb   : > { %v4946_v16 = vadd.f32 %v1919_v48, %v5445_v30  ;;  %3447 = vlog2.f32 %v2046_v29  ;;  %v1978_v37 = vadd.f32 1.0, %v1977_v19  ;;  %v4957_v11 = vpop.eup %3431  ;;  %v1980_v48 = vand.u32 2147483647, %v4873_v12 }
 0x2bc   : > { %3449 = vlog2.f32 %v1992_v61  ;;  %v1713_v26 = vmax.f32 %v4807_v33, 0.0  ;;  %v1792_v42 = vand.u32 2147483647, %v4933_v57  ;;  %v4962_v46 = vpop.eup %3433  ;;  %v2115_v29 = vsel %vm1731_vm9, %v4614_v54, %v2091_v58 }
 0x2bd   : > { %v5446_v60 = vmax.f32 %v4630_v28, 0.0  ;;  %v4970_v41 = vadd.f32 1.0, %v1995_v15  ;;  %v4973_v19 = vpop.eup %3435  ;;  %v1986_v6 = vmul.f32 -0.5, %v4915_v3  ;;  %v2001_v61 = vadd.f32 1.0, %v4957_v11 }
 0x2be   : > { %v1816_v4 = vsub.f32 0.0, %v1792_v42  ;;  %v4979_v36 = vmul.f32 %v4873_v12, %v1978_v37  ;;  %v2010_v54 = vadd.f32 1.0, %v4973_v19  ;;  %vm1723_vm5 = vcmp.ne.f32.partialorder %v4577_v39, %v4577_v39 }
 0x2bf   : > { %v2092_v38 = vadd.f32 %v1964_v45, %v5446_v60  ;;  %v4986_v30 = vpop.eup %3437  ;;  %v2937_v45 = vadd.f32 -0.6931472, %v2115_v29  ;;  %vm4988_vm1 = vcmp.lt.f32.partialorder %v1980_v48, 0.0004427343  ;;  %v2076_v42 = vmul.f32 -0.5, %v4952_v7 }
 0x2c0   : > { %3451 = vlog2.f32 %v2001_v61  ;;  %v1862_v12 = vmul.f32 1.442695, %v1816_v4  ;;  %v2019_v13 = vadd.f32 1.0, %v4962_v46  ;;  %v2028_v27 = vadd.f32 1.0, %v4986_v30 }
 0x2c1   : > { %v2116_v37 = vsel %vm1732_vm0, %v4630_v28, %v2092_v38  ;;  %3453 = vlog2.f32 %v2010_v54  ;;  %v3440_v5 = vpop.eup %3439  ;;  %v2073_v48 = vadd.f32 1.0, %v4952_v7  ;;  %v1987_v29 = vadd.f32 1.0, %v1986_v6 }
 0x2c2   : > { %v1989_v8 = vand.u32 2147483647, %v4915_v3  ;;  %vm1725_vm3 = vcmp.ne.f32.partialorder %v4582_v22, %v4582_v22  ;;  %3455 = vlog2.f32 %v2028_v27  ;;  %v2106_v28 = vsel %vm1722_vm4, %v4571_v31, %v4769_v59 }
 0x2c3   : > { %v2109_v38 = vsel %vm1725_vm3, %v4582_v22, %v4829_v1  ;;  %v2195_v4 = vpack.c.bf16 %v2937_v45, %v4896_v44  ;;  %v5012_v6 = vadd.f32 -0.6931472, %v2116_v37  ;;  %v5014_v54 = vadd.f32 1.0, %v2076_v42  ;;  %v3318_v37 = vld [vmem:[%s5383_s6 + $0xb0] sm:$0xff]  }
 0x2c4   : > { %3457 = vpow2.f32 %v1862_v12  ;;  %v3442_v15 = vpop.eup %3441  ;;  %v1976_v58 = vmul.f32 0.6931472, %v3440_v5  ;;  %v2928_v27 = vadd.f32 -0.6931472, %v2106_v28  ;;  %v2931_v61 = vadd.f32 -0.6931472, %v2109_v38 }
 0x2c5   : > { %3459 = vlog2.f32 %v2019_v13  ;;  %v1988_v17 = vmul.f32 %v4915_v3, %v1987_v29  ;;  %vm5019_vm11 = vcmp.lt.f32.partialorder %v1989_v8, 0.0004427343  ;;  %v2004_v22 = vmul.f32 -0.5, %v4957_v11 }
 0x2c6   : > { %v5016_v40 = vpop.eup %3443  ;;  %v2013_v59 = vmul.f32 -0.5, %v4973_v19  ;;  %v2031_v44 = vmul.f32 -0.5, %v4986_v30  ;;  %v2194_v13 = vpack.c.bf16 %v2931_v61, %v2928_v27  ;;  %vm1726_vm8 = vcmp.ne.f32.partialorder %v4590_v25, %v4590_v25 }
 0x2c7   : > { %v5025_v1 = vpop.eup %3445  ;;  %v2037_v5 = vadd.f32 1.0, %v5016_v40  ;;  %v1985_v8 = vmul.f32 0.6931472, %v3442_v15  ;;  %v2107_v42 = vsel %vm1723_vm5, %v4577_v39, %v4776_v20  ;;  %v2110_v12 = vsel %vm1726_vm8, %v4590_v25, %v4843_v51 }
 0x2c8   : > { %v5031_v45 = vpop.eup %3447  ;;  %v2055_v3 = vadd.f32 1.0, %v5025_v1  ;;  %v1982_v15 = vsel %vm4988_vm1, %v4979_v36, %v1976_v58  ;;  %v2022_v61 = vmul.f32 -0.5, %v4962_v46  ;;  %v2007_v28 = vand.u32 2147483647, %v4957_v11  ;;  %3156 = vmatprep.mubr.bf16.mxu1 %v2194_v13 }
 0x2c9   : > { %v3450_v29 = vpop.eup %3449  ;;  %3461 = vlog2.f32 %v2037_v5  ;;  %v2005_v38 = vadd.f32 1.0, %v2004_v22  ;;  %v2014_v39 = vadd.f32 1.0, %v2013_v59  ;;  %v2016_v20 = vand.u32 2147483647, %v4973_v19  ;;  %3157 = vmatmul.mubr.bf16.vlgmr.msra.gmra.mxu1 %v2195_v4 }
 0x2ca   : > { %3463 = vlog2.f32 %v2055_v3  ;;  %v2034_v25 = vand.u32 2147483647, %v4986_v30  ;;  %v2929_v51 = vadd.f32 -0.6931472, %v2107_v42  ;;  %v2932_v27 = vadd.f32 -0.6931472, %v2110_v12  ;;  %3189 = vmatpush3.bf16.msra.mxu1 %v4568_v52 }
 0x2cb   : > { %3465 = vlog2.f32 %v2073_v48  ;;  %v2383_v36 = vpack.c.bf16 %v5012_v6, %v4942_v23  ;;  %v5054_v58 = vmul.f32 0.6931472, %v3450_v29  ;;  %v1991_v60 = vsel %vm5019_vm11, %v1988_v17, %v1985_v8  ;;  %3190 = vmatprep.subr.bf16.mxu1 %v3318_v37  ;;  %v3319_v48 = vld [vmem:[%s5383_s6 + $0xa8] sm:$0xff]  }
 0x2cc   : > { %v2032_v22 = vadd.f32 1.0, %v2031_v44  ;;  %v2094_v59 = vadd.f32 %v1982_v15, %v1710_v21  ;;  %v2023_v5 = vadd.f32 1.0, %v2022_v61  ;;  %v2025_v52 = vand.u32 2147483647, %v4962_v46 }
 0x2cd   : > { %v3452_v4 = vpop.eup %3451  ;;  %v2382_v13 = vpack.c.bf16 %v2932_v27, %v2929_v51  ;;  %v2006_v3 = vmul.f32 %v4957_v11, %v2005_v38  ;;  %vm5065_vm2 = vcmp.lt.f32.partialorder %v2007_v28, 0.0004427343  ;;  %vm5069_vm6 = vcmp.lt.f32.partialorder %v2016_v20, 0.0004427343 }
 0x2ce   : > { %v3454_v23 = vpop.eup %3453  ;;  %v2003_v6 = vmul.f32 0.6931472, %v3452_v4  ;;  %v2095_v44 = vadd.f32 %v1991_v60, %v1711_v35  ;;  %v2015_v8 = vmul.f32 %v4973_v19, %v2014_v39  ;;  %vm5076_vm7 = vcmp.lt.f32.partialorder %v2034_v25, 0.0004427343  ;;  %3191 = vmatpush3.bf16.msra.mxu1 %v3318_v37  ;;  %v3320_v35 = vld [vmem:[%s5383_s6 + $0xa0] sm:$0xff]  }
 0x2cf   : > { %v2012_v21 = vmul.f32 0.6931472, %v3454_v23  ;;  %3180 = vmatprep.mubr.bf16.mxu0 %v2382_v13  ;;  %v3456_v11 = vpop.eup %3455  ;;  %v2033_v29 = vmul.f32 %v4986_v30, %v2032_v22  ;;  %v2058_v15 = vmul.f32 -0.5, %v5025_v1  ;;  %3192 = vmatprep.subr.bf16.mxu1 %v3319_v48  ;;  %vm1734_vm13 = vcmp.ne.f32.partialorder %v4689_v0, %v4689_v0 }
 0x2d0   : > { %v2009_v12 = vsel %vm5065_vm2, %v2006_v3, %v2003_v6  ;;  %3181 = vmatmul.mubr.bf16.vlgmr.msra.gmra.mxu0 %v2383_v36  ;;  %v2030_v30 = vmul.f32 0.6931472, %v3456_v11  ;;  %vm1737_vm14 = vcmp.ne.f32.partialorder %v4807_v33, %v4807_v33  ;;  %v5457_v38 = vand.u32 2147483647, %v4902_v63 }
 0x2d1   : > { %v5089_v19 = vpop.eup %3457  ;;  %v2097_v37 = vadd.f32 %v2009_v12, %v1713_v26  ;;  %v2018_v61 = vsel %vm5069_vm6, %v2015_v8, %v2012_v21  ;;  %v5460_v20 = vmax.f32 %v4825_v10, 0.0  ;;  %v2118_v26 = vsel %vm1734_vm13, %v4689_v0, %v2094_v59  ;;  %v3321_v0 = vld [vmem:[%s5383_s6 + $0x98] sm:$0xff]  }
 0x2d2   : > { %v3460_v28 = vpop.eup %3459  ;;  %vm5099_vm15 = vcmp.lt.f32.partialorder %v5457_v38, 0.0004427343  ;;  %v2064_v51 = vadd.f32 1.0, %v5089_v19  ;;  %vm1735_vm9 = vcmp.ne.f32.partialorder %v4741_v43, %v4741_v43  ;;  %v2040_v27 = vmul.f32 -0.5, %v5016_v40  ;;  %3193 = vmatpush3.bf16.msra.mxu1 %v3319_v48 }
 0x2d3   : > { %v2098_v25 = vadd.f32 %v2018_v61, %v5460_v20  ;;  %v2061_v36 = vand.u32 2147483647, %v5025_v1  ;;  %v2121_v60 = vsel %vm1737_vm14, %v4807_v33, %v2097_v37  ;;  %v2119_v22 = vsel %vm1735_vm9, %v4741_v43, %v2095_v44  ;;  %3194 = vmatprep.subr.bf16.mxu1 %v3320_v35 }
 0x2d4   : > { %v2036_v4 = vsel %vm5076_vm7, %v2033_v29, %v2030_v30  ;;  %v2059_v13 = vadd.f32 1.0, %v2058_v15  ;;  %3467 = vlog2.f32 %v2064_v51  ;;  %vm1738_vm10 = vcmp.ne.f32.partialorder %v4825_v10, %v4825_v10 }
 0x2d5   : > { %v2021_v59 = vmul.f32 0.6931472, %v3460_v28  ;;  %v2940_v23 = vadd.f32 -0.6931472, %v2118_v26  ;;  %v2943_v6 = vadd.f32 -0.6931472, %v2121_v60  ;;  %v2122_v33 = vsel %vm1738_vm10, %v4825_v10, %v2098_v25 }
 0x2d6   : > { %v3462_v48 = vpop.eup %3461  ;;  %v1997_v43 = vmul.f32 %v4902_v63, %v4970_v41  ;;  %vm5123_vm0 = vcmp.lt.f32.partialorder %v2025_v52, 0.0004427343  ;;  %v2941_v17 = vadd.f32 -0.6931472, %v2119_v22  ;;  %v2944_v31 = vadd.f32 -0.6931472, %v2122_v33  ;;  %3195 = vmatpush3.bf16.msra.mxu1 %v3320_v35 }
 0x2d7   : > { %v3464_v44 = vpop.eup %3463  ;;  %v2024_v21 = vmul.f32 %v4962_v46, %v2023_v5  ;;  %v5463_v8 = vmax.f32 %v4839_v9, 0.0  ;;  %v2043_v11 = vand.u32 2147483647, %v5016_v40  ;;  %v2196_v12 = vpack.c.bf16 %v2943_v6, %v2940_v23  ;;  %3196 = vmatprep.subr.bf16.mxu1 %v3321_v0  ;;  %v3322_v52 = vld [vmem:[%s5383_s6 + $0x90] sm:$0xff]  }
 0x2d8   : > { %v3466_v10 = vpop.eup %3465  ;;  %v2041_v29 = vadd.f32 1.0, %v2040_v27  ;;  %v2057_v15 = vmul.f32 0.6931472, %v3464_v44  ;;  %v2060_v63 = vmul.f32 %v5025_v1, %v2059_v13  ;;  %v2384_v41 = vpack.c.bf16 %v2944_v31, %v2941_v17 }
 0x2d9   : > { %v2100_v42 = vadd.f32 %v2036_v4, %v5463_v8  ;;  %v2027_v46 = vsel %vm5123_vm0, %v2024_v21, %v2021_v59  ;;  %vm2062_vm12 = vcmp.lt.f32.partialorder %v2061_v36, 0.0004427343  ;;  %3160 = vmatprep.mubr.bf16.mxu1 %v2196_v12  ;;  %vm1740_vm4 = vcmp.ne.f32.partialorder %v4839_v9, %v4839_v9 }
 0x2da   : > { %vm1727_vm5 = vcmp.ne.f32.partialorder %v4610_v18, %v4610_v18  ;;  %v2039_v5 = vmul.f32 0.6931472, %v3462_v48  ;;  %v2063_v35 = vsel %vm2062_vm12, %v2060_v63, %v2057_v15  ;;  %v2067_v1 = vmul.f32 -0.5, %v5089_v19  ;;  %3184 = vmatprep.mubr.bf16.mxu0 %v2384_v41  ;;  %3197 = vmatpush3.bf16.msra.mxu1 %v3321_v0 }
 0x2db   : > { %v2111_v37 = vsel %vm1727_vm5, %v4610_v18, %v4946_v16  ;;  %v2000_v61 = vsel %vm5099_vm15, %v1997_v43, %v5054_v58  ;;  %v5464_v30 = vmax.f32 %v4883_v2, 0.0  ;;  %v2124_v38 = vsel %vm1740_vm4, %v4839_v9, %v2100_v42  ;;  %3198 = vmatprep.subr.bf16.mxu1 %v3322_v52  ;;  %v3323_v16 = vld [vmem:[%s5383_s6 + $0x88] sm:$0xff]  }
 0x2dc   : > { %vm1724_vm1 = vcmp.ne.f32.partialorder %v4597_v47, %v4597_v47  ;;  %v2075_v20 = vmul.f32 0.6931472, %v3466_v10  ;;  %v2042_v25 = vmul.f32 %v5016_v40, %v2041_v29  ;;  %vm1743_vm3 = vcmp.ne.f32.partialorder %v4883_v2, %v4883_v2 }
 0x2dd   : > { %v2103_v28 = vadd.f32 %v2063_v35, %v5464_v30  ;;  %v2108_v18 = vsel %vm1724_vm1, %v4597_v47, %v4894_v49  ;;  %v5465_v9 = vmax.f32 %v4783_v55, 0.0  ;;  %vm5162_vm11 = vcmp.lt.f32.partialorder %v2043_v11, 0.0004427343  ;;  %v5231_v30 = vpop.permute.xlu1 %2161 }
 0x2de   : > { %v2933_v51 = vadd.f32 -0.6931472, %v2111_v37  ;;  %v2045_v26 = vsel %vm5162_vm11, %v2042_v25, %v2039_v5  ;;  %v2068_v27 = vadd.f32 1.0, %v2067_v1  ;;  %v2946_v47 = vadd.f32 -0.6931472, %v2124_v38  ;;  %3199 = vmatpush3.bf16.msra.mxu1 %v3322_v52 }
 0x2df   : > { %v2099_v58 = vadd.f32 %v2027_v46, %v5465_v9  ;;  %v2127_v40 = vsel %vm1743_vm3, %v4883_v2, %v2103_v28  ;;  %v2051_v36 = vmul.f32 %v4886_v14, %v4954_v62  ;;  %v1717_v60 = vmax.f32 %v4880_v56, 0.0  ;;  %3200 = vmatprep.subr.bf16.mxu1 %v3323_v16  ;;  %v3324_v62 = vld [vmem:[%s5383_s6 + $0x80] sm:$0xff]  }
 0x2e0   : > { %v2949_v49 = vadd.f32 -0.6931472, %v2127_v40  ;;  %v2070_v22 = vand.u32 2147483647, %v5089_v19  ;;  %v2930_v4 = vadd.f32 -0.6931472, %v2108_v18  ;;  %v2078_v59 = vmul.f32 %v4952_v7, %v5014_v54 }
 0x2e1   : > { %v2048_v13 = vmul.f32 0.6931472, %v5031_v45  ;;  %v5468_v2 = vmax.f32 %v4660_v32, 0.0  ;;  %v3468_v6 = vpop.eup %3467  ;;  %v5469_v33 = vand.u32 2147483647, %v4952_v7  ;;  %v2101_v45 = vadd.f32 %v2045_v26, %v1717_v60 }
 0x2e2   : > { %v2197_v23 = vpack.c.bf16 %v2949_v49, %v2946_v47  ;;  %v2572_v43 = vpack.c.bf16 %v2933_v51, %v2930_v4  ;;  %vm1739_vm2 = vcmp.ne.f32.partialorder %v4783_v55, %v4783_v55  ;;  %v2066_v3 = vmul.f32 0.6931472, %v3468_v6  ;;  %3201 = vmatpush3.bf16.msra.mxu1 %v3323_v16  ;;  %v5243_v16 = vld [vmem:[%s5384_s7 + $0x1] ss:$0 sm:$0xff] }
 0x2e3   : > { %v2096_v0 = vadd.f32 %v2000_v61, %v5468_v2  ;;  %vm5183_vm8 = vcmp.lt.f32.partialorder %v5469_v33, 0.0004427343  ;;  %v2069_v17 = vmul.f32 %v5089_v19, %v2068_v27  ;;  %v2123_v31 = vsel %vm1739_vm2, %v4783_v55, %v2099_v58  ;;  %3202 = vmatprep.subr.bf16.mxu1 %v3324_v62  ;;  %v5223_v61 = vpop.permute.xlu0 %2156  ;;  %v5245_v58 = vpop.permute.xlu1 %2171 }
 0x2e4   : > { %v2081_v54 = vsel %vm5183_vm8, %v2078_v59, %v2075_v20  ;;  %3161 = vmatmul.mubr.bf16.gmra.mxu1 %v2197_v23  ;;  %v5472_v7 = vand.u32 2147483647, %v4886_v14  ;;  %v1720_v21 = vmax.f32 %v4933_v57, 0.0  ;;  %vm2071_vm7 = vcmp.lt.f32.partialorder %v2070_v22, 0.0004427343 }
 0x2e5   : > { %3204 = vmatprep.mubr.bf16.mxu1 %v2572_v43  ;;  %vm1736_vm13 = vcmp.ne.f32.partialorder %v4660_v32, %v4660_v32  ;;  %v2072_v8 = vsel %vm2071_vm7, %v2069_v17, %v2066_v3  ;;  %vm1741_vm14 = vcmp.ne.f32.partialorder %v4880_v56, %v4880_v56  ;;  %v5475_v14 = vmax.f32 %v4762_v53, 0.0 }
 0x2e6   : > { %vm5195_vm6 = vcmp.lt.f32.partialorder %v5472_v7, 0.0004427343  ;;  %v2120_v55 = vsel %vm1736_vm13, %v4660_v32, %v2096_v0  ;;  %v2104_v11 = vadd.f32 %v2072_v8, %v1720_v21  ;;  %v2125_v12 = vsel %vm1741_vm14, %v4880_v56, %v2101_v45  ;;  %3203 = vmatpush3.bf16.msra.mxu1 %v3324_v62 }
 0x2e7   : > { %v2054_v19 = vsel %vm5195_vm6, %v2051_v36, %v2048_v13  ;;  %v2105_v42 = vadd.f32 %v2081_v54, %v5475_v14  ;;  %v2945_v10 = vadd.f32 -0.6931472, %v2123_v31  ;;  %v2936_v29 = vadd.f32 -0.6931472, %v4835_v34  ;;  %v5236_v38 = vpop.permute.xlu0 %2166  ;;  %v5272_v44 = vpop.permute.xlu1 %2181 }
 0x2e8   : > { %vm1744_vm15 = vcmp.ne.f32.partialorder %v4933_v57, %v4933_v57  ;;  %v5476_v15 = vmax.f32 %v4637_v24, 0.0  ;;  %v2942_v52 = vadd.f32 -0.6931472, %v2120_v55  ;;  %v2947_v46 = vadd.f32 -0.6931472, %v2125_v12 }
 0x2e9   : > { %v2128_v41 = vsel %vm1744_vm15, %v4933_v57, %v2104_v11  ;;  %v2573_v32 = vpack.c.bf16 %v4899_v50, %v2936_v29  ;;  %vm1745_vm9 = vcmp.ne.f32.partialorder %v4762_v53, %v4762_v53  ;;  %vm1742_vm10 = vcmp.ne.f32.partialorder %v4637_v24, %v4637_v24 }
 0x2ea   : > { %v2102_v63 = vadd.f32 %v2054_v19, %v5476_v15  ;;  %v2950_v5 = vadd.f32 -0.6931472, %v2128_v41  ;;  %v2574_v56 = vpack.c.bf16 %v2945_v10, %v2942_v52  ;;  %v2129_v34 = vsel %vm1745_vm9, %v4762_v53, %v2105_v42  ;;  %v5229_v53 = vld [vmem:[%s5384_s7] ss:$0 sm:$0xff]  ;;  %v5283_v41 = vld [vmem:[%s5384_s7 + $0x2] ss:$0 sm:$0xff] }
 0x2eb   : > { %v2951_v50 = vadd.f32 -0.6931472, %v2129_v34  ;;  %v5270_v7 = vpop.permute.xlu0 %2176  ;;  %v5278_v15 = vpop.permute.xlu1 %2191 }
 0x2ec   : > { %v2385_v35 = vpack.c.bf16 %v2950_v5, %v2947_v46  ;;  %3205 = vmatmul.mubr.bf16.vlgmr.msra.gmra.mxu1 %v2573_v32  ;;  %v2126_v57 = vsel %vm1742_vm10, %v4637_v24, %v2102_v63 }
 0x2ed   : > { %3208 = vmatprep.mubr.bf16.mxu1 %v2574_v56  ;;  %v2948_v1 = vadd.f32 -0.6931472, %v2126_v57 }
 0x2ee   : > { %3185 = vmatmul.mubr.bf16.gmra.mxu0 %v2385_v35 }
 0x2ef   : > { %v2575_v37 = vpack.c.bf16 %v2951_v50, %v2948_v1  ;;  %v2187_v8 = vpop.permute.xlu0 %2186 }
 0x2f4   : > { %3209 = vmatmul.mubr.bf16.gmra.mxu1 %v2575_v37 }
 0x389   : > { %v3158_v28 = vpop.f32.mrf.mxu1 }
 0x38a   : > { %v2312_v24 = vadd.f32 %v3158_v28, %v5229_v53 }
 0x38b   : > { %v2303_v20 = vpop.f32.mrf.mxu1 }
 0x38c   : > { %v2336_v25 = vmul.f32 %v2312_v24, %v5236_v38  ;;  %v2304_v18 = vadd.f32 %v5229_v53, %v2303_v20 }
 0x38d   : > { %v3159_v9 = vpop.f32.mrf.mxu1 }
 0x38e   : > { %v3044_v39 = vpack.c.bf16 %v2336_v25, %v2336_v25  ;;  %v2334_v40 = vmul.f32 %v2304_v18, %v5223_v61  ;;  %v2315_v51 = vadd.f32 %v3159_v9, %v5229_v53 }
 0x38f   : > { %v2306_v27 = vpop.f32.mrf.mxu1 }
 0x390   : > { %v3182_v26 = vpop.f32.mrf.mxu0  ;;  %2376 = vst [vmem:[%s5249_s26 + $0x18] sm:$0xf] %v3044_v39  ;;  %v3042_v47 = vpack.c.bf16 %v2334_v40, %v2334_v40  ;;  %v2337_v36 = vmul.f32 %v2315_v51, %v5245_v58  ;;  %v2307_v60 = vadd.f32 %v5229_v53, %v2306_v27 }
 0x391   : > { %v2502_v49 = vadd.f32 %v3182_v26, %v5243_v16 }
 0x392   : > { %v2493_v22 = vpop.f32.mrf.mxu0  ;;  %2374 = vst [vmem:[%s5249_s26] sm:$0xf] %v3042_v47  ;;  %v3045_v13 = vpack.c.bf16 %v2337_v36, %v2337_v36  ;;  %v2335_v0 = vmul.f32 %v2307_v60, %v5231_v30 }
 0x393   : > { %v2526_v4 = vmul.f32 %v2502_v49, %v5236_v38  ;;  %v2494_v2 = vadd.f32 %v5243_v16, %v2493_v22 }
 0x394   : > { %v3183_v59 = vpop.f32.mrf.mxu0  ;;  %2377 = vst [vmem:[%s5249_s26 + $0x24] sm:$0xf] %v3045_v13  ;;  %v3043_v6 = vpack.c.bf16 %v2335_v0, %v2335_v0 }
 0x395   : > { %v3052_v23 = vpack.c.bf16 %v2526_v4, %v2526_v4  ;;  %v2524_v62 = vmul.f32 %v2494_v2, %v5223_v61  ;;  %v2505_v33 = vadd.f32 %v3183_v59, %v5243_v16 }
 0x396   : > { %v2496_v48 = vpop.f32.mrf.mxu0  ;;  %2375 = vst [vmem:[%s5249_s26 + $0xc] sm:$0xf] %v3043_v6 }
 0x397   : > { %2566 = vst [vmem:[%s5249_s26 + $0x1c] sm:$0xf] %v3052_v23  ;;  %v3050_v45 = vpack.c.bf16 %v2524_v62, %v2524_v62  ;;  %v2527_v43 = vmul.f32 %v2505_v33, %v5245_v58  ;;  %v2497_v54 = vadd.f32 %v5243_v16, %v2496_v48 }
 0x399   : > { %2564 = vst [vmem:[%s5249_s26 + $0x4] sm:$0xf] %v3050_v45  ;;  %v3053_v3 = vpack.c.bf16 %v2527_v43, %v2527_v43  ;;  %v2525_v17 = vmul.f32 %v2497_v54, %v5231_v30 }
 0x39b   : > { %2567 = vst [vmem:[%s5249_s26 + $0x28] sm:$0xf] %v3053_v3  ;;  %v3051_v31 = vpack.c.bf16 %v2525_v17, %v2525_v17 }
 0x39d   : > { %2565 = vst [vmem:[%s5249_s26 + $0x10] sm:$0xf] %v3051_v31 }
 0x3a4   : > { %v3162_v21 = vpop.f32.mrf.mxu1 }
 0x3a5   : > { %v2328_v19 = vadd.f32 %v3162_v21, %v5229_v53 }
 0x3a6   : > { %v2319_v55 = vpop.f32.mrf.mxu1 }
 0x3a7   : > { %v2340_v14 = vmul.f32 %v2328_v19, %v2187_v8  ;;  %v2320_v42 = vadd.f32 %v5229_v53, %v2319_v55 }
 0x3a8   : > { %v3163_v11 = vpop.f32.mrf.mxu1 }
 0x3a9   : > { %v3048_v12 = vpack.c.bf16 %v2340_v14, %v2340_v14  ;;  %v2338_v10 = vmul.f32 %v2320_v42, %v5270_v7  ;;  %v2331_v29 = vadd.f32 %v3163_v11, %v5229_v53 }
 0x3aa   : > { %v2322_v63 = vpop.f32.mrf.mxu1 }
 0x3ab   : > { %2380 = vst [vmem:[%s5249_s26 + $0x48] sm:$0xf] %v3048_v12  ;;  %v3046_v52 = vpack.c.bf16 %v2338_v10, %v2338_v10  ;;  %v2341_v32 = vmul.f32 %v2331_v29, %v5278_v15  ;;  %v2323_v46 = vadd.f32 %v5229_v53, %v2322_v63 }
 0x3ac   : > { %v3206_v5 = vpop.f32.mrf.mxu1 }
 0x3ad   : > { %2378 = vst [vmem:[%s5249_s26 + $0x30] sm:$0xf] %v3046_v52  ;;  %v3049_v56 = vpack.c.bf16 %v2341_v32, %v2341_v32  ;;  %v2339_v34 = vmul.f32 %v2323_v46, %v5272_v44  ;;  %v2692_v35 = vadd.f32 %v3206_v5, %v5283_v41 }
 0x3ae   : > { %v3186_v57 = vpop.f32.mrf.mxu0  ;;  %v2683_v50 = vpop.f32.mrf.mxu1 }
 0x3af   : > { %v2518_v1 = vadd.f32 %v3186_v57, %v5243_v16  ;;  %2381 = vst [vmem:[%s5249_s26 + $0x54] sm:$0xf] %v3049_v56  ;;  %v3047_v37 = vpack.c.bf16 %v2339_v34, %v2339_v34  ;;  %v2716_v28 = vmul.f32 %v2692_v35, %v5236_v38  ;;  %v2684_v24 = vadd.f32 %v5283_v41, %v2683_v50 }
 0x3b0   : > { %v2509_v53 = vpop.f32.mrf.mxu0  ;;  %v3207_v20 = vpop.f32.mrf.mxu1 }
 0x3b1   : > { %v2530_v25 = vmul.f32 %v2518_v1, %v2187_v8  ;;  %v2510_v18 = vadd.f32 %v5243_v16, %v2509_v53  ;;  %2379 = vst [vmem:[%s5249_s26 + $0x3c] sm:$0xf] %v3047_v37  ;;  %v3060_v9 = vpack.c.bf16 %v2716_v28, %v2716_v28  ;;  %v2714_v39 = vmul.f32 %v2684_v24, %v5223_v61 }
 0x3b2   : > { %v3187_v40 = vpop.f32.mrf.mxu0  ;;  %v2695_v51 = vadd.f32 %v3207_v20, %v5283_v41  ;;  %v2686_v26 = vpop.f32.mrf.mxu1 }
 0x3b3   : > { %v3056_v27 = vpack.c.bf16 %v2530_v25, %v2530_v25  ;;  %v2528_v38 = vmul.f32 %v2510_v18, %v5270_v7  ;;  %v2521_v47 = vadd.f32 %v3187_v40, %v5243_v16  ;;  %2756 = vst [vmem:[%s5249_s26 + $0x20] sm:$0xf] %v3060_v9  ;;  %v3058_v49 = vpack.c.bf16 %v2714_v39, %v2714_v39 }
 0x3b4   : > { %v2512_v36 = vpop.f32.mrf.mxu0  ;;  %v2717_v60 = vmul.f32 %v2695_v51, %v5245_v58  ;;  %v2687_v22 = vadd.f32 %v5283_v41, %v2686_v26  ;;  %v3210_v61 = vpop.f32.mrf.mxu1 }
 0x3b5   : > { %2570 = vst [vmem:[%s5249_s26 + $0x4c] sm:$0xf] %v3056_v27  ;;  %v3054_v4 = vpack.c.bf16 %v2528_v38, %v2528_v38  ;;  %v2531_v13 = vmul.f32 %v2521_v47, %v5278_v15  ;;  %v2513_v2 = vadd.f32 %v5243_v16, %v2512_v36  ;;  %2754 = vst [vmem:[%s5249_s26 + $0x8] sm:$0xf] %v3058_v49 }
 0x3b6   : > { %v2708_v0 = vadd.f32 %v3210_v61, %v5283_v41  ;;  %v3061_v59 = vpack.c.bf16 %v2717_v60, %v2717_v60  ;;  %v2715_v23 = vmul.f32 %v2687_v22, %v5231_v30  ;;  %v2699_v62 = vpop.f32.mrf.mxu1 }
 0x3b7   : > { %2568 = vst [vmem:[%s5249_s26 + $0x34] sm:$0xf] %v3054_v4  ;;  %v3057_v58 = vpack.c.bf16 %v2531_v13, %v2531_v13  ;;  %v2529_v6 = vmul.f32 %v2513_v2, %v5272_v44  ;;  %v2700_v48 = vadd.f32 %v5283_v41, %v2699_v62 }
 0x3b8   : > { %v2720_v33 = vmul.f32 %v2708_v0, %v2187_v8  ;;  %2757 = vst [vmem:[%s5249_s26 + $0x2c] sm:$0xf] %v3061_v59  ;;  %v3059_v16 = vpack.c.bf16 %v2715_v23, %v2715_v23  ;;  %v3211_v45 = vpop.f32.mrf.mxu1 }
 0x3b9   : > { %2571 = vst [vmem:[%s5249_s26 + $0x58] sm:$0xf] %v3057_v58  ;;  %v3055_v43 = vpack.c.bf16 %v2529_v6, %v2529_v6  ;;  %v2718_v30 = vmul.f32 %v2700_v48, %v5270_v7  ;;  %v2711_v3 = vadd.f32 %v3211_v45, %v5283_v41 }
 0x3ba   : > { %v3064_v54 = vpack.c.bf16 %v2720_v33, %v2720_v33  ;;  %2755 = vst [vmem:[%s5249_s26 + $0x14] sm:$0xf] %v3059_v16  ;;  %v2702_v17 = vpop.f32.mrf.mxu1 }
 0x3bb   : > { %2569 = vst [vmem:[%s5249_s26 + $0x40] sm:$0xf] %v3055_v43  ;;  %v3062_v31 = vpack.c.bf16 %v2718_v30, %v2718_v30  ;;  %v2721_v21 = vmul.f32 %v2711_v3, %v5278_v15  ;;  %v2703_v19 = vadd.f32 %v5283_v41, %v2702_v17 }
 0x3bc   : > { %2760 = vst [vmem:[%s5249_s26 + $0x50] sm:$0xf] %v3064_v54 }
 0x3bd   : > { %2758 = vst [vmem:[%s5249_s26 + $0x38] sm:$0xf] %v3062_v31  ;;  %v3065_v8 = vpack.c.bf16 %v2721_v21, %v2721_v21  ;;  %v2719_v7 = vmul.f32 %v2703_v19, %v5272_v44 }
 0x3bf   : > { %2761 = vst [vmem:[%s5249_s26 + $0x5c] sm:$0xf] %v3065_v8  ;;  %v3063_v55 = vpack.c.bf16 %v2719_v7, %v2719_v7 }
 0x3c1   : > { %2759 = vst [vmem:[%s5249_s26 + $0x44] sm:$0xf] %v3063_v55 }
 0x3c2   : > { %3490 = shalt.err (!%p3487_p3)
}
 0x3c3   : > { %s3491_s20 = scalar_lea.hbm %s5332_s21, 1536  ;;  %s3495_s12 = scalar_lea.hbm %s5385_s8, 3072 }
 0x3c4   : > { %p3492_p4 = scmp.ne.s32.totalorder %s5332_s21, %s3491_s20  ;;  %p3496_p9 = scmp.lt.s32.totalorder %s5332_s21, %s5385_s8 }
 0x3c5   : > { %p3497_p10 = scmp.lt.s32.totalorder %s3495_s12, %s3491_s20 }
 0x3c6   : > { %p3493_p7 = pnand %p3492_p4, %p3633_p5 }
 0x3c7   : > { %p3498_p11 = por %p3497_p10, %p3496_p9 }
 0x3c8   : > { %p3494_p8 = pneg %p3493_p7 }
 0x3ca   : > { %p3499_p12 = pnand %p3498_p11, %p3494_p8 }
 0x3cc   : > { %3502 = shalt.err (!%p3499_p12)
}
 0x3cd   : > { %s3548_s19 = smov 192   ;;  %s3549_s22 = smov 12  }
 0x3ce   : > { %3246 = dma.vmem_to_hbm [thread:$0]  (%p3633_p5), %s5326_s17, 1536, %s5332_s21, %s5337_s9, %s3548_s19, %s3548_s19, %s3549_s22  }
 0x3cf PF: > { %p3252_p13 = scmp.ge.s32.totalorder %s3537_s30, 2  ;;  %s2792_s23 = sand.u32 1, %s3525_s27  }
 0x3d0   : > { %s2793_s24 = scalar_lea.sflag [#allocation3], %s2792_s23 }
 0x3d1   : > { %p3249_p0 = pnand %p3252_p13, %p3637_p6 }
 0x3d3   : > { %p3250_p1 = pneg %p3249_p0 }
 0x3d5   : > { %3520 = dma.done.wait (%p3250_p1), %s2793_s24, 1536  }
 0x3d6   : > { %3522 = vsyncadd (%p3250_p1), %s2793_s24, 4294965760  ;;  %p18_p2 = scmp.ge.s32.totalorder %s3620_s11, 4   ;;  %s5477_s27 = smov %s3529_s28 }
 0x3d7   : > { %s5478_s28 = smov %s3533_s29  ;;  %s5479_s29 = smov %s3631_s14 }
 0x3d8   : > { %s5480_s30 = smov %s3620_s11  ;;  %20 = sbr.rel (!%p18_p2) target bundleno = 3 (0x3), region = 94 }
 0x3dd   :  { %2798 = vsyncpa [#allocation3], 1 }
 0x3de   :  { %2800 = vsyncpa [#allocation3 + $0x1], 1 }

</bundles_post_ra>
